<compile_context>
chip_gen: v7x
topology: tpu7x:2x2x1
jax: 0.10.0
libtpu: 0.0.40
codegen_flags: <defaults>
</compile_context>

<pallas_src>
import jax
import jax.numpy as jnp
from jax.experimental import pallas as pl
from jax.experimental.pallas import tpu as pltpu

EPS = 1e-5


def _residual_block_kernel(
    xpad_ref,    # (N, H+2, W+2, C) bf16  padded input, NHWC
    xres_ref,    # (M/2, 2C)        f32   residual, lane-dense pairing
    w1_ref,      # (9C, C)          bf16  conv1 weights, rows ordered (kh, kw, cin)
    g1_ref,      # (1, C)           f32   BN1 gamma
    be1_ref,     # (1, C)           f32   BN1 beta
    a_ref,       # (1, 1)           f32   PReLU slope (SMEM)
    w2_ref,      # (9C, C)          bf16  conv2 weights
    g2_ref,      # (1, C)           f32   BN2 gamma
    be2_ref,     # (1, C)           f32   BN2 beta
    out_ref,     # (M/2, 2C)        f32
    y1pad_ref,   # scratch (N, H+2, W+4, C) bf16 (2-col halo => aligned stores)
):
    N, Hp, Wp, C = xpad_ref.shape
    H, W = Hp - 2, Wp - 2
    M = N * H * W
    half = M // 2

    def conv3x3(src_ref, w_ref, w_base):
        # Three accumulating MXU matmuls with K = 3C (one per kh).  The bf16
        # ref is only sliced along the leading (untiled) H dim; the kw shifts
        # are taken on the f32-unpacked slab, so no unaligned packed access.
        acc = jnp.zeros((M, C), jnp.float32)
        for kh in range(3):
            slab = src_ref[:, kh:kh + H, :, :].astype(jnp.float32)  # (N,H,*,C)
            group = jnp.concatenate(
                [slab[:, :, w_base + kw:w_base + kw + W, :].reshape(M, C)
                 for kw in range(3)],
                axis=1)                                             # (M, 3C)
            acc = acc + jnp.dot(group.astype(jnp.bfloat16),
                                w_ref[kh * 3 * C:(kh + 1) * 3 * C, :],
                                preferred_element_type=jnp.float32)
        return acc

    def bn_scale_shift(y2d, g_ref, be_ref):
        # Single-pass training-mode BN folded into per-channel scale + shift.
        mu = jnp.mean(y2d, axis=0, keepdims=True)
        ms = jnp.mean(y2d * y2d, axis=0, keepdims=True)
        var = ms - mu * mu
        scale = g_ref[...] * jax.lax.rsqrt(var + EPS)
        shift = be_ref[...] - mu * scale
        return scale, shift

    # ---- conv_block1: conv -> BN -> PReLU (bias is cancelled by BN) ----
    y1 = conv3x3(xpad_ref, w1_ref, 0)
    s1, t1 = bn_scale_shift(y1, g1_ref, be1_ref)
    y1 = y1 * s1 + t1
    alpha = a_ref[0, 0]
    y1 = jnp.where(y1 >= 0.0, y1, alpha * y1)

    # ---- re-pad y1 into the bf16 scratch; every store is pair-aligned ----
    ztb = jnp.zeros((N, 1, W + 4, C), jnp.bfloat16)
    zlr = jnp.zeros((N, H, 2, C), jnp.bfloat16)
    y1pad_ref[:, 0:1, :, :] = ztb
    y1pad_ref[:, H + 1:H + 2, :, :] = ztb
    y1pad_ref[:, 1:H + 1, 0:2, :] = zlr
    y1pad_ref[:, 1:H + 1, W + 2:W + 4, :] = zlr
    y1pad_ref[:, 1:H + 1, 2:W + 2, :] = (
        y1.reshape(N, H, W, C).astype(jnp.bfloat16))

    # ---- conv_block2: conv -> BN (data starts at column 2 => w_base=1) ----
    y2 = conv3x3(y1pad_ref, w2_ref, 1)
    s2, t2 = bn_scale_shift(y2, g2_ref, be2_ref)

    # ---- lane-dense epilogue: (M, C) -> (M/2, 2C), add f32 residual ----
    s2w = jnp.concatenate([s2, s2], axis=1)
    t2w = jnp.concatenate([t2, t2], axis=1)
    y2w = jnp.concatenate([y2[:half, :], y2[half:, :]], axis=1)
    out_ref[...] = y2w * s2w + t2w + xres_ref[...]


def _vmem_limit_bytes():
    cap = None
    try:
        cap = getattr(pltpu.get_tpu_info(), "vmem_capacity_bytes", None)
    except Exception:
        cap = None
    if not cap:
        cap = 128 * 1024 * 1024
    return int(max(32 * 1024 * 1024, min(cap // 2, 64 * 1024 * 1024)))


def residual_block_pallas(x_nchw, params):
    """x_nchw: (N, C, H, W) float32. Returns (N, C, H, W) float32."""
    w1, b1, g1, be1, a, w2, b2, g2, be2 = params  # b1/b2 dead under batch-stat BN
    N, C, H, W = x_nchw.shape
    M = N * H * W
    assert M % 2 == 0, "N*H*W must be even for the lane-dense (M/2, 2C) output"

    # NCHW (PyTorch) -> NHWC (channels on lanes).
    x_nhwc = jnp.transpose(x_nchw, (0, 2, 3, 1)).astype(jnp.float32)
    # bf16 padded copy for the convs (operands are bf16 at the MXU anyway):
    # halves the largest HBM->VMEM DMA and the VMEM residency.
    x_pad = jnp.pad(x_nhwc, ((0, 0), (1, 1), (1, 1), (0, 0))).astype(jnp.bfloat16)
    # f32 residual (exact residual add), pre-paired to the lane-dense layout:
    # columns [0,C) = pixels [0, M/2), columns [C,2C) = pixels [M/2, M).
    x_flat = x_nhwc.reshape(M, C)
    x_res = jnp.concatenate([x_flat[:M // 2], x_flat[M // 2:]], axis=1)

    # HWIO (3,3,C,C) -> (9C, C); row order (kh, kw, cin) matches the kernel.
    w1_2d = w1.reshape(9 * C, C).astype(jnp.bfloat16)
    w2_2d = w2.reshape(9 * C, C).astype(jnp.bfloat16)

    inputs = (
        x_pad, x_res,
        w1_2d, g1.reshape(1, C), be1.reshape(1, C),
        a.reshape(1, 1),
        w2_2d, g2.reshape(1, C), be2.reshape(1, C),
    )

    def vmem_spec(shape):
        nd = len(shape)
        return pl.BlockSpec(shape, lambda i, _nd=nd: (0,) * _nd)

    in_specs = [
        vmem_spec(x_pad.shape),
        vmem_spec(x_res.shape),
        vmem_spec(w1_2d.shape),
        vmem_spec((1, C)),
        vmem_spec((1, C)),
        pl.BlockSpec(memory_space=pltpu.MemorySpace.SMEM),  # PReLU slope
        vmem_spec(w2_2d.shape),
        vmem_spec((1, C)),
        vmem_spec((1, C)),
    ]

    flops = 2 * 2 * M * (9 * C) * C                       # two grouped convs
    bytes_accessed = int(sum(int(arr.size) * arr.dtype.itemsize for arr in inputs)
                         + M * C * 4)
    cost = pl.CostEstimate(flops=flops, transcendentals=2 * C,
                           bytes_accessed=bytes_accessed)

    out2d = pl.pallas_call(
        _residual_block_kernel,
        out_shape=jax.ShapeDtypeStruct((M // 2, 2 * C), jnp.float32),
        grid=(1,),
        in_specs=in_specs,
        out_specs=vmem_spec((M // 2, 2 * C)),
        scratch_shapes=[pltpu.VMEM((N, H + 2, W + 4, C), jnp.bfloat16)],
        compiler_params=pltpu.CompilerParams(
            dimension_semantics=("arbitrary",),
            vmem_limit_bytes=_vmem_limit_bytes()),
        cost_estimate=cost,
    )(*inputs)

    # Undo the lane-dense pixel pairing.
    out_flat = jnp.concatenate([out2d[:, :C], out2d[:, C:]], axis=0)  # (M, C)
    out_nhwc = out_flat.reshape(N, H, W, C)
    return jnp.transpose(out_nhwc, (0, 3, 1, 2))


def residual_block_reference(x_nchw, params, conv_dtype=jnp.float32):
    """Pure-JAX reference (PyTorch semantics, biases included).
    conv_dtype=bf16 mirrors the kernel's MXU operand rounding."""
    w1, b1, g1, be1, a, w2, b2, g2, be2 = params
    x = jnp.transpose(x_nchw, (0, 2, 3, 1)).astype(jnp.float32)

    def conv(h, w, b):
        y = jax.lax.conv_general_dilated(
            h.astype(conv_dtype), w.astype(conv_dtype),
            window_strides=(1, 1), padding="SAME",
            dimension_numbers=("NHWC", "HWIO", "NHWC"),
            preferred_element_type=jnp.float32,
            precision=jax.lax.Precision.HIGHEST)
        return y + b.reshape(1, 1, 1, -1)

    def bn(y, g, be):
        mu = jnp.mean(y, axis=(0, 1, 2), keepdims=True)
        var = jnp.mean((y - mu) ** 2, axis=(0, 1, 2), keepdims=True)
        return (y - mu) / jnp.sqrt(var + EPS) * g.reshape(1, 1, 1, -1) \
            + be.reshape(1, 1, 1, -1)

    y = conv(x, w1, b1)
    y = bn(y, g1, be1)
    y = jnp.where(y >= 0.0, y, a * y)
    y = conv(y, w2, b2)
    y = bn(y, g2, be2)
    y = y + x
    return jnp.transpose(y, (0, 3, 1, 2))


def init_params(key, n_channels, kernel_size=3):
    """Deterministic synthetic parameters (PyTorch init, HWIO conv layout)."""
    k1, k2, k3, k4 = jax.random.split(key, 4)
    fan_in = n_channels * kernel_size * kernel_size
    scale = 1.0 / jnp.sqrt(fan_in)
    w1 = jax.random.uniform(k1, (kernel_size, kernel_size, n_channels, n_channels),
                            jnp.float32, -scale, scale)
    b1 = jax.random.uniform(k2, (n_channels,), jnp.float32, -scale, scale)
    w2 = jax.random.uniform(k3, (kernel_size, kernel_size, n_channels, n_channels),
                            jnp.float32, -scale, scale)
    b2 = jax.random.uniform(k4, (n_channels,), jnp.float32, -scale, scale)
    g1 = jnp.ones((n_channels,), jnp.float32)
    be1 = jnp.zeros((n_channels,), jnp.float32)
    g2 = jnp.ones((n_channels,), jnp.float32)
    be2 = jnp.zeros((n_channels,), jnp.float32)
    a = jnp.array(0.25, jnp.float32)             # PReLU default slope
    return (w1, b1, g1, be1, a, w2, b2, g2, be2)


if __name__ == "__main__":
    N, C, H, W = 2, 64, 8, 8   # ResidualBlock default n_channels=64, kernel_size=3
    key = jax.random.PRNGKey(0)
    kx, kp = jax.random.split(key)
    x = jax.random.normal(kx, (N, C, H, W), jnp.float32)
    params = init_params(kp, C, kernel_size=3)

    out = jax.block_until_ready(residual_block_pallas(x, params))
    assert out.shape == (N, C, H, W)

    # Check vs. a reference that mirrors the kernel's bf16 conv operands
    # (f32 accumulation everywhere) -> validates kernel structure/semantics.
    ref_bf16 = jax.block_until_ready(
        residual_block_reference(x, params, conv_dtype=jnp.bfloat16))
    assert jnp.allclose(out, ref_bf16, rtol=1e-2, atol=1e-2), \
        float(jnp.max(jnp.abs(out - ref_bf16)))

    # Looser check vs. the pure-f32 PyTorch math: bf16 operand rounding is
    # amplified by the two training-mode BatchNorms.
    ref_f32 = jax.block_until_ready(
        residual_block_reference(x, params, conv_dtype=jnp.float32))
    assert jnp.allclose(out, ref_f32, rtol=3e-2, atol=3e-2), \
        float(jnp.max(jnp.abs(out - ref_f32)))

    print("KERNEL_OK")
</pallas_src>

<mosaic_0001>
module attributes {stable_mosaic.version = 11 : i64} {
  func.func @_residual_block_kernel(%arg0: i32, %arg1: memref<2x10x10x64xbf16, #tpu.memory_space<vmem>>, %arg2: memref<64x128xf32, #tpu.memory_space<vmem>>, %arg3: memref<576x64xbf16, #tpu.memory_space<vmem>>, %arg4: memref<1x64xf32, #tpu.memory_space<vmem>>, %arg5: memref<1x64xf32, #tpu.memory_space<vmem>>, %arg6: memref<1x1xf32, #tpu.memory_space<smem>>, %arg7: memref<576x64xbf16, #tpu.memory_space<vmem>>, %arg8: memref<1x64xf32, #tpu.memory_space<vmem>>, %arg9: memref<1x64xf32, #tpu.memory_space<vmem>>, %arg10: memref<64x128xf32, #tpu.memory_space<vmem>>, %arg11: memref<2x10x12x64xbf16, #tpu.memory_space<vmem>>) attributes {dimension_semantics = [#tpu.dimension_semantics<arbitrary>], iteration_bounds = array<i64: 1>, scalar_prefetch = 0 : i64, scratch_operands = 1 : i64, tpu.core_type = #tpu.core_type<tc>, window_params = [{pipeline_mode = #tpu.pipeline_mode<synchronous>, transform_indices = @transform_0, window_bounds = array<i64: 2, 10, 10, 64>}, {pipeline_mode = #tpu.pipeline_mode<synchronous>, transform_indices = @transform_1, window_bounds = array<i64: 64, 128>}, {pipeline_mode = #tpu.pipeline_mode<synchronous>, transform_indices = @transform_2, window_bounds = array<i64: 576, 64>}, {pipeline_mode = #tpu.pipeline_mode<synchronous>, transform_indices = @transform_3, window_bounds = array<i64: 1, 64>}, {pipeline_mode = #tpu.pipeline_mode<synchronous>, transform_indices = @transform_4, window_bounds = array<i64: 1, 64>}, {transform_indices = @transform_5, window_bounds = array<i64: 1, 1>}, {pipeline_mode = #tpu.pipeline_mode<synchronous>, transform_indices = @transform_6, window_bounds = array<i64: 576, 64>}, {pipeline_mode = #tpu.pipeline_mode<synchronous>, transform_indices = @transform_7, window_bounds = array<i64: 1, 64>}, {pipeline_mode = #tpu.pipeline_mode<synchronous>, transform_indices = @transform_8, window_bounds = array<i64: 1, 64>}, {pipeline_mode = #tpu.pipeline_mode<synchronous>, transform_indices = @transform_9, window_bounds = array<i64: 64, 128>}]} {
    %cst = arith.constant 0.000000e+00 : f32
    %0 = vector.broadcast %cst : f32 to vector<128x64xf32>
    %c0 = arith.constant 0 : index
    %c0_0 = arith.constant 0 : index
    %c0_1 = arith.constant 0 : index
    %c0_2 = arith.constant 0 : index
    %1 = vector.load %arg1[%c0, %c0_0, %c0_1, %c0_2] : memref<2x10x10x64xbf16, #tpu.memory_space<vmem>>, vector<2x8x10x64xbf16>
    %2 = arith.extf %1 : vector<2x8x10x64xbf16> to vector<2x8x10x64xf32>
    %3 = vector.extract_strided_slice %2 {offsets = [0, 0, 0, 0], sizes = [2, 8, 8, 64], strides = [1, 1, 1, 1]} : vector<2x8x10x64xf32> to vector<2x8x8x64xf32>
    %4 = vector.shape_cast %3 : vector<2x8x8x64xf32> to vector<128x64xf32>
    %5 = vector.extract_strided_slice %2 {offsets = [0, 0, 1, 0], sizes = [2, 8, 8, 64], strides = [1, 1, 1, 1]} : vector<2x8x10x64xf32> to vector<2x8x8x64xf32>
    %6 = vector.shape_cast %5 : vector<2x8x8x64xf32> to vector<128x64xf32>
    %7 = vector.extract_strided_slice %2 {offsets = [0, 0, 2, 0], sizes = [2, 8, 8, 64], strides = [1, 1, 1, 1]} : vector<2x8x10x64xf32> to vector<2x8x8x64xf32>
    %8 = vector.shape_cast %7 : vector<2x8x8x64xf32> to vector<128x64xf32>
    %9 = tpu.concatenate %4, %6, %8 in 1 : vector<128x64xf32>, vector<128x64xf32>, vector<128x64xf32> -> vector<128x192xf32>
    %10 = arith.truncf %9 : vector<128x192xf32> to vector<128x192xbf16>
    %c0_3 = arith.constant 0 : index
    %c0_4 = arith.constant 0 : index
    %11 = vector.load %arg3[%c0_3, %c0_4] : memref<576x64xbf16, #tpu.memory_space<vmem>>, vector<192x64xbf16>
    %cst_5 = arith.constant dense<0.000000e+00> : vector<128x64xf32>
    %12 = tpu.matmul %10, %11, %cst_5 {dimension_numbers = #tpu.dot_dimension_numbers<[1], [0], [0], [1], [0, 0, 1, 1], [], []>} : vector<128x192xbf16>, vector<192x64xbf16>, vector<128x64xf32> -> vector<128x64xf32>
    %13 = arith.addf %0, %12 : vector<128x64xf32>
    %c0_6 = arith.constant 0 : index
    %c1 = arith.constant 1 : index
    %c0_7 = arith.constant 0 : index
    %c0_8 = arith.constant 0 : index
    %14 = vector.load %arg1[%c0_6, %c1, %c0_7, %c0_8] : memref<2x10x10x64xbf16, #tpu.memory_space<vmem>>, vector<2x8x10x64xbf16>
    %15 = arith.extf %14 : vector<2x8x10x64xbf16> to vector<2x8x10x64xf32>
    %16 = vector.extract_strided_slice %15 {offsets = [0, 0, 0, 0], sizes = [2, 8, 8, 64], strides = [1, 1, 1, 1]} : vector<2x8x10x64xf32> to vector<2x8x8x64xf32>
    %17 = vector.shape_cast %16 : vector<2x8x8x64xf32> to vector<128x64xf32>
    %18 = vector.extract_strided_slice %15 {offsets = [0, 0, 1, 0], sizes = [2, 8, 8, 64], strides = [1, 1, 1, 1]} : vector<2x8x10x64xf32> to vector<2x8x8x64xf32>
    %19 = vector.shape_cast %18 : vector<2x8x8x64xf32> to vector<128x64xf32>
    %20 = vector.extract_strided_slice %15 {offsets = [0, 0, 2, 0], sizes = [2, 8, 8, 64], strides = [1, 1, 1, 1]} : vector<2x8x10x64xf32> to vector<2x8x8x64xf32>
    %21 = vector.shape_cast %20 : vector<2x8x8x64xf32> to vector<128x64xf32>
    %22 = tpu.concatenate %17, %19, %21 in 1 : vector<128x64xf32>, vector<128x64xf32>, vector<128x64xf32> -> vector<128x192xf32>
    %23 = arith.truncf %22 : vector<128x192xf32> to vector<128x192xbf16>
    %c192 = arith.constant 192 : index
    %c0_9 = arith.constant 0 : index
    %24 = vector.load %arg3[%c192, %c0_9] : memref<576x64xbf16, #tpu.memory_space<vmem>>, vector<192x64xbf16>
    %cst_10 = arith.constant dense<0.000000e+00> : vector<128x64xf32>
    %25 = tpu.matmul %23, %24, %cst_10 {dimension_numbers = #tpu.dot_dimension_numbers<[1], [0], [0], [1], [0, 0, 1, 1], [], []>} : vector<128x192xbf16>, vector<192x64xbf16>, vector<128x64xf32> -> vector<128x64xf32>
    %26 = arith.addf %13, %25 : vector<128x64xf32>
    %c0_11 = arith.constant 0 : index
    %c2 = arith.constant 2 : index
    %c0_12 = arith.constant 0 : index
    %c0_13 = arith.constant 0 : index
    %27 = vector.load %arg1[%c0_11, %c2, %c0_12, %c0_13] : memref<2x10x10x64xbf16, #tpu.memory_space<vmem>>, vector<2x8x10x64xbf16>
    %28 = arith.extf %27 : vector<2x8x10x64xbf16> to vector<2x8x10x64xf32>
    %29 = vector.extract_strided_slice %28 {offsets = [0, 0, 0, 0], sizes = [2, 8, 8, 64], strides = [1, 1, 1, 1]} : vector<2x8x10x64xf32> to vector<2x8x8x64xf32>
    %30 = vector.shape_cast %29 : vector<2x8x8x64xf32> to vector<128x64xf32>
    %31 = vector.extract_strided_slice %28 {offsets = [0, 0, 1, 0], sizes = [2, 8, 8, 64], strides = [1, 1, 1, 1]} : vector<2x8x10x64xf32> to vector<2x8x8x64xf32>
    %32 = vector.shape_cast %31 : vector<2x8x8x64xf32> to vector<128x64xf32>
    %33 = vector.extract_strided_slice %28 {offsets = [0, 0, 2, 0], sizes = [2, 8, 8, 64], strides = [1, 1, 1, 1]} : vector<2x8x10x64xf32> to vector<2x8x8x64xf32>
    %34 = vector.shape_cast %33 : vector<2x8x8x64xf32> to vector<128x64xf32>
    %35 = tpu.concatenate %30, %32, %34 in 1 : vector<128x64xf32>, vector<128x64xf32>, vector<128x64xf32> -> vector<128x192xf32>
    %36 = arith.truncf %35 : vector<128x192xf32> to vector<128x192xbf16>
    %c384 = arith.constant 384 : index
    %c0_14 = arith.constant 0 : index
    %37 = vector.load %arg3[%c384, %c0_14] : memref<576x64xbf16, #tpu.memory_space<vmem>>, vector<192x64xbf16>
    %cst_15 = arith.constant dense<0.000000e+00> : vector<128x64xf32>
    %38 = tpu.matmul %36, %37, %cst_15 {dimension_numbers = #tpu.dot_dimension_numbers<[1], [0], [0], [1], [0, 0, 1, 1], [], []>} : vector<128x192xbf16>, vector<192x64xbf16>, vector<128x64xf32> -> vector<128x64xf32>
    %39 = arith.addf %26, %38 : vector<128x64xf32>
    %cst_16 = arith.constant dense<0.000000e+00> : vector<64xf32>
    %40 = vector.multi_reduction <add>, %39, %cst_16 [0] : vector<128x64xf32> to vector<64xf32>
    %41 = vector.shape_cast %40 : vector<64xf32> to vector<1x64xf32>
    %cst_17 = arith.constant 1.280000e+02 : f32
    %42 = vector.broadcast %cst_17 : f32 to vector<1x64xf32>
    %43 = arith.divf %41, %42 : vector<1x64xf32>
    %44 = arith.mulf %39, %39 : vector<128x64xf32>
    %cst_18 = arith.constant dense<0.000000e+00> : vector<64xf32>
    %45 = vector.multi_reduction <add>, %44, %cst_18 [0] : vector<128x64xf32> to vector<64xf32>
    %46 = vector.shape_cast %45 : vector<64xf32> to vector<1x64xf32>
    %cst_19 = arith.constant 1.280000e+02 : f32
    %47 = vector.broadcast %cst_19 : f32 to vector<1x64xf32>
    %48 = arith.divf %46, %47 : vector<1x64xf32>
    %49 = arith.mulf %43, %43 : vector<1x64xf32>
    %50 = arith.subf %48, %49 : vector<1x64xf32>
    %c0_20 = arith.constant 0 : index
    %c0_21 = arith.constant 0 : index
    %51 = vector.load %arg4[%c0_20, %c0_21] : memref<1x64xf32, #tpu.memory_space<vmem>>, vector<1x64xf32>
    %cst_22 = arith.constant 9.99999974E-6 : f32
    %52 = vector.broadcast %cst_22 : f32 to vector<1x64xf32>
    %53 = arith.addf %50, %52 : vector<1x64xf32>
    %54 = math.rsqrt %53 : vector<1x64xf32>
    %55 = arith.mulf %51, %54 : vector<1x64xf32>
    %c0_23 = arith.constant 0 : index
    %c0_24 = arith.constant 0 : index
    %56 = vector.load %arg5[%c0_23, %c0_24] : memref<1x64xf32, #tpu.memory_space<vmem>>, vector<1x64xf32>
    %57 = arith.mulf %43, %55 : vector<1x64xf32>
    %58 = arith.subf %56, %57 : vector<1x64xf32>
    %59 = vector.broadcast %55 : vector<1x64xf32> to vector<128x64xf32>
    %60 = arith.mulf %39, %59 : vector<128x64xf32>
    %61 = vector.broadcast %58 : vector<1x64xf32> to vector<128x64xf32>
    %62 = arith.addf %60, %61 : vector<128x64xf32>
    %c0_25 = arith.constant 0 : index
    %c0_26 = arith.constant 0 : index
    %63 = memref.load %arg6[%c0_25, %c0_26] : memref<1x1xf32, #tpu.memory_space<smem>>
    %cst_27 = arith.constant 0.000000e+00 : f32
    %64 = vector.broadcast %cst_27 : f32 to vector<128x64xf32>
    %65 = arith.cmpf oge, %62, %64 : vector<128x64xf32>
    %66 = vector.broadcast %63 : f32 to vector<128x64xf32>
    %67 = arith.mulf %66, %62 : vector<128x64xf32>
    %68 = arith.select %65, %62, %67 : vector<128x64xi1>, vector<128x64xf32>
    %cst_28 = arith.constant 0.000000e+00 : bf16
    %69 = vector.broadcast %cst_28 : bf16 to vector<2x1x12x64xbf16>
    %cst_29 = arith.constant 0.000000e+00 : bf16
    %70 = vector.broadcast %cst_29 : bf16 to vector<2x8x2x64xbf16>
    %c0_30 = arith.constant 0 : index
    %c0_31 = arith.constant 0 : index
    %c0_32 = arith.constant 0 : index
    %c0_33 = arith.constant 0 : index
    %71 = vector.load %arg11[%c0_30, %c0_31, %c0_32, %c0_33] : memref<2x10x12x64xbf16, #tpu.memory_space<vmem>>, vector<2x1x12x64xbf16>
    tpu.vector_store %arg11[%c0_30, %c0_31, %c0_32, %c0_33], %69 {strides = array<i32>} : memref<2x10x12x64xbf16, #tpu.memory_space<vmem>>, vector<2x1x12x64xbf16>,
    %c0_34 = arith.constant 0 : index
    %c9 = arith.constant 9 : index
    %c0_35 = arith.constant 0 : index
    %c0_36 = arith.constant 0 : index
    %72 = vector.load %arg11[%c0_34, %c9, %c0_35, %c0_36] : memref<2x10x12x64xbf16, #tpu.memory_space<vmem>>, vector<2x1x12x64xbf16>
    tpu.vector_store %arg11[%c0_34, %c9, %c0_35, %c0_36], %69 {strides = array<i32>} : memref<2x10x12x64xbf16, #tpu.memory_space<vmem>>, vector<2x1x12x64xbf16>,
    %c0_37 = arith.constant 0 : index
    %c1_38 = arith.constant 1 : index
    %c0_39 = arith.constant 0 : index
    %c0_40 = arith.constant 0 : index
    %73 = vector.load %arg11[%c0_37, %c1_38, %c0_39, %c0_40] : memref<2x10x12x64xbf16, #tpu.memory_space<vmem>>, vector<2x8x2x64xbf16>
    tpu.vector_store %arg11[%c0_37, %c1_38, %c0_39, %c0_40], %70 {strides = array<i32>} : memref<2x10x12x64xbf16, #tpu.memory_space<vmem>>, vector<2x8x2x64xbf16>,
    %c0_41 = arith.constant 0 : index
    %c1_42 = arith.constant 1 : index
    %c10 = arith.constant 10 : index
    %c0_43 = arith.constant 0 : index
    %74 = vector.load %arg11[%c0_41, %c1_42, %c10, %c0_43] : memref<2x10x12x64xbf16, #tpu.memory_space<vmem>>, vector<2x8x2x64xbf16>
    tpu.vector_store %arg11[%c0_41, %c1_42, %c10, %c0_43], %70 {strides = array<i32>} : memref<2x10x12x64xbf16, #tpu.memory_space<vmem>>, vector<2x8x2x64xbf16>,
    %75 = vector.shape_cast %68 : vector<128x64xf32> to vector<2x8x8x64xf32>
    %76 = arith.truncf %75 : vector<2x8x8x64xf32> to vector<2x8x8x64xbf16>
    %c0_44 = arith.constant 0 : index
    %c1_45 = arith.constant 1 : index
    %c2_46 = arith.constant 2 : index
    %c0_47 = arith.constant 0 : index
    %77 = vector.load %arg11[%c0_44, %c1_45, %c2_46, %c0_47] : memref<2x10x12x64xbf16, #tpu.memory_space<vmem>>, vector<2x8x8x64xbf16>
    tpu.vector_store %arg11[%c0_44, %c1_45, %c2_46, %c0_47], %76 {strides = array<i32>} : memref<2x10x12x64xbf16, #tpu.memory_space<vmem>>, vector<2x8x8x64xbf16>,
    %cst_48 = arith.constant 0.000000e+00 : f32
    %78 = vector.broadcast %cst_48 : f32 to vector<128x64xf32>
    %c0_49 = arith.constant 0 : index
    %c0_50 = arith.constant 0 : index
    %c0_51 = arith.constant 0 : index
    %c0_52 = arith.constant 0 : index
    %79 = vector.load %arg11[%c0_49, %c0_50, %c0_51, %c0_52] : memref<2x10x12x64xbf16, #tpu.memory_space<vmem>>, vector<2x8x12x64xbf16>
    %80 = arith.extf %79 : vector<2x8x12x64xbf16> to vector<2x8x12x64xf32>
    %81 = vector.extract_strided_slice %80 {offsets = [0, 0, 1, 0], sizes = [2, 8, 8, 64], strides = [1, 1, 1, 1]} : vector<2x8x12x64xf32> to vector<2x8x8x64xf32>
    %82 = vector.shape_cast %81 : vector<2x8x8x64xf32> to vector<128x64xf32>
    %83 = vector.extract_strided_slice %80 {offsets = [0, 0, 2, 0], sizes = [2, 8, 8, 64], strides = [1, 1, 1, 1]} : vector<2x8x12x64xf32> to vector<2x8x8x64xf32>
    %84 = vector.shape_cast %83 : vector<2x8x8x64xf32> to vector<128x64xf32>
    %85 = vector.extract_strided_slice %80 {offsets = [0, 0, 3, 0], sizes = [2, 8, 8, 64], strides = [1, 1, 1, 1]} : vector<2x8x12x64xf32> to vector<2x8x8x64xf32>
    %86 = vector.shape_cast %85 : vector<2x8x8x64xf32> to vector<128x64xf32>
    %87 = tpu.concatenate %82, %84, %86 in 1 : vector<128x64xf32>, vector<128x64xf32>, vector<128x64xf32> -> vector<128x192xf32>
    %88 = arith.truncf %87 : vector<128x192xf32> to vector<128x192xbf16>
    %c0_53 = arith.constant 0 : index
    %c0_54 = arith.constant 0 : index
    %89 = vector.load %arg7[%c0_53, %c0_54] : memref<576x64xbf16, #tpu.memory_space<vmem>>, vector<192x64xbf16>
    %cst_55 = arith.constant dense<0.000000e+00> : vector<128x64xf32>
    %90 = tpu.matmul %88, %89, %cst_55 {dimension_numbers = #tpu.dot_dimension_numbers<[1], [0], [0], [1], [0, 0, 1, 1], [], []>} : vector<128x192xbf16>, vector<192x64xbf16>, vector<128x64xf32> -> vector<128x64xf32>
    %91 = arith.addf %78, %90 : vector<128x64xf32>
    %c0_56 = arith.constant 0 : index
    %c1_57 = arith.constant 1 : index
    %c0_58 = arith.constant 0 : index
    %c0_59 = arith.constant 0 : index
    %92 = vector.load %arg11[%c0_56, %c1_57, %c0_58, %c0_59] : memref<2x10x12x64xbf16, #tpu.memory_space<vmem>>, vector<2x8x12x64xbf16>
    %93 = arith.extf %92 : vector<2x8x12x64xbf16> to vector<2x8x12x64xf32>
    %94 = vector.extract_strided_slice %93 {offsets = [0, 0, 1, 0], sizes = [2, 8, 8, 64], strides = [1, 1, 1, 1]} : vector<2x8x12x64xf32> to vector<2x8x8x64xf32>
    %95 = vector.shape_cast %94 : vector<2x8x8x64xf32> to vector<128x64xf32>
    %96 = vector.extract_strided_slice %93 {offsets = [0, 0, 2, 0], sizes = [2, 8, 8, 64], strides = [1, 1, 1, 1]} : vector<2x8x12x64xf32> to vector<2x8x8x64xf32>
    %97 = vector.shape_cast %96 : vector<2x8x8x64xf32> to vector<128x64xf32>
    %98 = vector.extract_strided_slice %93 {offsets = [0, 0, 3, 0], sizes = [2, 8, 8, 64], strides = [1, 1, 1, 1]} : vector<2x8x12x64xf32> to vector<2x8x8x64xf32>
    %99 = vector.shape_cast %98 : vector<2x8x8x64xf32> to vector<128x64xf32>
    %100 = tpu.concatenate %95, %97, %99 in 1 : vector<128x64xf32>, vector<128x64xf32>, vector<128x64xf32> -> vector<128x192xf32>
    %101 = arith.truncf %100 : vector<128x192xf32> to vector<128x192xbf16>
    %c192_60 = arith.constant 192 : index
    %c0_61 = arith.constant 0 : index
    %102 = vector.load %arg7[%c192_60, %c0_61] : memref<576x64xbf16, #tpu.memory_space<vmem>>, vector<192x64xbf16>
    %cst_62 = arith.constant dense<0.000000e+00> : vector<128x64xf32>
    %103 = tpu.matmul %101, %102, %cst_62 {dimension_numbers = #tpu.dot_dimension_numbers<[1], [0], [0], [1], [0, 0, 1, 1], [], []>} : vector<128x192xbf16>, vector<192x64xbf16>, vector<128x64xf32> -> vector<128x64xf32>
    %104 = arith.addf %91, %103 : vector<128x64xf32>
    %c0_63 = arith.constant 0 : index
    %c2_64 = arith.constant 2 : index
    %c0_65 = arith.constant 0 : index
    %c0_66 = arith.constant 0 : index
    %105 = vector.load %arg11[%c0_63, %c2_64, %c0_65, %c0_66] : memref<2x10x12x64xbf16, #tpu.memory_space<vmem>>, vector<2x8x12x64xbf16>
    %106 = arith.extf %105 : vector<2x8x12x64xbf16> to vector<2x8x12x64xf32>
    %107 = vector.extract_strided_slice %106 {offsets = [0, 0, 1, 0], sizes = [2, 8, 8, 64], strides = [1, 1, 1, 1]} : vector<2x8x12x64xf32> to vector<2x8x8x64xf32>
    %108 = vector.shape_cast %107 : vector<2x8x8x64xf32> to vector<128x64xf32>
    %109 = vector.extract_strided_slice %106 {offsets = [0, 0, 2, 0], sizes = [2, 8, 8, 64], strides = [1, 1, 1, 1]} : vector<2x8x12x64xf32> to vector<2x8x8x64xf32>
    %110 = vector.shape_cast %109 : vector<2x8x8x64xf32> to vector<128x64xf32>
    %111 = vector.extract_strided_slice %106 {offsets = [0, 0, 3, 0], sizes = [2, 8, 8, 64], strides = [1, 1, 1, 1]} : vector<2x8x12x64xf32> to vector<2x8x8x64xf32>
    %112 = vector.shape_cast %111 : vector<2x8x8x64xf32> to vector<128x64xf32>
    %113 = tpu.concatenate %108, %110, %112 in 1 : vector<128x64xf32>, vector<128x64xf32>, vector<128x64xf32> -> vector<128x192xf32>
    %114 = arith.truncf %113 : vector<128x192xf32> to vector<128x192xbf16>
    %c384_67 = arith.constant 384 : index
    %c0_68 = arith.constant 0 : index
    %115 = vector.load %arg7[%c384_67, %c0_68] : memref<576x64xbf16, #tpu.memory_space<vmem>>, vector<192x64xbf16>
    %cst_69 = arith.constant dense<0.000000e+00> : vector<128x64xf32>
    %116 = tpu.matmul %114, %115, %cst_69 {dimension_numbers = #tpu.dot_dimension_numbers<[1], [0], [0], [1], [0, 0, 1, 1], [], []>} : vector<128x192xbf16>, vector<192x64xbf16>, vector<128x64xf32> -> vector<128x64xf32>
    %117 = arith.addf %104, %116 : vector<128x64xf32>
    %cst_70 = arith.constant dense<0.000000e+00> : vector<64xf32>
    %118 = vector.multi_reduction <add>, %117, %cst_70 [0] : vector<128x64xf32> to vector<64xf32>
    %119 = vector.shape_cast %118 : vector<64xf32> to vector<1x64xf32>
    %cst_71 = arith.constant 1.280000e+02 : f32
    %120 = vector.broadcast %cst_71 : f32 to vector<1x64xf32>
    %121 = arith.divf %119, %120 : vector<1x64xf32>
    %122 = arith.mulf %117, %117 : vector<128x64xf32>
    %cst_72 = arith.constant dense<0.000000e+00> : vector<64xf32>
    %123 = vector.multi_reduction <add>, %122, %cst_72 [0] : vector<128x64xf32> to vector<64xf32>
    %124 = vector.shape_cast %123 : vector<64xf32> to vector<1x64xf32>
    %cst_73 = arith.constant 1.280000e+02 : f32
    %125 = vector.broadcast %cst_73 : f32 to vector<1x64xf32>
    %126 = arith.divf %124, %125 : vector<1x64xf32>
    %127 = arith.mulf %121, %121 : vector<1x64xf32>
    %128 = arith.subf %126, %127 : vector<1x64xf32>
    %c0_74 = arith.constant 0 : index
    %c0_75 = arith.constant 0 : index
    %129 = vector.load %arg8[%c0_74, %c0_75] : memref<1x64xf32, #tpu.memory_space<vmem>>, vector<1x64xf32>
    %cst_76 = arith.constant 9.99999974E-6 : f32
    %130 = vector.broadcast %cst_76 : f32 to vector<1x64xf32>
    %131 = arith.addf %128, %130 : vector<1x64xf32>
    %132 = math.rsqrt %131 : vector<1x64xf32>
    %133 = arith.mulf %129, %132 : vector<1x64xf32>
    %c0_77 = arith.constant 0 : index
    %c0_78 = arith.constant 0 : index
    %134 = vector.load %arg9[%c0_77, %c0_78] : memref<1x64xf32, #tpu.memory_space<vmem>>, vector<1x64xf32>
    %135 = arith.mulf %121, %133 : vector<1x64xf32>
    %136 = arith.subf %134, %135 : vector<1x64xf32>
    %137 = tpu.concatenate %133, %133 in 1 : vector<1x64xf32>, vector<1x64xf32> -> vector<1x128xf32>
    %138 = tpu.concatenate %136, %136 in 1 : vector<1x64xf32>, vector<1x64xf32> -> vector<1x128xf32>
    %139 = vector.extract_strided_slice %117 {offsets = [0, 0], sizes = [64, 64], strides = [1, 1]} : vector<128x64xf32> to vector<64x64xf32>
    %140 = vector.extract_strided_slice %117 {offsets = [64, 0], sizes = [64, 64], strides = [1, 1]} : vector<128x64xf32> to vector<64x64xf32>
    %141 = tpu.concatenate %139, %140 in 1 : vector<64x64xf32>, vector<64x64xf32> -> vector<64x128xf32>
    %142 = vector.broadcast %137 : vector<1x128xf32> to vector<64x128xf32>
    %143 = arith.mulf %141, %142 : vector<64x128xf32>
    %144 = vector.broadcast %138 : vector<1x128xf32> to vector<64x128xf32>
    %145 = arith.addf %143, %144 : vector<64x128xf32>
    %c0_79 = arith.constant 0 : index
    %c0_80 = arith.constant 0 : index
    %146 = vector.load %arg2[%c0_79, %c0_80] : memref<64x128xf32, #tpu.memory_space<vmem>>, vector<64x128xf32>
    %147 = arith.addf %145, %146 : vector<64x128xf32>
    %c0_81 = arith.constant 0 : index
    %c0_82 = arith.constant 0 : index
    %148 = vector.load %arg10[%c0_81, %c0_82] : memref<64x128xf32, #tpu.memory_space<vmem>>, vector<64x128xf32>
    tpu.vector_store %arg10[%c0_81, %c0_82], %147 {strides = array<i32>} : memref<64x128xf32, #tpu.memory_space<vmem>>, vector<64x128xf32>,
    return
  }
  func.func @transform_0(%arg0: i32) -> (i32, i32, i32, i32) {
    %c0_i32 = arith.constant 0 : i32
    %c0_i32_0 = arith.constant 0 : i32
    %c0_i32_1 = arith.constant 0 : i32
    %c0_i32_2 = arith.constant 0 : i32
    %c0_i32_3 = arith.constant 0 : i32
    return %c0_i32, %c0_i32_0, %c0_i32_1, %c0_i32_2 : i32, i32, i32, i32
  }
  func.func @transform_1(%arg0: i32) -> (i32, i32) {
    %c0_i32 = arith.constant 0 : i32
    %c0_i32_0 = arith.constant 0 : i32
    %c0_i32_1 = arith.constant 0 : i32
    return %c0_i32, %c0_i32_0 : i32, i32
  }
  func.func @transform_2(%arg0: i32) -> (i32, i32) {
    %c0_i32 = arith.constant 0 : i32
    %c0_i32_0 = arith.constant 0 : i32
    %c0_i32_1 = arith.constant 0 : i32
    return %c0_i32, %c0_i32_0 : i32, i32
  }
  func.func @transform_3(%arg0: i32) -> (i32, i32) {
    %c0_i32 = arith.constant 0 : i32
    %c0_i32_0 = arith.constant 0 : i32
    %c0_i32_1 = arith.constant 0 : i32
    return %c0_i32, %c0_i32_0 : i32, i32
  }
  func.func @transform_4(%arg0: i32) -> (i32, i32) {
    %c0_i32 = arith.constant 0 : i32
    %c0_i32_0 = arith.constant 0 : i32
    %c0_i32_1 = arith.constant 0 : i32
    return %c0_i32, %c0_i32_0 : i32, i32
  }
  func.func @transform_5(%arg0: i32) -> (i32, i32) {
    %c0_i32 = arith.constant 0 : i32
    %c0_i32_0 = arith.constant 0 : i32
    %c0_i32_1 = arith.constant 0 : i32
    return %c0_i32, %c0_i32_0 : i32, i32
  }
  func.func @transform_6(%arg0: i32) -> (i32, i32) {
    %c0_i32 = arith.constant 0 : i32
    %c0_i32_0 = arith.constant 0 : i32
    %c0_i32_1 = arith.constant 0 : i32
    return %c0_i32, %c0_i32_0 : i32, i32
  }
  func.func @transform_7(%arg0: i32) -> (i32, i32) {
    %c0_i32 = arith.constant 0 : i32
    %c0_i32_0 = arith.constant 0 : i32
    %c0_i32_1 = arith.constant 0 : i32
    return %c0_i32, %c0_i32_0 : i32, i32
  }
  func.func @transform_8(%arg0: i32) -> (i32, i32) {
    %c0_i32 = arith.constant 0 : i32
    %c0_i32_0 = arith.constant 0 : i32
    %c0_i32_1 = arith.constant 0 : i32
    return %c0_i32, %c0_i32_0 : i32, i32
  }
  func.func @transform_9(%arg0: i32) -> (i32, i32) {
    %c0_i32 = arith.constant 0 : i32
    %c0_i32_0 = arith.constant 0 : i32
    %c0_i32_1 = arith.constant 0 : i32
    return %c0_i32, %c0_i32_0 : i32, i32
  }
}

</mosaic_0001>

<bundles_post_ra>
// kernel: tpu_custom_call.1
= control target key start
LH: loop header
LB: loop body
LE: loop exit
PB: predicated region body
PF: predicated region fallthrough
CT: control target
= control target key end

     0   :  { %15 = vsyncpa [#allocation5], 0  ;;  %s7382_s0 = inlined_call_operand.hbm [shape: bf16[2,10,10,64], index: 0, kind: input, shape index: {}]   ;;  %s7383_s1 = inlined_call_operand.hbm [shape: f32[64,128], index: 1, kind: input, shape index: {}]   ;;  %s7384_s2 = inlined_call_operand.hbm [shape: bf16[576,64], index: 2, kind: input, shape index: {}]   ;;  %s7385_s3 = inlined_call_operand.hbm [shape: f32[1,64], index: 3, kind: input, shape index: {}]   ;;  %s7386_s4 = inlined_call_operand.hbm [shape: f32[1,64], index: 4, kind: input, shape index: {}]   ;;  %s7387_s5 = inlined_call_operand.<no memory space> [shape: f32[1,1], index: 5, kind: input, shape index: {}]   ;;  %s7388_s6 = inlined_call_operand.hbm [shape: bf16[576,64], index: 6, kind: input, shape index: {}]   ;;  %s7389_s7 = inlined_call_operand.hbm [shape: f32[1,64], index: 7, kind: input, shape index: {}]   ;;  %s7390_s8 = inlined_call_operand.hbm [shape: f32[1,64], index: 8, kind: input, shape index: {}]   ;;  %s7391_s9 = inlined_call_operand.hbm [shape: f32[64,128], index: 9, kind: output, shape index: {}]  }
   0x1   :  { %16 = vsyncpa [#allocation8], 0 }
   0x2   :  { %17 = vsyncpa [#allocation11], 0 }
   0x3   :  { %18 = vsyncpa [#allocation14], 0 }
   0x4   :  { %19 = vsyncpa [#allocation17], 0 }
   0x5   :  { %20 = vsyncpa [#allocation6], 0  ;;  %s4848_s30 = smov [#allocation7]   ;;  %s4638_s13 = scalar_lea.hbm %s7383_s1, 1024 }
   0x6   :  { %s38_s10 = sshll.u32 %s4848_s30, 4  ;;  %p4639_p0 = scmp.ne.s32.totalorder %s7383_s1, %s4638_s13  ;;  %s39_s10 = int_to_ptr.vmem [resolvable:$true] %s38_s10 }
   0x7   :  { %p4642_p1 = scmp.lt.u32.totalorder %s4638_s13, %s7383_s1 }
   0x9   :  { %p4644_p2 = pnand %p4642_p1, %p4639_p0 }
   0xb   :  { %4647 = shalt.err (!%p4644_p2)
}
   0xc   :  { %s4648_s18 = scalar_lea.vmem %s39_s10, 1024  ;;  %p4653_p4 = scmp.lt.s32.totalorder %s39_s10, %s39_s10 }
   0xd   :  { %p4649_p3 = scmp.ne.s32.totalorder %s39_s10, %s4648_s18  ;;  %p4654_p5 = scmp.lt.s32.totalorder %s4648_s18, %s4648_s18 }
   0xf   :  { %p4655_p6 = por %p4654_p5, %p4653_p4 }
  0x11   :  { %p4656_p7 = pnand %p4655_p6, %p4649_p3 }
  0x13   :  { %4659 = shalt.err (!%p4656_p7)
}
  0x14   :  { %s4849_s19 = smov 128   ;;  %s4850_s20 = smov 8  }
  0x15   :  { %44 = dma.hbm_to_vmem [thread:$0]  %s7383_s1, 1024, %s39_s10, [#allocation8], %s4849_s19, %s4849_s19, %s4850_s20  }
  0x16   :  { %s4851_s23 = smov [#allocation10]   ;;  %s4660_s27 = scalar_lea.hbm %s7385_s3, 16 }
  0x17   :  { %s63_s24 = sshll.u32 %s4851_s23, 4  ;;  %p4661_p8 = scmp.ne.s32.totalorder %s7385_s3, %s4660_s27  ;;  %s64_s24 = int_to_ptr.vmem [resolvable:$true] %s63_s24 }
  0x18   :  { %p4664_p9 = scmp.lt.u32.totalorder %s4660_s27, %s7385_s3 }
  0x1a   :  { %p4666_p10 = pnand %p4664_p9, %p4661_p8 }
  0x1c   :  { %4669 = shalt.err (!%p4666_p10)
}
  0x1d   :  { %s4670_s12 = scalar_lea.vmem %s64_s24, 16  ;;  %s4674_s1 = scalar_lea.vmem %s64_s24, 32 }
  0x1e   :  { %p4671_p11 = scmp.ne.s32.totalorder %s64_s24, %s4670_s12  ;;  %p4675_p12 = scmp.lt.s32.totalorder %s64_s24, %s64_s24 }
  0x1f   :  { %p4676_p13 = scmp.lt.s32.totalorder %s4674_s1, %s4670_s12 }
  0x21   :  { %p4677_p0 = por %p4676_p13, %p4675_p12 }
  0x23   :  { %p4678_p1 = pnand %p4677_p0, %p4671_p11 }
  0x25   :  { %4681 = shalt.err (!%p4678_p1)
}
  0x26   :  { %66 = dma.hbm_to_vmem [thread:$0]  %s7385_s3, 16, %s64_s24, [#allocation11]  }
  0x27   :  { %s4852_s14 = smov [#allocation13]   ;;  %s4853_s16 = smov [#allocation4]  }
  0x28   :  { %s84_s15 = sshll.u32 %s4852_s14, 4  ;;  %s26_s17 = sshll.u32 %s4853_s16, 4  ;;  %s85_s15 = int_to_ptr.vmem [resolvable:$true] %s84_s15  ;;  %s4939_s17 = int_to_ptr.vmem [resolvable:$true] %s26_s17 }
  0x29   :  { %s4682_s22 = scalar_lea.hbm %s7388_s6, 4608 }
  0x2a   :  { %p4683_p2 = scmp.ne.s32.totalorder %s7388_s6, %s4682_s22  ;;  %p4686_p3 = scmp.lt.u32.totalorder %s4682_s22, %s7388_s6 }
  0x2c   :  { %p4688_p4 = pnand %p4686_p3, %p4683_p2 }
  0x2e   :  { %4691 = shalt.err (!%p4688_p4)
}
  0x2f   :  { %s4692_s3 = scalar_lea.vmem %s85_s15, 4608  ;;  %p4697_p6 = scmp.lt.s32.totalorder %s85_s15, %s85_s15 }
  0x30   :  { %p4693_p5 = scmp.ne.s32.totalorder %s85_s15, %s4692_s3  ;;  %p4698_p7 = scmp.lt.s32.totalorder %s4692_s3, %s4692_s3 }
  0x32   :  { %p4699_p8 = por %p4698_p7, %p4697_p6 }
  0x34   :  { %p4700_p9 = pnand %p4699_p8, %p4693_p5 }
  0x36   :  { %4703 = shalt.err (!%p4700_p9)
}
  0x37   :  { %s4854_s24 = smov 64   ;;  %s4855_s28 = smov 4  }
  0x38   :  { %90 = dma.hbm_to_vmem [thread:$0]  %s7388_s6, 4608, %s85_s15, [#allocation14], %s4854_s24, %s4854_s24, %s4855_s28  }
  0x39   :  { %s4704_s1 = scalar_lea.hbm %s7382_s0, 2560 }
  0x3a   :  { %p4705_p10 = scmp.ne.s32.totalorder %s7382_s0, %s4704_s1  ;;  %p4708_p11 = scmp.lt.u32.totalorder %s4704_s1, %s7382_s0 }
  0x3c   :  { %p4710_p12 = pnand %p4708_p11, %p4705_p10 }
  0x3e   :  { %4713 = shalt.err (!%p4710_p12)
}
  0x3f   :  { %s4714_s18 = scalar_lea.vmem %s4939_s17, 2560  ;;  %p4719_p0 = scmp.lt.s32.totalorder %s4939_s17, %s4939_s17 }
  0x40   :  { %p4715_p13 = scmp.ne.s32.totalorder %s4939_s17, %s4714_s18  ;;  %p4720_p1 = scmp.lt.s32.totalorder %s4714_s18, %s4714_s18 }
  0x42   :  { %p4721_p2 = por %p4720_p1, %p4719_p0 }
  0x44   :  { %p4722_p3 = pnand %p4721_p2, %p4715_p13 }
  0x46   :  { %4725 = shalt.err (!%p4722_p3)
}
  0x47   :  { %32 = dma.hbm_to_vmem [thread:$0]  %s7382_s0, 2560, %s4939_s17, [#allocation5], %s4854_s24, %s4854_s24, %s4855_s28  }
  0x48   :  { %s4856_s21 = smov [#allocation9]   ;;  %s4857_s23 = smov [#allocation12]  }
  0x49   :  { %s50_s22 = sshll.u32 %s4856_s21, 4  ;;  %s73_s25 = sshll.u32 %s4857_s23, 4  ;;  %s51_s22 = int_to_ptr.vmem [resolvable:$true] %s50_s22  ;;  %s74_s25 = int_to_ptr.vmem [resolvable:$true] %s73_s25 }
  0x4a   :  { %s4726_s3 = scalar_lea.hbm %s7384_s2, 4608 }
  0x4b   :  { %p4727_p4 = scmp.ne.s32.totalorder %s7384_s2, %s4726_s3  ;;  %p4730_p5 = scmp.lt.u32.totalorder %s4726_s3, %s7384_s2 }
  0x4d   :  { %p4732_p6 = pnand %p4730_p5, %p4727_p4 }
  0x4f   :  { %4735 = shalt.err (!%p4732_p6)
}
  0x50   :  { %s4736_s0 = scalar_lea.vmem %s51_s22, 4608  ;;  %p4741_p8 = scmp.lt.s32.totalorder %s51_s22, %s51_s22 }
  0x51   :  { %p4737_p7 = scmp.ne.s32.totalorder %s51_s22, %s4736_s0  ;;  %p4742_p9 = scmp.lt.s32.totalorder %s4736_s0, %s4736_s0 }
  0x53   :  { %p4743_p10 = por %p4742_p9, %p4741_p8 }
  0x55   :  { %p4744_p11 = pnand %p4743_p10, %p4737_p7 }
  0x57   :  { %4747 = shalt.err (!%p4744_p11)
}
  0x58   :  { %56 = dma.hbm_to_vmem [thread:$0]  %s7384_s2, 4608, %s51_s22, [#allocation8], %s4854_s24, %s4854_s24, %s4855_s28  }
  0x59   :  { %s4748_s14 = scalar_lea.hbm %s7386_s4, 16 }
  0x5a   :  { %p4749_p12 = scmp.ne.s32.totalorder %s7386_s4, %s4748_s14  ;;  %p4752_p13 = scmp.lt.u32.totalorder %s4748_s14, %s7386_s4 }
  0x5c   :  { %p4754_p0 = pnand %p4752_p13, %p4749_p12 }
  0x5e   :  { %4757 = shalt.err (!%p4754_p0)
}
  0x5f   :  { %s4758_s21 = scalar_lea.vmem %s74_s25, 16  ;;  %s4762_s23 = scalar_lea.vmem %s74_s25, 32 }
  0x60   :  { %p4759_p1 = scmp.ne.s32.totalorder %s74_s25, %s4758_s21  ;;  %p4763_p2 = scmp.lt.s32.totalorder %s74_s25, %s74_s25 }
  0x61   :  { %p4764_p3 = scmp.lt.s32.totalorder %s4762_s23, %s4758_s21 }
  0x63   :  { %p4765_p4 = por %p4764_p3, %p4763_p2 }
  0x65   :  { %p4766_p5 = pnand %p4765_p4, %p4759_p1 }
  0x67   :  { %4769 = shalt.err (!%p4766_p5)
}
  0x68   :  { %76 = dma.hbm_to_vmem [thread:$0]  %s7386_s4, 16, %s74_s25, [#allocation11]  }
  0x69   :  { %s4858_s22 = smov [#allocation15]   ;;  %s4859_s27 = smov [#allocation16]  }
  0x6a   :  { %s97_s26 = sshll.u32 %s4858_s22, 4  ;;  %s107_s3 = sshll.u32 %s4859_s27, 4  ;;  %s98_s26 = int_to_ptr.vmem [resolvable:$true] %s97_s26  ;;  %s108_s3 = int_to_ptr.vmem [resolvable:$true] %s107_s3 }
  0x6b   :  { %s4770_s11 = scalar_lea.hbm %s7389_s7, 16 }
  0x6c   :  { %p4771_p6 = scmp.ne.s32.totalorder %s7389_s7, %s4770_s11  ;;  %p4774_p7 = scmp.lt.u32.totalorder %s4770_s11, %s7389_s7 }
  0x6e   :  { %p4776_p8 = pnand %p4774_p7, %p4771_p6 }
  0x70   :  { %4779 = shalt.err (!%p4776_p8)
}
  0x71   :  { %s4780_s4 = scalar_lea.vmem %s98_s26, 16  ;;  %s4784_s25 = scalar_lea.vmem %s98_s26, 32 }
  0x72   :  { %p4781_p9 = scmp.ne.s32.totalorder %s98_s26, %s4780_s4  ;;  %p4785_p10 = scmp.lt.s32.totalorder %s98_s26, %s98_s26 }
  0x73   :  { %p4786_p11 = scmp.lt.s32.totalorder %s4784_s25, %s4780_s4 }
  0x75   :  { %p4787_p12 = por %p4786_p11, %p4785_p10 }
  0x77   :  { %p4788_p13 = pnand %p4787_p12, %p4781_p9 }
  0x79   :  { %4791 = shalt.err (!%p4788_p13)
}
  0x7a   :  { %100 = dma.hbm_to_vmem [thread:$0]  %s7389_s7, 16, %s98_s26, [#allocation14]  }
  0x7b   :  { %s4792_s18 = scalar_lea.hbm %s7390_s8, 16 }
  0x7c   :  { %p4793_p0 = scmp.ne.s32.totalorder %s7390_s8, %s4792_s18  ;;  %p4796_p1 = scmp.lt.u32.totalorder %s4792_s18, %s7390_s8 }
  0x7e   :  { %p4798_p2 = pnand %p4796_p1, %p4793_p0 }
  0x80   :  { %4801 = shalt.err (!%p4798_p2)
}
  0x81   :  { %s4802_s2 = scalar_lea.vmem %s108_s3, 16  ;;  %s4806_s28 = scalar_lea.vmem %s108_s3, 32 }
  0x82   :  { %p4803_p3 = scmp.ne.s32.totalorder %s108_s3, %s4802_s2  ;;  %p4807_p4 = scmp.lt.s32.totalorder %s108_s3, %s108_s3 }
  0x83   :  { %p4808_p5 = scmp.lt.s32.totalorder %s4806_s28, %s4802_s2 }
  0x85   :  { %p4809_p6 = por %p4808_p5, %p4807_p4 }
  0x87   :  { %p4810_p7 = pnand %p4809_p6, %p4803_p3 }
  0x89   :  { %4813 = shalt.err (!%p4810_p7)
}
  0x8a   :  { %110 = dma.hbm_to_vmem [thread:$0]  %s7390_s8, 16, %s108_s3, [#allocation17]  }
  0x8b   :  { %4836 = dma.done.wait [#allocation5], 2560  }
  0x8c   :  { %4837 = vsyncadd [#allocation5], 4294964736 }
  0x8d   :  { %4838 = dma.done.wait [#allocation8], 5632  }
  0x8e   :  { %4839 = vsyncadd [#allocation8], 4294961664 }
  0x8f   :  { %4840 = dma.done.wait [#allocation11], 32  }
  0x90   :  { %4841 = vsyncadd [#allocation11], 4294967264 }
  0x91   :  { %4842 = dma.done.wait [#allocation14], 4624  }
  0x92   :  { %4843 = vsyncadd [#allocation14], 4294962672 }
  0x93   :  { %4844 = dma.done.wait [#allocation17], 16  }
  0x94   :  { %4845 = vsyncadd [#allocation17], 4294967280  ;;  %v7413_v0 = vmov 0   ;;  %vm232_vm0 = vcmask 1046528   ;;  %v452_v1 = vld [vmem:[#allocation4 + $0x8] ss:$8 sps:$4 sm:$0xff]  }
  0x95   :  { %860 = vmatprep.subr.bf16.mxu0 %v7413_v0  ;;  %2924 = vmatprep.subr.bf16.mxu1 %v7413_v0  ;;  %v5029_v2 = vld [vmem:[#allocation4 + $0xc] sm:$0x1]  ;;  %v5031_v3 = vld [vmem:[#allocation4 + $0x14] sm:$0x1]  ;;  %v5033_v4 = vunpack.c.l.bf16 %v452_v1  ;;  %v5036_v6 = vunpack.c.h.bf16 %v452_v1  ;;  %v456_v8 = vld [vmem:[#allocation4 + $0x18] ss:$8 sps:$4 sm:$0xff]  }
  0x96   :  { %v7394_v5 = vunpack.c.l.bf16 %v5029_v2  ;;  %v7393_v7 = vunpack.c.l.bf16 %v5031_v3  ;;  %v5039_v9 = vld [vmem:[#allocation4 + $0x1c] sm:$0x1]  ;;  %v5041_v10 = vld [vmem:[#allocation4 + $0x24] sm:$0x1]  ;;  %v5043_v11 = vunpack.c.l.bf16 %v456_v8  ;;  %v5046_v13 = vunpack.c.h.bf16 %v456_v8  ;;  %v460_v15 = vld [vmem:[#allocation4 + $0x28] ss:$8 sps:$4 sm:$0xff]  }
  0x97   :  { %7613 = vst [vmem:[#allocation25_spill] sm:$0xff] %v5033_v4  ;;  %7614 = vst [vmem:[#allocation26_spill] sm:$0xff] %v5036_v6  ;;  %v489_v12 = vunpack.c.l.bf16 %v5039_v9  ;;  %v491_v14 = vunpack.c.l.bf16 %v5041_v10  ;;  %v548_v16 = vrot.slane %v5033_v4, 1  ;;  %v551_v18 = vrot.slane %v5036_v6, 1  ;;  %v5055_v20 = vld [vmem:[#allocation4 + $0x2c] sm:$0x1] }
  0x98   :  { %7615 = vst [vmem:[#allocation27_spill] sm:$0xff] %v5043_v11  ;;  %7616 = vst [vmem:[#allocation28_spill] sm:$0xff] %v5046_v13  ;;  %v549_v17 = vrot.slane %v7394_v5, 1  ;;  %v552_v19 = vrot.slane %v7393_v7, 1  ;;  %v554_v21 = vrot.slane %v5043_v11, 1  ;;  %v557_v23 = vrot.slane %v5046_v13, 1 }
  0x99   :  { %v555_v22 = vrot.slane %v489_v12, 1  ;;  %v558_v24 = vrot.slane %v491_v14, 1  ;;  %v5063_v25 = vld [vmem:[#allocation4 + $0x34] sm:$0x1]  ;;  %v464_v28 = vld [vmem:[#allocation4 + $0x38] ss:$8 sps:$4 sm:$0xff]   ;;  %v5071_v33 = vunpack.c.l.bf16 %v460_v15  ;;  %v493_v35 = vunpack.c.l.bf16 %v5055_v20 }
  0x9a   :  { %v550_v26 = vsel %vm232_vm0, %v548_v16, %v549_v17  ;;  %v553_v27 = vsel %vm232_vm0, %v551_v18, %v552_v19  ;;  %v5067_v29 = vld [vmem:[#allocation4 + $0x3c] sm:$0x1]  ;;  %v5074_v36 = vunpack.c.h.bf16 %v460_v15  ;;  %v495_v37 = vunpack.c.l.bf16 %v5063_v25  ;;  %v5077_v38 = vld [vmem:[#allocation4 + $0x44] sm:$0x1]  ;;  %v468_v43 = vld [vmem:[#allocation4 + $0x58] ss:$8 sps:$4 sm:$0xff]  }
  0x9b   :  { %v4322_v30 = vpack.i.bf16 %v553_v27, %v550_v26  ;;  %v556_v31 = vsel %vm232_vm0, %v554_v21, %v555_v22  ;;  %v559_v32 = vsel %vm232_vm0, %v557_v23, %v558_v24  ;;  %7617 = vst [vmem:[#allocation29_spill] sm:$0xff] %v5071_v33  ;;  %v560_v39 = vrot.slane %v5071_v33, 1  ;;  %v4562_v44 = vld [vmem:[#allocation9 + $0x60] sm:$0xff]   ;;  %v5089_v48 = vld [vmem:[#allocation4 + $0x5c] sm:$0x1]  ;;  %v4563_v53 = vld [vmem:[#allocation9 + $0x68] sm:$0xff]  }
  0x9c   :  { %v4327_v34 = vpack.i.bf16 %v559_v32, %v556_v31  ;;  %7618 = vst [vmem:[#allocation30_spill] sm:$0xff] %v5074_v36  ;;  %v5081_v40 = vunpack.c.l.bf16 %v464_v28  ;;  %v497_v41 = vunpack.c.l.bf16 %v5067_v29  ;;  %v5084_v42 = vunpack.c.h.bf16 %v464_v28  ;;  %v5095_v52 = vld [vmem:[#allocation4 + $0x64] sm:$0x1]  ;;  %861 = vmatpush1.bf16.msra.mxu0 %v4562_v44  ;;  %v472_v57 = vld [vmem:[#allocation4 + $0x68] ss:$8 sps:$4 sm:$0xff]  }
  0x9d   :  { %4323 = vrot.lane.b32.xlu0 %v4322_v30, %s4854_s24  ;;  %v561_v45 = vrot.slane %v493_v35, 1  ;;  %v563_v46 = vrot.slane %v5074_v36, 1  ;;  %v564_v47 = vrot.slane %v495_v37, 1  ;;  %v499_v49 = vunpack.c.l.bf16 %v5077_v38  ;;  %v5100_v58 = vld [vmem:[#allocation4 + $0x6c] sm:$0x1]  ;;  %862 = vmatprep.subr.bf16.mxu0 %v7413_v0  ;;  %v4564_v28 = vld [vmem:[#allocation9 + $0x70] sm:$0xff]  }
  0x9e   :  { %7619 = vst [vmem:[#allocation31_spill] sm:$0xff] %v5081_v40  ;;  %7620 = vst [vmem:[#allocation32_spill] sm:$0xff] %v5084_v42  ;;  %v566_v50 = vrot.slane %v5081_v40, 1  ;;  %v567_v51 = vrot.slane %v497_v41, 1  ;;  %v569_v56 = vrot.slane %v5084_v42, 1  ;;  %v5107_v62 = vunpack.c.l.bf16 %v468_v43  ;;  %v4567_v38 = vld [vmem:[#allocation9 + $0x88] sm:$0xff]  }
  0x9f   :  { %v562_v54 = vsel %vm232_vm0, %v560_v39, %v561_v45  ;;  %v565_v55 = vsel %vm232_vm0, %v563_v46, %v564_v47  ;;  %v570_v61 = vrot.slane %v499_v49, 1  ;;  %v501_v63 = vunpack.c.l.bf16 %v5089_v48  ;;  %v5113_v15 = vld [vmem:[#allocation4 + $0x74] sm:$0x1]  ;;  %v476_v20 = vld [vmem:[#allocation4 + $0x78] ss:$8 sps:$4 sm:$0xff]  }
  0xa0   :  { %v4332_v59 = vpack.i.bf16 %v565_v55, %v562_v54  ;;  %v568_v60 = vsel %vm232_vm0, %v566_v50, %v567_v51  ;;  %7621 = vst [vmem:[#allocation33_spill] sm:$0xff] %v5107_v62  ;;  %v5110_v1 = vunpack.c.h.bf16 %v468_v43  ;;  %v7404_v8 = vunpack.c.l.bf16 %v5095_v52  ;;  %v5122_v21 = vld [vmem:[#allocation4 + $0x7c] sm:$0x1]  ;;  %863 = vmatpush1.bf16.msra.mxu0 %v4563_v53  ;;  %v5128_v27 = vld [vmem:[#allocation4 + $0x84] sm:$0x1] }
  0xa1   :  { %4328 = vrot.lane.b32.xlu0 %v4327_v34, %s4854_s24  ;;  %v571_v16 = vsel %vm232_vm0, %v569_v56, %v570_v61  ;;  %v5117_v17 = vunpack.c.l.bf16 %v472_v57  ;;  %v7401_v18 = vunpack.c.l.bf16 %v5100_v58  ;;  %v5120_v19 = vunpack.c.h.bf16 %v472_v57  ;;  %864 = vmatprep.subr.bf16.mxu0 %v7413_v0  ;;  %v480_v34 = vld [vmem:[#allocation4 + $0x88] ss:$8 sps:$4 sm:$0xff]   ;;  %v5153_v50 = vld [vmem:[#allocation4 + $0x8c] sm:$0x1]  ;;  %v4565_v51 = vld [vmem:[#allocation9 + $0x78] sm:$0xff]  }
  0xa2   :  { %7622 = vst [vmem:[#allocation34_spill] sm:$0xff] %v5110_v1  ;;  %4333 = vrot.lane.b32.xlu1 %v4332_v59, %s4854_s24  ;;  %v4337_v22 = vpack.i.bf16 %v571_v16, %v568_v60  ;;  %v572_v23 = vrot.slane %v5107_v62, 1  ;;  %v573_v24 = vrot.slane %v501_v63, 1  ;;  %v575_v26 = vrot.slane %v5110_v1, 1  ;;  %v5233_v5 = vld [vmem:[#allocation4 + $0x2c] sm:$0x1] }
  0xa3   :  { %7623 = vst [vmem:[#allocation35_spill] sm:$0xff] %v5117_v17  ;;  %7624 = vst [vmem:[#allocation36_spill] sm:$0xff] %v5120_v19  ;;  %v5133_v30 = vrot.slane %v489_v12, 2  ;;  %v576_v31 = vrot.slane %v7404_v8, 1  ;;  %v7400_v32 = vunpack.c.l.bf16 %v5113_v15  ;;  %v578_v43 = vrot.slane %v5117_v17, 1 }
  0xa4   :  { %v574_v39 = vsel %vm232_vm0, %v572_v23, %v573_v24  ;;  %v579_v44 = vrot.slane %v7401_v18, 1  ;;  %v581_v45 = vrot.slane %v5120_v19, 1  ;;  %v5145_v9 = vrot.slane %v491_v14, 2  ;;  %865 = vmatpush1.bf16.msra.mxu0 %v4564_v28  ;;  %v5159_v14 = vld [vmem:[#allocation4 + $0x94] sm:$0x1] }
  0xa5   :  { %v5147_v12 = vrot.slane %v493_v35, 2  ;;  %v577_v46 = vsel %vm232_vm0, %v575_v26, %v576_v31  ;;  %v582_v47 = vrot.slane %v7400_v32, 1  ;;  %v5156_v55 = vunpack.c.l.bf16 %v476_v20  ;;  %v136_v35 = vld [vmem:[#allocation4] ss:$8 sps:$4 sm:$0xff]   ;;  %866 = vmatprep.subr.bf16.mxu0 %v7413_v0  ;;  %v5172_v23 = vld [vmem:[#allocation4 + $0x4] sm:$0x1] }
  0xa6   :  { %4338 = vrot.lane.b32.xlu1 %v4337_v22, %s4854_s24  ;;  %v4342_v53 = vpack.i.bf16 %v577_v46, %v574_v39  ;;  %v580_v54 = vsel %vm232_vm0, %v578_v43, %v579_v44  ;;  %v7399_v10 = vunpack.c.l.bf16 %v5122_v21  ;;  %v5163_v57 = vunpack.c.h.bf16 %v476_v20  ;;  %v5174_v24 = vld [vmem:[#allocation4 + $0xc] sm:$0x1]  ;;  %v140_v39 = vld [vmem:[#allocation4 + $0x10] ss:$8 sps:$4 sm:$0xff]   ;;  %v4566_v43 = vld [vmem:[#allocation9 + $0x80] sm:$0xff]  }
  0xa7   :  { %7625 = vst [vmem:[#allocation37_spill] sm:$0xff] %v5156_v55  ;;  %v583_v56 = vsel %vm232_vm0, %v581_v45, %v582_v47  ;;  %v7398_v59 = vunpack.c.l.bf16 %v5128_v27  ;;  %v5166_v60 = vunpack.c.l.bf16 %v480_v34  ;;  %v584_v16 = vrot.slane %v5156_v55, 1  ;;  %v5190_v46 = vld [vmem:[#allocation4 + $0x14] sm:$0x1] }
  0xa8   :  { %7626 = vst [vmem:[#allocation38_spill] sm:$0xff] %v5163_v57  ;;  %4343 = vrot.lane.b32.xlu0 %v4342_v53, %s4854_s24  ;;  %v4347_v61 = vpack.i.bf16 %v583_v56, %v580_v54  ;;  %v585_v22 = vrot.slane %v7399_v10, 1  ;;  %v5178_v20 = vrot.slane %v495_v37, 2  ;;  %v587_v26 = vrot.slane %v5163_v57, 1  ;;  %867 = vmatpush1.bf16.msra.mxu0 %v4565_v51  ;;  %v5244_v18 = vld [vmem:[#allocation4 + $0x34] sm:$0x1] }
  0xa9   :  { %7627 = vst [vmem:[#allocation39_spill] sm:$0xff] %v5166_v60  ;;  %v588_v28 = vrot.slane %v7398_v59, 1  ;;  %v7396_v31 = vunpack.c.l.bf16 %v5153_v50  ;;  %v5186_v45 = vunpack.c.h.bf16 %v480_v34  ;;  %v7392_v25 = vunpack.c.l.bf16 %v5159_v14  ;;  %868 = vmatprep.subr.bf16.mxu0 %v7413_v0  ;;  %v5267_v8 = vld [vmem:[#allocation4 + $0x54] sm:$0x1] }
  0xaa   :  { %4348 = vrot.lane.b32.xlu1 %v4347_v61, %s4854_s24  ;;  %v586_v44 = vsel %vm232_vm0, %v584_v16, %v585_v22  ;;  %v590_v37 = vrot.slane %v5166_v60, 1  ;;  %v5195_v47 = vrot.slane %v497_v41, 2  ;;  %v5200_v54 = vunpack.c.l.bf16 %v136_v35 }
  0xab   :  { %7628 = vst [vmem:[#allocation40_spill] sm:$0xff] %v5186_v45  ;;  %v589_v51 = vsel %vm232_vm0, %v587_v26, %v588_v28  ;;  %v591_v53 = vrot.slane %v7396_v31, 1  ;;  %v5204_v34 = vrot.slane %v499_v49, 2  ;;  %v593_v61 = vrot.slane %v5186_v45, 1  ;;  %v5214_v28 = vld [vmem:[#allocation4 + $0x1c] sm:$0x1] }
  0xac   :  { %7629 = vst [vmem:[#allocation41_spill] sm:$0xff] %v5200_v54  ;;  %v4352_v56 = vpack.i.bf16 %v589_v51, %v586_v44  ;;  %v594_v16 = vrot.slane %v7392_v25, 1  ;;  %v7395_v41 = vunpack.c.l.bf16 %v5172_v23  ;;  %v5211_v22 = vunpack.c.h.bf16 %v136_v35  ;;  %869 = vmatpush1.bf16.msra.mxu0 %v4566_v43  ;;  %v4571_v45 = vld [vmem:[#allocation9 + $0xa8] sm:$0xff]  }
  0xad   :  { %v592_v29 = vsel %vm232_vm0, %v590_v37, %v591_v53  ;;  %v7397_v26 = vunpack.c.l.bf16 %v5174_v24  ;;  %v233_v44 = vrot.slane %v5200_v54, 1  ;;  %v5219_v51 = vunpack.c.l.bf16 %v140_v39  ;;  %v144_v53 = vld [vmem:[#allocation4 + $0x20] ss:$8 sps:$4 sm:$0xff]   ;;  %870 = vmatprep.subr.bf16.mxu0 %v7413_v0 }
  0xae   :  { %7630 = vst [vmem:[#allocation42_spill] sm:$0xff] %v5211_v22  ;;  %4353 = vrot.lane.b32.xlu0 %v4352_v56, %s4854_s24  ;;  %v595_v49 = vsel %vm232_vm0, %v593_v61, %v594_v16  ;;  %v7403_v37 = vunpack.c.l.bf16 %v5190_v46  ;;  %v234_v25 = vrot.slane %v7395_v41, 1  ;;  %v236_v43 = vrot.slane %v5211_v22, 1  ;;  %v5231_v16 = vld [vmem:[#allocation4 + $0x24] sm:$0x1] }
  0xaf   :  { %7631 = vst [vmem:[#allocation43_spill] sm:$0xff] %v5219_v51  ;;  %v4357_v35 = vpack.i.bf16 %v595_v49, %v592_v29  ;;  %v237_v56 = vrot.slane %v7397_v26, 1  ;;  %v5228_v7 = vunpack.c.h.bf16 %v140_v39  ;;  %v7402_v61 = vunpack.c.l.bf16 %v5214_v28  ;;  %v148_v26 = vld [vmem:[#allocation4 + $0x30] ss:$8 sps:$4 sm:$0xff]  }
  0xb0   :  { %v235_v29 = vsel %vm232_vm0, %v233_v44, %v234_v25  ;;  %v239_v41 = vrot.slane %v5219_v51, 1  ;;  %v240_v31 = vrot.slane %v7403_v37, 1  ;;  %871 = vmatpush1.bf16.msra.mxu0 %v4567_v38  ;;  %v4568_v39 = vld [vmem:[#allocation9 + $0x90] sm:$0xff]   ;;  %v5249_v25 = vrot.slane %v501_v63, 2 }
  0xb1   :  { %7632 = vst [vmem:[#allocation44_spill] sm:$0xff] %v5228_v7  ;;  %4358 = vrot.lane.b32.xlu1 %v4357_v35, %s4854_s24  ;;  %v238_v49 = vsel %vm232_vm0, %v236_v43, %v237_v56  ;;  %v242_v10 = vrot.slane %v5228_v7, 1  ;;  %v243_v32 = vrot.slane %v7402_v61, 1  ;;  %872 = vmatprep.subr.bf16.mxu0 %v7413_v0  ;;  %v5252_v35 = vunpack.c.l.bf16 %v144_v53  ;;  %v4569_v43 = vld [vmem:[#allocation9 + $0x98] sm:$0xff]  }
  0xb2   :  { %v4362_v59 = vpack.i.bf16 %v238_v49, %v235_v29  ;;  %v241_v44 = vsel %vm232_vm0, %v239_v41, %v240_v31  ;;  %v7405_v38 = vunpack.c.l.bf16 %v5231_v16  ;;  %v5257_v29 = vunpack.c.h.bf16 %v144_v53  ;;  %v5260_v61 = vld [vmem:[#allocation4 + $0x3c] sm:$0x1]  ;;  %v152_v63 = vld [vmem:[#allocation4 + $0x50] ss:$8 sps:$4 sm:$0xff]  }
  0xb3   :  { %7633 = vst [vmem:[#allocation45_spill] sm:$0xff] %v5252_v35  ;;  %v244_v56 = vsel %vm232_vm0, %v242_v10, %v243_v32  ;;  %v7412_v49 = vunpack.c.l.bf16 %v5233_v5  ;;  %v5262_v48 = vunpack.c.l.bf16 %v148_v26  ;;  %v245_v31 = vrot.slane %v5252_v35, 1 }
  0xb4   :  { %4363 = vrot.lane.b32.xlu0 %v4362_v59, %s4854_s24  ;;  %7634 = vst [vmem:[#allocation46_spill] sm:$0xff] %v5257_v29  ;;  %v4367_v37 = vpack.i.bf16 %v244_v56, %v241_v44  ;;  %v246_v41 = vrot.slane %v7405_v38, 1  ;;  %873 = vmatpush1.bf16.msra.mxu0 %v4568_v39  ;;  %v5269_v59 = vld [vmem:[#allocation4 + $0x5c] sm:$0x1]  ;;  %v248_v32 = vrot.slane %v5257_v29, 1  ;;  %v7419_v53 = vunpack.c.l.bf16 %v5244_v18 }
  0xb5   :  { %7635 = vst [vmem:[#allocation47_spill] sm:$0xff] %v5262_v48  ;;  %7636 = vst [vmem:[#allocation48_spill] sm:$0xff] %v5269_v59  ;;  %v249_v10 = vrot.slane %v7412_v49, 1  ;;  %874 = vmatprep.subr.bf16.mxu0 %v7413_v0  ;;  %v156_v44 = vld [vmem:[#allocation4 + $0x60] ss:$8 sps:$4 sm:$0xff]   ;;  %v5278_v38 = vunpack.c.h.bf16 %v148_v26  ;;  %v251_v35 = vrot.slane %v5262_v48, 1  ;;  %v7638_v29 = vunpack.c.l.bf16 %v5095_v52 }
  0xb6   :  { %4368 = vrot.lane.b32.xlu1 %v4367_v37, %s4854_s24  ;;  %v247_v56 = vsel %vm232_vm0, %v245_v31, %v246_v41  ;;  %v252_v0 = vrot.slane %v7419_v53, 1  ;;  %v5289_v51 = vunpack.c.l.bf16 %v152_v63  ;;  %v5291_v37 = vld [vmem:[#allocation4 + $0x64] sm:$0x1]  ;;  %v7640_v26 = vunpack.c.l.bf16 %v5100_v58  ;;  %v5306_v58 = vld [vmem:[#allocation4 + $0x6c] sm:$0x1] }
  0xb7   :  { %7637 = vst [vmem:[#allocation49_spill] sm:$0xff] %v5278_v38  ;;  %v5284_v7 = vrot.slane %v7638_v29, 2  ;;  %v250_v49 = vsel %vm232_vm0, %v248_v32, %v249_v10  ;;  %v254_v39 = vrot.slane %v5278_v38, 1  ;;  %v7641_v52 = vunpack.c.l.bf16 %v5260_v61  ;;  %v4570_v48 = vld [vmem:[#allocation9 + $0xa0] sm:$0xff]  }
  0xb8   :  { %7639 = vst [vmem:[#allocation50_spill] sm:$0xff] %v5289_v51  ;;  %v5295_v31 = vrot.slane %v7640_v26, 2  ;;  %v4372_v41 = vpack.i.bf16 %v250_v49, %v247_v56  ;;  %875 = vmatpush1.bf16.msra.mxu0 %v4569_v43  ;;  %v253_v32 = vsel %vm232_vm0, %v251_v35, %v252_v0  ;;  %v7430_v10 = vunpack.c.l.bf16 %v5267_v8  ;;  %v160_v35 = vld [vmem:[#allocation4 + $0x70] ss:$8 sps:$4 sm:$0xff]  }
  0xb9   :  { %v255_v29 = vrot.slane %v7641_v52, 1  ;;  %v5302_v53 = vunpack.c.h.bf16 %v152_v63  ;;  %v7431_v22 = vunpack.c.l.bf16 %v5269_v59  ;;  %v7643_v54 = vmov 0  }
  0xba   :  { %876 = vmatprep.subr.bf16.mxu0 %v7643_v54  ;;  %vm281_vm1 = vcmask 1045504   ;;  %4373 = vrot.lane.b32.xlu0 %v4372_v41, %s4854_s24  ;;  %v257_v43 = vrot.slane %v5289_v51, 1  ;;  %v5311_v56 = vunpack.c.l.bf16 %v156_v44  ;;  %v7435_v0 = vunpack.c.l.bf16 %v5291_v37  ;;  %v5319_v41 = vld [vmem:[#allocation4 + $0x74] sm:$0x1]  ;;  %v5324_v51 = vld [vmem:[#allocation4 + $0x7c] sm:$0x1] }
  0xbb   :  { %7642 = vst [vmem:[#allocation51_spill] sm:$0xff] %v5302_v53  ;;  %v256_v49 = vsel %vm232_vm0, %v254_v39, %v255_v29  ;;  %v258_v26 = vrot.slane %v7430_v10, 1  ;;  %v260_v52 = vrot.slane %v5302_v53, 1  ;;  %v261_v38 = vrot.slane %v7431_v22, 1 }
  0xbc   :  { %7644 = vst [vmem:[#allocation52_spill] sm:$0xff] %v5311_v56  ;;  %v4377_v63 = vpack.i.bf16 %v256_v49, %v253_v32  ;;  %877 = vmatpush1.bf16.msra.mxu0 %v4570_v48  ;;  %v5321_v39 = vunpack.c.h.bf16 %v156_v44  ;;  %v263_v10 = vrot.slane %v5311_v56, 1  ;;  %v264_v22 = vrot.slane %v7435_v0, 1 }
  0xbd   :  { %v259_v32 = vsel %vm232_vm0, %v257_v43, %v258_v26  ;;  %v262_v49 = vsel %vm232_vm0, %v260_v52, %v261_v38  ;;  %878 = vmatprep.subr.bf16.mxu0 %v7643_v54  ;;  %v7646_v48 = vunpack.c.l.bf16 %v5113_v15  ;;  %v7648_v43 = vunpack.c.l.bf16 %v5122_v21  ;;  %v164_v15 = vld [vmem:[#allocation4 + $0x80] ss:$8 sps:$4 sm:$0xff]  }
  0xbe   :  { %7645 = vst [vmem:[#allocation53_spill] sm:$0xff] %v5321_v39  ;;  %4378 = vrot.lane.b32.xlu1 %v4377_v63, %s4854_s24  ;;  %v4382_v29 = vpack.i.bf16 %v262_v49, %v259_v32  ;;  %v266_v53 = vrot.slane %v5321_v39, 1  ;;  %v7647_v63 = vunpack.c.l.bf16 %v5306_v58  ;;  %v265_v26 = vsel %vm232_vm0, %v263_v10, %v264_v22  ;;  %v4572_v49 = vld [vmem:[#allocation9 + $0xb0] sm:$0xff]  }
  0xbf   :  { %v5335_v44 = vrot.slane %v7646_v48, 2  ;;  %v5342_v38 = vrot.slane %v7648_v43, 2  ;;  %v5345_v52 = vunpack.c.l.bf16 %v160_v35  ;;  %vm394_vm2 = vcmask 523264  }
  0xc0   :  { %v267_v59 = vrot.slane %v7647_v63, 1  ;;  %4383 = vrot.lane.b32.xlu0 %v4382_v29, %s4854_s24  ;;  %879 = vmatpush1.bf16.msra.mxu0 %v4571_v45  ;;  %v5350_v48 = vunpack.c.h.bf16 %v160_v35  ;;  %v596_v63 = vrot.slane %v5033_v4, 2  ;;  %v7651_v22 = vunpack.c.l.bf16 %v5128_v27  ;;  %v5362_v45 = vld [vmem:[#allocation4 + $0x84] sm:$0x1]  ;;  %v5373_v4 = vld [vmem:[#allocation4 + $0x8c] sm:$0x1] }
  0xc1   :  { %7649 = vst [vmem:[#allocation54_spill] sm:$0xff] %v5345_v52  ;;  %880 = vmatprep.subr.bf16.mxu0 %v7643_v54  ;;  %v269_v0 = vrot.slane %v5345_v52, 1  ;;  %v7652_v29 = vunpack.c.l.bf16 %v5319_v41  ;;  %v7654_v27 = vunpack.c.l.bf16 %v5324_v51  ;;  %v4573_v52 = vld [vmem:[#allocation9 + $0xb8] sm:$0xff]   ;;  %v599_v39 = vrot.slane %v5036_v6, 2  ;;  %v5391_v6 = vld [vmem:[#allocation4 + $0x14] sm:$0x1] }
  0xc2   :  { %v268_v32 = vsel %vm232_vm0, %v266_v53, %v267_v59  ;;  %7650 = vst [vmem:[#allocation55_spill] sm:$0xff] %v5350_v48  ;;  %v5356_v10 = vrot.slane %v7651_v22, 2  ;;  %v7653_v53 = vunpack.c.l.bf16 %v5153_v50  ;;  %v272_v21 = vrot.slane %v5350_v48, 1 }
  0xc3   :  { %v4387_v43 = vpack.i.bf16 %v268_v32, %v265_v26  ;;  %v270_v59 = vrot.slane %v7652_v29, 1  ;;  %v273_v22 = vrot.slane %v7654_v27, 1  ;;  %v7655_v26 = vunpack.c.l.bf16 %v5029_v2 }
  0xc4   :  { %v5366_v35 = vrot.slane %v7653_v53, 2  ;;  %v7656_v50 = vunpack.c.l.bf16 %v5031_v3  ;;  %v5380_v56 = vunpack.c.l.bf16 %v164_v15  ;;  %881 = vmatpush1.bf16.msra.mxu0 %v4572_v49  ;;  %v5385_v48 = vunpack.c.h.bf16 %v164_v15 }
  0xc5   :  { %v597_v32 = vrot.slane %v7655_v26, 2  ;;  %4388 = vrot.lane.b32.xlu1 %v4387_v43, %s4854_s24  ;;  %v271_v29 = vsel %vm232_vm0, %v269_v0, %v270_v59  ;;  %v274_v27 = vsel %vm232_vm0, %v272_v21, %v273_v22  ;;  %v7447_v26 = vunpack.c.l.bf16 %v5362_v45  ;;  %882 = vmatprep.subr.bf16.mxu0 %v7643_v54 }
  0xc6   :  { %v600_v53 = vrot.slane %v7656_v50, 2  ;;  %7657 = vst [vmem:[#allocation56_spill] sm:$0xff] %v5380_v56  ;;  %7658 = vst [vmem:[#allocation57_spill] sm:$0xff] %v5385_v48  ;;  %v4392_v43 = vpack.i.bf16 %v274_v27, %v271_v29  ;;  %v7446_v59 = vunpack.c.l.bf16 %v5373_v4  ;;  %v275_v3 = vrot.slane %v5380_v56, 1  ;;  %v1151_v50 = vld [vmem:[#allocation4 + $0x10] ss:$8 sps:$4 sm:$0xff]  }
  0xc7   :  { %v598_v2 = vsel %vm281_vm1, %v596_v63, %v597_v32  ;;  %v7659_v49 = vunpack.c.l.bf16 %v5159_v14  ;;  %v276_v15 = vrot.slane %v7447_v26, 1  ;;  %v278_v22 = vrot.slane %v5385_v48, 1  ;;  %v5400_v32 = vld [vmem:[#allocation4 + $0x1c] sm:$0x1] }
  0xc8   :  { %v601_v0 = vsel %vm281_vm1, %v599_v39, %v600_v53  ;;  %v7660_v39 = vunpack.c.l.bf16 %v5172_v23  ;;  %4393 = vrot.lane.b32.xlu0 %v4392_v43, %s4854_s24  ;;  %v279_v53 = vrot.slane %v7446_v59, 1  ;;  %v602_v14 = vrot.slane %v5043_v11, 2  ;;  %883 = vmatpush1.bf16.msra.mxu0 %v4573_v52  ;;  %v5418_v43 = vld [vmem:[#allocation4 + $0x24] sm:$0x1] }
  0xc9   :  { %v5395_v21 = vrot.slane %v7659_v49, 2  ;;  %v725_v63 = vpack.c.bf16 %v601_v0, %v598_v2  ;;  %v605_v27 = vrot.slane %v5046_v13, 2  ;;  %v277_v2 = vsel %vm232_vm0, %v275_v3, %v276_v15  ;;  %1053 = vmatprep.subr.bf16.mxu0 %v7643_v54  ;;  %v5431_v15 = vld [vmem:[#allocation4 + $0x2c] sm:$0x1] }
  0xca   :  { %v5404_v29 = vrot.slane %v7660_v39, 2  ;;  %v5413_v0 = vunpack.c.l.bf16 %v1151_v50  ;;  %v5416_v49 = vunpack.c.h.bf16 %v1151_v50  ;;  %v1155_v39 = vld [vmem:[#allocation4 + $0x20] ss:$8 sps:$4 sm:$0xff]   ;;  %v280_v59 = vsel %vm232_vm0, %v278_v22, %v279_v53 }
  0xcb   :  { %4040 = vmatprep.mubr.msk.bf16.mxu0 %vm394_vm2, %v725_v63  ;;  %v5424_v52 = vsel %vm281_vm1, %v602_v14, %v5133_v30  ;;  %v5428_v3 = vsel %vm281_vm1, %v605_v27, %v5145_v9  ;;  %v4397_v50 = vpack.i.bf16 %v280_v59, %v277_v2  ;;  %v7663_v22 = vunpack.c.l.bf16 %v5391_v6 }
  0xcc   :  { %7661 = vst [vmem:[#allocation58_spill] sm:$0xff] %v5413_v0  ;;  %7662 = vst [vmem:[#allocation59_spill] sm:$0xff] %v5416_v49  ;;  %v1247_v23 = vrot.slane %v5413_v0, 1  ;;  %v7664_v30 = vunpack.c.l.bf16 %v5174_v24  ;;  %v7665_v9 = vunpack.c.l.bf16 %v5190_v46  ;;  %v1250_v63 = vrot.slane %v5416_v49, 1 }
  0xcd   :  { %v1248_v53 = vrot.slane %v7663_v22, 1  ;;  %v7666_v59 = vunpack.c.l.bf16 %v5400_v32  ;;  %4398 = vrot.lane.b32.xlu1 %v4397_v50, %s4854_s24  ;;  %v608_v54 = vrot.slane %v5071_v33, 2  ;;  %v611_v22 = vrot.slane %v5074_v36, 2  ;;  %v5469_v36 = vld [vmem:[#allocation4 + $0x34] sm:$0x1] }
  0xce   :  { %v5440_v14 = vrot.slane %v7664_v30, 2  ;;  %v5444_v27 = vrot.slane %v7665_v9, 2  ;;  %v5453_v24 = vunpack.c.l.bf16 %v1155_v39  ;;  %v7452_v46 = vunpack.c.l.bf16 %v5418_v43  ;;  %v1163_v33 = vld [vmem:[#allocation4 + $0x40] ss:$8 sps:$4 sm:$0xff]  }
  0xcf   :  { %v1251_v2 = vrot.slane %v7666_v59, 1  ;;  %v1249_v26 = vsel %vm232_vm0, %v1247_v23, %v1248_v53  ;;  %v5457_v9 = vunpack.c.h.bf16 %v1155_v39  ;;  %v7455_v13 = vunpack.c.l.bf16 %v5431_v15  ;;  %v1159_v59 = vld [vmem:[#allocation4 + $0x30] ss:$8 sps:$4 sm:$0xff]  }
  0xd0   :  { %v5462_v50 = vsel %vm281_vm1, %v608_v54, %v5147_v12  ;;  %v5466_v23 = vsel %vm281_vm1, %v611_v22, %v5178_v20  ;;  %v1253_v53 = vrot.slane %v5453_v24, 1  ;;  %v614_v20 = vrot.slane %v5081_v40, 2  ;;  %v5498_v40 = vld [vmem:[#allocation4 + $0x44] sm:$0x1] }
  0xd1   :  { %v1252_v30 = vsel %vm232_vm0, %v1250_v63, %v1251_v2  ;;  %7667 = vst [vmem:[#allocation60_spill] sm:$0xff] %v5462_v50  ;;  %v1254_v63 = vrot.slane %v7452_v46, 1  ;;  %v1257_v12 = vrot.slane %v7455_v13, 1  ;;  %v617_v54 = vrot.slane %v5084_v42, 2  ;;  %v5481_v2 = vld [vmem:[#allocation4 + $0x3c] sm:$0x1] }
  0xd2   :  { %v4402_v11 = vpack.i.bf16 %v1252_v30, %v1249_v26  ;;  %v1256_v26 = vrot.slane %v5457_v9, 1  ;;  %v5485_v39 = vunpack.c.l.bf16 %v1159_v59  ;;  %v7458_v46 = vunpack.c.l.bf16 %v5469_v36 }
  0xd3   :  { %v1255_v22 = vsel %vm232_vm0, %v1253_v53, %v1254_v63  ;;  %v5490_v13 = vsel %vm281_vm1, %v614_v20, %v5195_v47  ;;  %v5496_v42 = vunpack.c.h.bf16 %v1159_v59  ;;  %v7462_v63 = vunpack.c.l.bf16 %v5481_v2 }
  0xd4   :  { %4403 = vrot.lane.b32.xlu0 %v4402_v11, %s4854_s24  ;;  %v1258_v30 = vsel %vm232_vm0, %v1256_v26, %v1257_v12  ;;  %7668 = vst [vmem:[#allocation61_spill] sm:$0xff] %v5490_v13  ;;  %v5494_v11 = vsel %vm281_vm1, %v617_v54, %v5204_v34  ;;  %v1259_v26 = vrot.slane %v5485_v39, 1  ;;  %v1260_v12 = vrot.slane %v7458_v46, 1  ;;  %v5525_v13 = vld [vmem:[#allocation4 + $0x64] sm:$0x1] }
  0xd5   :  { %v4407_v50 = vpack.i.bf16 %v1258_v30, %v1255_v22  ;;  %7669 = vst [vmem:[#allocation62_spill] sm:$0xff] %v5494_v11  ;;  %7670 = vst [vmem:[#allocation63_spill] sm:$0xff] %v5496_v42  ;;  %v7671_v47 = vunpack.c.l.bf16 %v5214_v28  ;;  %v1262_v34 = vrot.slane %v5496_v42, 1  ;;  %v620_v59 = vrot.slane %v5107_v62, 2  ;;  %v5514_v22 = vld [vmem:[#allocation4 + $0x4c] sm:$0x1] }
  0xd6   :  { %v623_v54 = vrot.slane %v5110_v1, 2  ;;  %v7672_v30 = vunpack.c.l.bf16 %v5231_v16  ;;  %v1261_v46 = vsel %vm232_vm0, %v1259_v26, %v1260_v12  ;;  %v1263_v28 = vrot.slane %v7462_v63, 1 }
  0xd7   :  { %v5508_v20 = vrot.slane %v7671_v47, 2  ;;  %4408 = vrot.lane.b32.xlu1 %v4407_v50, %s4854_s24  ;;  %v5523_v47 = vunpack.c.l.bf16 %v1163_v33  ;;  %v1167_v50 = vld [vmem:[#allocation4 + $0x60] ss:$8 sps:$4 sm:$0xff]   ;;  %v5529_v62 = vsel %vm281_vm1, %v620_v59, %v5249_v25  ;;  %v7467_v16 = vunpack.c.l.bf16 %v5498_v40  ;;  %v5546_v59 = vld [vmem:[#allocation4 + $0x6c] sm:$0x1] }
  0xd8   :  { %v5518_v53 = vrot.slane %v7672_v30, 2  ;;  %7673 = vst [vmem:[#allocation64_spill] sm:$0xff] %v5529_v62  ;;  %v5533_v1 = vsel %vm281_vm1, %v623_v54, %v5284_v7  ;;  %v5536_v30 = vunpack.c.h.bf16 %v1163_v33  ;;  %v1264_v26 = vsel %vm232_vm0, %v1262_v34, %v1263_v28  ;;  %v1171_v62 = vld [vmem:[#allocation4 + $0x70] ss:$8 sps:$4 sm:$0xff]  }
  0xd9   :  { %7674 = vst [vmem:[#allocation65_spill] sm:$0xff] %v5533_v1  ;;  %v7469_v63 = vunpack.c.l.bf16 %v5514_v22  ;;  %v1265_v11 = vrot.slane %v5523_v47, 1  ;;  %v4412_v42 = vpack.i.bf16 %v1264_v26, %v1261_v46  ;;  %v1266_v25 = vrot.slane %v7467_v16, 1 }
  0xda   :  { %7675 = vst [vmem:[#allocation66_spill] sm:$0xff] %v5536_v30  ;;  %v1268_v7 = vrot.slane %v5536_v30, 1  ;;  %v7676_v33 = vunpack.c.l.bf16 %v5233_v5  ;;  %v626_v28 = vrot.slane %v5117_v17, 2  ;;  %v629_v12 = vrot.slane %v5120_v19, 2  ;;  %v5563_v5 = vld [vmem:[#allocation4 + $0x74] sm:$0x1] }
  0xdb   :  { %v1269_v34 = vrot.slane %v7469_v63, 1  ;;  %4413 = vrot.lane.b32.xlu0 %v4412_v42, %s4854_s24  ;;  %v1267_v46 = vsel %vm232_vm0, %v1265_v11, %v1266_v25  ;;  %v5558_v26 = vunpack.c.l.bf16 %v1167_v50  ;;  %v5561_v1 = vunpack.c.h.bf16 %v1167_v50  ;;  %v5599_v50 = vld [vmem:[#allocation4 + $0x84] sm:$0x1] }
  0xdc   :  { %v5550_v54 = vrot.slane %v7676_v33, 2  ;;  %v5565_v33 = vld [vmem:[#allocation4 + $0x7c] sm:$0x1]  ;;  %v5570_v19 = vsel %vm281_vm1, %v626_v28, %v5295_v31  ;;  %v5574_v42 = vsel %vm281_vm1, %v629_v12, %v5335_v44  ;;  %v7475_v11 = vunpack.c.l.bf16 %v5546_v59 }
  0xdd   :  { %v1270_v63 = vsel %vm232_vm0, %v1268_v7, %v1269_v34  ;;  %7677 = vst [vmem:[#allocation67_spill] sm:$0xff] %v5570_v19  ;;  %7678 = vst [vmem:[#allocation68_spill] sm:$0xff] %v5574_v42  ;;  %v1271_v16 = vrot.slane %v5558_v26, 1  ;;  %v7679_v17 = vunpack.c.l.bf16 %v5525_v13  ;;  %v7680_v7 = vunpack.c.l.bf16 %v5244_v18 }
  0xde   :  { %v4417_v25 = vpack.i.bf16 %v1270_v63, %v1267_v46  ;;  %v7681_v31 = vunpack.c.l.bf16 %v5260_v61  ;;  %v1274_v44 = vrot.slane %v5561_v1, 1  ;;  %v1275_v63 = vrot.slane %v7475_v11, 1 }
  0xdf   :  { %v1272_v30 = vrot.slane %v7679_v17, 1  ;;  %v5584_v34 = vrot.slane %v7680_v7, 2  ;;  %v632_v46 = vrot.slane %v5156_v55, 2  ;;  %v635_v17 = vrot.slane %v5163_v57, 2  ;;  %v1175_v7 = vld [vmem:[#allocation4 + $0x80] ss:$8 sps:$4 sm:$0xff]  }
  0xe0   :  { %v5588_v28 = vrot.slane %v7681_v31, 2  ;;  %4418 = vrot.lane.b32.xlu1 %v4417_v25, %s4854_s24  ;;  %v5597_v18 = vunpack.c.l.bf16 %v1171_v62  ;;  %v1276_v61 = vsel %vm232_vm0, %v1274_v44, %v1275_v63  ;;  %v7479_v31 = vunpack.c.l.bf16 %v5563_v5 }
  0xe1   :  { %v1273_v12 = vsel %vm232_vm0, %v1271_v16, %v1272_v30  ;;  %v5603_v19 = vunpack.c.h.bf16 %v1171_v62  ;;  %v7481_v11 = vunpack.c.l.bf16 %v5565_v33  ;;  %v5608_v16 = vsel %vm281_vm1, %v632_v46, %v5342_v38  ;;  %v7685_v46 = vld [vmem:[#allocation40_spill] sm:$0xff] }
  0xe2   :  { %v4422_v25 = vpack.i.bf16 %v1276_v61, %v1273_v12  ;;  %7683 = vst [vmem:[#allocation70_spill] sm:$0xff] %v5608_v16  ;;  %v5612_v30 = vsel %vm281_vm1, %v635_v17, %v5356_v10  ;;  %v1277_v57 = vrot.slane %v5597_v18, 1  ;;  %v1278_v62 = vrot.slane %v7479_v31, 1  ;;  %v5625_v17 = vld [vmem:[#allocation4 + $0x8c] sm:$0x1] }
  0xe3   :  { %7682 = vst [vmem:[#allocation69_spill] sm:$0xff] %v5603_v19  ;;  %7684 = vst [vmem:[#allocation71_spill] sm:$0xff] %v5612_v30  ;;  %v1280_v63 = vrot.slane %v5603_v19, 1  ;;  %v1281_v12 = vrot.slane %v7481_v11, 1  ;;  %v638_v38 = vrot.slane %v5166_v60, 2  ;;  %v641_v10 = vrot.slane %v7685_v46, 2 }
  0xe4   :  { %4423 = vrot.lane.b32.xlu0 %v4422_v25, %s4854_s24  ;;  %v1179_v61 = vld [vmem:[#allocation4 + $0x90] ss:$8 sps:$4 sm:$0xff]   ;;  %v1279_v55 = vsel %vm232_vm0, %v1277_v57, %v1278_v62  ;;  %v5629_v16 = vunpack.c.l.bf16 %v1175_v7  ;;  %v7490_v31 = vunpack.c.l.bf16 %v5599_v50  ;;  %v5632_v30 = vld [vmem:[#allocation4 + $0x94] sm:$0x1]  ;;  %v5642_v60 = vunpack.c.h.bf16 %v1175_v7  ;;  %v5644_v57 = vld [vmem:[#allocation4 + $0x9c] sm:$0x1] }
  0xe5   :  { %v1282_v44 = vsel %vm232_vm0, %v1280_v63, %v1281_v12  ;;  %v5636_v25 = vsel %vm281_vm1, %v638_v38, %v5366_v35  ;;  %v5640_v46 = vsel %vm281_vm1, %v641_v10, %v5395_v21  ;;  %v7690_v35 = vunpack.c.l.bf16 %v5267_v8  ;;  %v7691_v7 = vld [vmem:[#allocation41_spill] sm:$0xff]  ;;  %v7692_v10 = vld [vmem:[#allocation42_spill] sm:$0xff]  ;;  %v7693_v19 = vld [vmem:[#allocation48_spill] sm:$0xff] }
  0xe6   :  { %7686 = vst [vmem:[#allocation72_spill] sm:$0xff] %v5629_v16  ;;  %v4427_v11 = vpack.i.bf16 %v1282_v44, %v1279_v55  ;;  %7687 = vst [vmem:[#allocation73_spill] sm:$0xff] %v5636_v25  ;;  %v1283_v12 = vrot.slane %v5629_v16, 1  ;;  %v1284_v55 = vrot.slane %v7490_v31, 1  ;;  %v1286_v21 = vrot.slane %v5642_v60, 1 }
  0xe7   :  { %7688 = vst [vmem:[#allocation74_spill] sm:$0xff] %v5640_v46  ;;  %7689 = vst [vmem:[#allocation75_spill] sm:$0xff] %v5642_v60  ;;  %v307_v44 = vrot.slane %v7690_v35, 2  ;;  %v282_v38 = vrot.slane %v7691_v7, 2  ;;  %v285_v42 = vrot.slane %v7692_v10, 2  ;;  %v7694_v62 = vunpack.c.l.bf16 %v7693_v19 }
  0xe8   :  { %4428 = vrot.lane.b32.xlu1 %v4427_v11, %s4854_s24  ;;  %v1285_v63 = vsel %vm232_vm0, %v1283_v12, %v1284_v55  ;;  %v7695_v46 = vunpack.c.l.bf16 %v5625_v17  ;;  %v5663_v31 = vunpack.c.l.bf16 %v1179_v61  ;;  %v7493_v35 = vunpack.c.l.bf16 %v5632_v30 }
  0xe9   :  { %v310_v25 = vrot.slane %v7694_v62, 2  ;;  %v5667_v8 = vsel %vm281_vm1, %v282_v38, %v5404_v29  ;;  %v5671_v11 = vsel %vm281_vm1, %v285_v42, %v5440_v14  ;;  %v5674_v7 = vunpack.c.h.bf16 %v1179_v61 }
  0xea   :  { %v1287_v16 = vrot.slane %v7695_v46, 1  ;;  %7696 = vst [vmem:[#allocation48_spill] sm:$0xff] %v5663_v31  ;;  %7697 = vst [vmem:[#allocation76_spill] sm:$0xff] %v5667_v8  ;;  %v7498_v46 = vunpack.c.l.bf16 %v5644_v57  ;;  %v1289_v12 = vrot.slane %v5663_v31, 1  ;;  %v7700_v29 = vunpack.c.l.bf16 %v5291_v37  ;;  %v7703_v8 = vld [vmem:[#allocation44_spill] sm:$0xff]  ;;  %v7706_v31 = vld [vmem:[#allocation47_spill] sm:$0xff] }
  0xeb   :  { %7698 = vst [vmem:[#allocation77_spill] sm:$0xff] %v5671_v11  ;;  %7699 = vst [vmem:[#allocation78_spill] sm:$0xff] %v5674_v7  ;;  %v1290_v14 = vrot.slane %v7493_v35, 1  ;;  %v1292_v42 = vrot.slane %v5674_v7, 1  ;;  %v7701_v61 = vunpack.c.l.bf16 %v5306_v58  ;;  %v291_v11 = vrot.slane %v7703_v8, 2  ;;  %v7707_v8 = vld [vmem:[#allocation49_spill] sm:$0xff] }
  0xec   :  { %v1288_v19 = vsel %vm232_vm0, %v1286_v21, %v1287_v16  ;;  %v313_v55 = vrot.slane %v7700_v29, 2  ;;  %v1293_v16 = vrot.slane %v7498_v46, 1  ;;  %v7702_v21 = vld [vmem:[#allocation43_spill] sm:$0xff]  ;;  %v7705_v29 = vld [vmem:[#allocation46_spill] sm:$0xff]  ;;  %v300_v7 = vrot.slane %v7706_v31, 2 }
  0xed   :  { %v4432_v38 = vpack.i.bf16 %v1288_v19, %v1285_v63  ;;  %v316_v10 = vrot.slane %v7701_v61, 2  ;;  %v288_v62 = vrot.slane %v7702_v21, 2  ;;  %v1291_v37 = vsel %vm232_vm0, %v1289_v12, %v1290_v14  ;;  %v7704_v63 = vld [vmem:[#allocation45_spill] sm:$0xff] }
  0xee   :  { %v294_v19 = vrot.slane %v7704_v63, 2  ;;  %v297_v35 = vrot.slane %v7705_v29, 2  ;;  %v1294_v58 = vsel %vm232_vm0, %v1292_v42, %v1293_v16  ;;  %v5704_v46 = vsel %vm281_vm1, %v291_v11, %v5508_v20 }
  0xef   :  { %4433 = vrot.lane.b32.xlu0 %v4432_v38, %s4854_s24  ;;  %v5700_v61 = vsel %vm281_vm1, %v288_v62, %v5444_v27  ;;  %v303_v38 = vrot.slane %v7707_v8, 2  ;;  %v4437_v21 = vpack.i.bf16 %v1294_v58, %v1291_v37  ;;  %v5721_v20 = vsel %vm281_vm1, %v300_v7, %v5584_v34  ;;  %v7708_v62 = vld [vmem:[#allocation50_spill] sm:$0xff] }
  0xf0   :  { %v5711_v14 = vsel %vm281_vm1, %v294_v19, %v5518_v53  ;;  %v5715_v42 = vsel %vm281_vm1, %v297_v35, %v5550_v54  ;;  %v306_v16 = vrot.slane %v7708_v62, 2  ;;  %v7709_v53 = vunpack.c.l.bf16 %v5319_v41  ;;  %v7710_v35 = vld [vmem:[#allocation51_spill] sm:$0xff]  ;;  %v7713_v41 = vld [vmem:[#allocation53_spill] sm:$0xff] }
  0xf1   :  { %v5725_v11 = vsel %vm281_vm1, %v303_v38, %v5588_v28  ;;  %4438 = vrot.lane.b32.xlu1 %v4437_v21, %s4854_s24  ;;  %v309_v19 = vrot.slane %v7710_v35, 2  ;;  %v7711_v34 = vunpack.c.l.bf16 %v5324_v51  ;;  %v7712_v38 = vld [vmem:[#allocation52_spill] sm:$0xff]  ;;  %v324_v51 = vrot.slane %v5380_v56, 2 }
  0xf2   :  { %v319_v37 = vrot.slane %v7709_v53, 2  ;;  %v5735_v58 = vsel %vm281_vm1, %v306_v16, %v307_v44  ;;  %v312_v27 = vrot.slane %v7712_v38, 2  ;;  %v315_v53 = vrot.slane %v7713_v41, 2  ;;  %v7714_v44 = vld [vmem:[#allocation54_spill] sm:$0xff] }
  0xf3   :  { %v322_v7 = vrot.slane %v7711_v34, 2  ;;  %v5740_v28 = vsel %vm281_vm1, %v309_v19, %v310_v25  ;;  %v318_v16 = vrot.slane %v7714_v44, 2  ;;  %v7715_v25 = vld [vmem:[#allocation55_spill] sm:$0xff]  ;;  %v327_v44 = vrot.slane %v5385_v48, 2 }
  0xf4   :  { %v5747_v54 = vsel %vm281_vm1, %v312_v27, %v313_v55  ;;  %v5750_v12 = vsel %vm281_vm1, %v315_v53, %v316_v10  ;;  %v321_v19 = vrot.slane %v7715_v25, 2  ;;  %v7716_v27 = vunpack.c.l.bf16 %v5362_v45 }
  0xf5   :  { %v5757_v34 = vsel %vm281_vm1, %v318_v16, %v319_v37  ;;  %v7717_v53 = vunpack.c.l.bf16 %v5373_v4  ;;  %v7718_v16 = vunpack.c.l.bf16 %v5391_v6  ;;  %v1301_v6 = vrot.slane %v5453_v24, 2 }
  0xf6   :  { %v5760_v41 = vsel %vm281_vm1, %v321_v19, %v322_v7  ;;  %v325_v10 = vrot.slane %v7716_v27, 2  ;;  %v7719_v19 = vunpack.c.l.bf16 %v5400_v32  ;;  %v1295_v27 = vrot.slane %v5413_v0, 2  ;;  %v4574_v0 = vld [vmem:[#allocation9] sm:$0xff]  }
  0xf7   :  { %v328_v21 = vrot.slane %v7717_v53, 2  ;;  %v1296_v45 = vrot.slane %v7718_v16, 2  ;;  %v1298_v53 = vrot.slane %v5416_v49, 2  ;;  %v7721_v16 = vld [vmem:[#allocation25_spill] sm:$0xff]  ;;  %vm1880_vm3 = vcmask 516096  }
  0xf8   :  { %v5771_v25 = vsel %vm281_vm1, %v324_v51, %v325_v10  ;;  %v1299_v4 = vrot.slane %v7719_v19, 2  ;;  %v7722_v19 = vld [vmem:[#allocation26_spill] sm:$0xff]  ;;  %vm1897_vm4 = vcmask 517121   ;;  %vm1868_vm5 = vcmask 519168  }
  0xf9   :  { %v5774_v37 = vsel %vm281_vm1, %v327_v44, %v328_v21  ;;  %v5785_v51 = vsel %vm281_vm1, %v1295_v27, %v1296_v45  ;;  %v7723_v45 = vunpack.c.l.bf16 %v5418_v43  ;;  %vm1870_vm6 = vcmask 517120  }
  0xfa   :  { %7720 = vst [vmem:[#allocation45_spill] sm:$0xff] %v5785_v51  ;;  %v5788_v21 = vsel %vm281_vm1, %v1298_v53, %v1299_v4  ;;  %v7724_v4 = vunpack.c.l.bf16 %v5431_v15  ;;  %v1304_v51 = vrot.slane %v5457_v9, 2  ;;  %vm2042_vm7 = vcmask 519169  }
  0xfb   :  { %v1302_v27 = vrot.slane %v7723_v45, 2 }
  0xfc   :  { %v1305_v53 = vrot.slane %v7724_v4, 2  ;;  %v4576_v4 = vld [vmem:[#allocation9 + $0x10] sm:$0xff]  }
 0x10f   :  { %v4324_v55 = vpop.permute.xlu0 %4323 }
 0x110   :  { %v4326_v44 = vunpack.i.h.bf16 %v4324_v55  ;;  %v4325_v10 = vunpack.i.l.bf16 %v4324_v55 }
 0x112   :  { %v708_v32 = vsel %vm394_vm2, %v7721_v16, %v4325_v10  ;;  %v709_v7 = vsel %vm394_vm2, %v7722_v19, %v4326_v44  ;;  %v4575_v10 = vld [vmem:[#allocation9 + $0x8] sm:$0xff]   ;;  %v7725_v44 = vpack.c.bf16 %v5428_v3, %v5424_v52  ;;  %v7727_v16 = vld [vmem:[#allocation28_spill] sm:$0xff] }
 0x113   :  { %v724_v49 = vpack.c.bf16 %v709_v7, %v708_v32  ;;  %v4329_v48 = vpop.permute.xlu0 %4328  ;;  %v7726_v7 = vld [vmem:[#allocation27_spill] sm:$0xff]  ;;  %v7728_v32 = vmov 0   ;;  %v7754_v52 = vld [vmem:[#allocation68_spill] sm:$0xff] }
 0x114   :  { %v4331_v56 = vunpack.i.h.bf16 %v4329_v48  ;;  %v4330_v55 = vunpack.i.l.bf16 %v4329_v48  ;;  %v4334_v48 = vpop.permute.xlu1 %4333  ;;  %1881 = vst.msk [vmem:[#allocation2 + $0x8] sm:$0x1] %vm1880_vm3, %v7728_v32  ;;  %1882 = vst.msk [vmem:[#allocation2 + $0x10] sm:$0x1] %vm1880_vm3, %v7728_v32 }
 0x115   :  { %893 = vmatmul.mubr.bf16.vlgmr.msra.gmra.mrb[0].mxu0 %v724_v49  ;;  %v5812_v49 = vsel %vm281_vm1, %v1301_v6, %v1302_v27  ;;  %v4336_v19 = vunpack.i.h.bf16 %v4334_v48  ;;  %v4335_v45 = vunpack.i.l.bf16 %v4334_v48  ;;  %v7731_v27 = vld [vmem:[#allocation60_spill] sm:$0xff]  ;;  %1883 = vst.msk [vmem:[#allocation2 + $0x18] sm:$0x1] %vm1880_vm3, %v7728_v32  ;;  %1884 = vst.msk [vmem:[#allocation2 + $0x20] sm:$0x1] %vm1880_vm3, %v7728_v32 }
 0x116   :  { %1054 = vmatpush1.bf16.msra.mxu0 %v4574_v0  ;;  %4041 = vmatprep.mubr.msk.bf16.mxu0 %vm394_vm2, %v7725_v44  ;;  %v710_v43 = vsel %vm394_vm2, %v7726_v7, %v4330_v55  ;;  %v711_v15 = vsel %vm394_vm2, %v7727_v16, %v4331_v56  ;;  %v5815_v0 = vsel %vm281_vm1, %v1304_v51, %v1305_v53  ;;  %v7729_v56 = vunpack.c.l.bf16 %v5469_v36  ;;  %v4577_v36 = vld [vmem:[#allocation9 + $0x18] sm:$0xff]  }
 0x117   :  { %1055 = vmatprep.subr.bf16.mxu0 %v7728_v32  ;;  %v726_v3 = vpack.c.bf16 %v711_v15, %v710_v43  ;;  %v7730_v44 = vunpack.c.l.bf16 %v5481_v2  ;;  %v1307_v51 = vrot.slane %v5485_v39, 2  ;;  %v7732_v53 = vpack.c.bf16 %v5466_v23, %v7731_v27  ;;  %v7734_v43 = vld [vmem:[#allocation30_spill] sm:$0xff]  ;;  %v7735_v15 = vld [vmem:[#allocation63_spill] sm:$0xff]  ;;  %1885 = vst.msk [vmem:[#allocation2 + $0x28] sm:$0x1] %vm1880_vm3, %v7728_v32 }
 0x118   :  { %v1308_v55 = vrot.slane %v7729_v56, 2  ;;  %v713_v16 = vsel %vm394_vm2, %v7734_v43, %v4336_v19  ;;  %v1310_v48 = vrot.slane %v7735_v15, 2  ;;  %v4339_v2 = vpop.permute.xlu1 %4338  ;;  %v4578_v19 = vld [vmem:[#allocation9 + $0x20] sm:$0xff]   ;;  %v7736_v27 = vunpack.c.l.bf16 %v5498_v40  ;;  %v7739_v43 = vld [vmem:[#allocation62_spill] sm:$0xff]  ;;  %1886 = vst.msk [vmem:[#allocation2 + $0x30] sm:$0x1] %vm1880_vm3, %v7728_v32 }
 0x119   :  { %v1311_v6 = vrot.slane %v7730_v44, 2  ;;  %v4340_v44 = vunpack.i.l.bf16 %v4339_v2  ;;  %v7743_v56 = vld [vmem:[#allocation32_spill] sm:$0xff]  ;;  %1887 = vst.msk [vmem:[#allocation2 + $0x38] sm:$0x1] %vm1880_vm3, %v7728_v32  ;;  %1888 = vst.msk [vmem:[#allocation2 + $0x40] sm:$0x1] %vm1880_vm3, %v7728_v32 }
 0x11a   :  { %1056 = vmatpush1.bf16.msra.mxu0 %v4575_v10  ;;  %v7733_v10 = vld [vmem:[#allocation29_spill] sm:$0xff]  ;;  %1889 = vst.msk [vmem:[#allocation2 + $0x58] sm:$0x1] %vm1880_vm3, %v7728_v32  ;;  %1890 = vst.msk [vmem:[#allocation2 + $0x60] sm:$0x1] %vm1880_vm3, %v7728_v32 }
 0x11b   :  { %1057 = vmatprep.subr.bf16.mxu0 %v7728_v32  ;;  %v712_v7 = vsel %vm394_vm2, %v7733_v10, %v4335_v45  ;;  %v4341_v45 = vunpack.i.h.bf16 %v4339_v2  ;;  %v7737_v10 = vunpack.c.l.bf16 %v5514_v22  ;;  %v4344_v22 = vpop.permute.xlu0 %4343  ;;  %1891 = vst.msk [vmem:[#allocation2 + $0x68] sm:$0x1] %vm1880_vm3, %v7728_v32  ;;  %1892 = vst.msk [vmem:[#allocation2 + $0x70] sm:$0x1] %vm1880_vm3, %v7728_v32 }
 0x11c   :  { %v728_v23 = vpack.c.bf16 %v713_v16, %v712_v7  ;;  %v7740_v16 = vld [vmem:[#allocation61_spill] sm:$0xff]  ;;  %1893 = vst.msk [vmem:[#allocation2 + $0x78] sm:$0x1] %vm1880_vm3, %v7728_v32  ;;  %1894 = vst.msk [vmem:[#allocation2 + $0x80] sm:$0x1] %vm1880_vm3, %v7728_v32 }
 0x11d   :  { %901 = vmatmul.mubr.bf16.gmra.mrb[4].mxu0 %v726_v3  ;;  %v5836_v3 = vsel %vm281_vm1, %v1307_v51, %v1308_v55  ;;  %v1317_v55 = vrot.slane %v7737_v10, 2  ;;  %v7738_v51 = vld [vmem:[#allocation66_spill] sm:$0xff]  ;;  %v715_v40 = vsel %vm394_vm2, %v7743_v56, %v4341_v45  ;;  %v7744_v56 = vunpack.c.l.bf16 %v5525_v13  ;;  %v7747_v10 = vld [vmem:[#allocation64_spill] sm:$0xff]  ;;  %1895 = vst.msk [vmem:[#allocation2 + $0x88] sm:$0x1] %vm1880_vm3, %v7728_v32 }
 0x11e   :  { %1058 = vmatpush1.bf16.msra.mxu0 %v4576_v4  ;;  %4042 = vmatprep.mubr.msk.bf16.mxu0 %vm394_vm2, %v7732_v53  ;;  %v5839_v4 = vsel %vm281_vm1, %v1310_v48, %v1311_v6  ;;  %v1314_v53 = vrot.slane %v7736_v27, 2  ;;  %v1313_v6 = vrot.slane %v5523_v47, 2  ;;  %v1316_v7 = vrot.slane %v7738_v51, 2  ;;  %v7742_v48 = vld [vmem:[#allocation31_spill] sm:$0xff]  ;;  %v4579_v27 = vld [vmem:[#allocation9 + $0x28] sm:$0xff]  }
 0x11f   :  { %1059 = vmatprep.subr.bf16.mxu0 %v7728_v32  ;;  %v714_v2 = vsel %vm394_vm2, %v7742_v48, %v4340_v44  ;;  %v4580_v44 = vld [vmem:[#allocation9 + $0x30] sm:$0xff]   ;;  %v1320_v45 = vrot.slane %v7744_v56, 2  ;;  %v7745_v48 = vunpack.c.l.bf16 %v5546_v59  ;;  %v4581_v56 = vld [vmem:[#allocation9 + $0x38] sm:$0xff]   ;;  %v4349_v59 = vpop.permute.xlu1 %4348  ;;  %1896 = vst.msk [vmem:[#allocation2 + $0x90] sm:$0x1] %vm1880_vm3, %v7728_v32 }
 0x120   :  { %1900 = vst.msk [vmem:[#allocation2 + $0x1c] sm:$0x2] %vm1897_vm4, %v7728_v32  ;;  %1901 = vst.msk [vmem:[#allocation2 + $0x24] sm:$0x2] %vm1897_vm4, %v7728_v32 }
 0x121   :  { %1898 = vst.msk [vmem:[#allocation2 + $0xc] sm:$0x2] %vm1897_vm4, %v7728_v32  ;;  %1899 = vst.msk [vmem:[#allocation2 + $0x14] sm:$0x2] %vm1897_vm4, %v7728_v32 }
 0x122   :  { %1060 = vmatpush1.bf16.msra.mxu0 %v4577_v36  ;;  %v7741_v36 = vpack.c.bf16 %v7739_v43, %v7740_v16  ;;  %v730_v43 = vpack.c.bf16 %v715_v40, %v714_v2  ;;  %v4346_v16 = vunpack.i.h.bf16 %v4344_v22  ;;  %v7749_v40 = vld [vmem:[#allocation33_spill] sm:$0xff]  ;;  %1902 = vst.msk [vmem:[#allocation2 + $0x2c] sm:$0x2] %vm1897_vm4, %v7728_v32  ;;  %1903 = vst.msk [vmem:[#allocation2 + $0x34] sm:$0x2] %vm1897_vm4, %v7728_v32 }
 0x123   :  { %1061 = vmatprep.subr.bf16.mxu0 %v7728_v32  ;;  %1904 = vst.msk [vmem:[#allocation2 + $0x3c] sm:$0x2] %vm1897_vm4, %v7728_v32  ;;  %1905 = vst.msk [vmem:[#allocation2 + $0x44] sm:$0x2] %vm1897_vm4, %v7728_v32 }
 0x124   :  { %1906 = vst.msk [vmem:[#allocation2 + $0x5c] sm:$0x2] %vm1897_vm4, %v7728_v32  ;;  %1907 = vst.msk [vmem:[#allocation2 + $0x64] sm:$0x2] %vm1897_vm4, %v7728_v32 }
 0x125   :  { %909 = vmatmul.mubr.bf16.gmra.mrb[8].mxu0 %v728_v23  ;;  %v5860_v23 = vsel %vm281_vm1, %v1313_v6, %v1314_v53  ;;  %v1323_v53 = vrot.slane %v7745_v48, 2  ;;  %v1322_v6 = vrot.slane %v5561_v1, 2  ;;  %1908 = vst.msk [vmem:[#allocation2 + $0x6c] sm:$0x2] %vm1897_vm4, %v7728_v32  ;;  %1909 = vst.msk [vmem:[#allocation2 + $0x74] sm:$0x2] %vm1897_vm4, %v7728_v32 }
 0x126   :  { %1062 = vmatpush1.bf16.msra.mxu0 %v4578_v19  ;;  %4043 = vmatprep.mubr.msk.bf16.mxu0 %vm394_vm2, %v7741_v36  ;;  %v5863_v19 = vsel %vm281_vm1, %v1316_v7, %v1317_v55  ;;  %v4345_v36 = vunpack.i.l.bf16 %v4344_v22  ;;  %v1319_v55 = vrot.slane %v5558_v26, 2  ;;  %v7746_v7 = vld [vmem:[#allocation65_spill] sm:$0xff]  ;;  %v7750_v22 = vld [vmem:[#allocation34_spill] sm:$0xff]  ;;  %1910 = vst.msk [vmem:[#allocation2 + $0x7c] sm:$0x2] %vm1897_vm4, %v7728_v32 }
 0x127   :  { %1063 = vmatprep.subr.bf16.mxu0 %v7728_v32  ;;  %v7748_v2 = vpack.c.bf16 %v7746_v7, %v7747_v10  ;;  %v717_v13 = vsel %vm394_vm2, %v7750_v22, %v4346_v16  ;;  %v5887_v48 = vsel %vm281_vm1, %v1322_v6, %v1323_v53  ;;  %v7751_v16 = vunpack.c.l.bf16 %v5563_v5  ;;  %v7755_v10 = vld [vmem:[#allocation67_spill] sm:$0xff]  ;;  %1911 = vst.msk [vmem:[#allocation2 + $0x84] sm:$0x2] %vm1897_vm4, %v7728_v32 }
 0x128   :  { %v7752_v22 = vunpack.c.l.bf16 %v5565_v33  ;;  %v1325_v53 = vrot.slane %v5597_v18, 2  ;;  %v4354_v33 = vpop.permute.xlu0 %4353  ;;  %1912 = vst.msk [vmem:[#allocation2 + $0x8c] sm:$0x2] %vm1897_vm4, %v7728_v32  ;;  %1913 = vst.msk [vmem:[#allocation2 + $0x94] sm:$0x2] %vm1897_vm4, %v7728_v32 }
 0x129   :  { %1869 = vst.msk [vmem:[#allocation2] sm:$0xf] %vm1868_vm5, %v7728_v32  ;;  %1872 = vst.msk [vmem:[#allocation2 + $0x50] sm:$0xf] %vm1868_vm5, %v7728_v32 }
 0x12a   :  { %1064 = vmatpush1.bf16.msra.mxu0 %v4579_v27  ;;  %v716_v27 = vsel %vm394_vm2, %v7749_v40, %v4345_v36  ;;  %v4350_v36 = vunpack.i.l.bf16 %v4349_v59  ;;  %v4582_v40 = vld [vmem:[#allocation9 + $0x40] sm:$0xff]   ;;  %1871 = vst.msk [vmem:[#allocation2 + $0x4] sm:$0x3] %vm1870_vm6, %v7728_v32  ;;  %1873 = vst.msk [vmem:[#allocation2 + $0x54] sm:$0x3] %vm1870_vm6, %v7728_v32 }
 0x12b   :  { %1065 = vmatprep.subr.bf16.mxu0 %v7728_v32  ;;  %v732_v7 = vpack.c.bf16 %v717_v13, %v716_v27  ;;  %v7756_v27 = vpack.c.bf16 %v7754_v52, %v7755_v10  ;;  %v7757_v13 = vld [vmem:[#allocation35_spill] sm:$0xff]  ;;  %v7763_v52 = vld [vmem:[#allocation70_spill] sm:$0xff]  ;;  %1875 = vst.msk [vmem:[#allocation2 + $0x48] sm:$0xf] %vm1868_vm5, %v7728_v32  ;;  %1877 = vst.msk [vmem:[#allocation2 + $0x98] sm:$0xf] %vm1868_vm5, %v7728_v32 }
 0x12c   :  { %1876 = vst.msk [vmem:[#allocation2 + $0x4c] sm:$0x3] %vm1870_vm6, %v7728_v32  ;;  %1878 = vst.msk [vmem:[#allocation2 + $0x9c] sm:$0x3] %vm1870_vm6, %v7728_v32  ;;  %vm2283_vm6 = vcmask 1044480  }
 0x12d   :  { %917 = vmatmul.mubr.bf16.gmra.mrb[12].mxu0 %v730_v43  ;;  %v5884_v43 = vsel %vm281_vm1, %v1319_v55, %v1320_v45  ;;  %v1329_v45 = vrot.slane %v7752_v22, 2  ;;  %v7753_v55 = vld [vmem:[#allocation69_spill] sm:$0xff] }
 0x12e   :  { %4044 = vmatprep.mubr.msk.bf16.mxu0 %vm394_vm2, %v7748_v2  ;;  %1066 = vmatpush1.bf16.msra.mxu0 %v4580_v44  ;;  %v4351_v2 = vunpack.i.h.bf16 %v4349_v59  ;;  %v1326_v44 = vrot.slane %v7751_v16, 2  ;;  %v1328_v6 = vrot.slane %v7753_v55, 2  ;;  %v7758_v59 = vld [vmem:[#allocation36_spill] sm:$0xff]  ;;  %v4583_v16 = vld [vmem:[#allocation9 + $0x48] sm:$0xff]   ;;  %v7762_v55 = vld [vmem:[#allocation71_spill] sm:$0xff] }
 0x12f   :  { %1067 = vmatprep.subr.bf16.mxu0 %v7728_v32 }
 0x130   :  { %v719_v5 = vsel %vm394_vm2, %v7758_v59, %v4351_v2  ;;  %v5911_v22 = vsel %vm281_vm1, %v1328_v6, %v1329_v45  ;;  %v7759_v2 = vunpack.c.l.bf16 %v5599_v50  ;;  %v7760_v59 = vunpack.c.l.bf16 %v5625_v17  ;;  %v4359_v17 = vpop.permute.xlu1 %4358 }
 0x131   :  { %v1334_v6 = vrot.slane %v5642_v60, 2  ;;  %v7771_v60 = vld [vmem:[#allocation74_spill] sm:$0xff] }
 0x132   :  { %1068 = vmatpush1.bf16.msra.mxu0 %v4581_v56  ;;  %v718_v56 = vsel %vm394_vm2, %v7757_v13, %v4350_v36  ;;  %v4355_v36 = vunpack.i.l.bf16 %v4354_v33  ;;  %v4584_v13 = vld [vmem:[#allocation9 + $0x50] sm:$0xff]  }
 0x133   :  { %1069 = vmatprep.subr.bf16.mxu0 %v7728_v32  ;;  %v734_v10 = vpack.c.bf16 %v719_v5, %v718_v56  ;;  %v7764_v56 = vpack.c.bf16 %v7762_v55, %v7763_v52  ;;  %v7765_v5 = vld [vmem:[#allocation37_spill] sm:$0xff] }
 0x135   :  { %925 = vmatmul.mubr.bf16.gmra.mrb[16].mxu0 %v732_v7  ;;  %v5908_v7 = vsel %vm281_vm1, %v1325_v53, %v1326_v44  ;;  %v1335_v44 = vrot.slane %v7760_v59, 2  ;;  %v7761_v53 = vld [vmem:[#allocation72_spill] sm:$0xff] }
 0x136   :  { %4045 = vmatprep.mubr.msk.bf16.mxu0 %vm394_vm2, %v7756_v27  ;;  %1070 = vmatpush1.bf16.msra.mxu0 %v4582_v40  ;;  %v4356_v27 = vunpack.i.h.bf16 %v4354_v33  ;;  %v1332_v40 = vrot.slane %v7759_v2, 2  ;;  %v1331_v45 = vrot.slane %v7761_v53, 2  ;;  %v7766_v33 = vld [vmem:[#allocation38_spill] sm:$0xff]  ;;  %v4585_v2 = vld [vmem:[#allocation9 + $0x58] sm:$0xff]   ;;  %v7772_v53 = vld [vmem:[#allocation73_spill] sm:$0xff] }
 0x137   :  { %1071 = vmatprep.subr.bf16.mxu0 %v7728_v32  ;;  %v5935_v59 = vsel %vm281_vm1, %v1334_v6, %v1335_v44  ;;  %v7770_v44 = vld [vmem:[#allocation78_spill] sm:$0xff]  ;;  %v7773_v55 = vpack.c.bf16 %v7771_v60, %v7772_v53 }
 0x138   :  { %v721_v50 = vsel %vm394_vm2, %v7766_v33, %v4356_v27  ;;  %v7767_v27 = vunpack.c.l.bf16 %v5632_v30  ;;  %v1340_v6 = vrot.slane %v7770_v44, 2  ;;  %v7779_v44 = vld [vmem:[#allocation76_spill] sm:$0xff] }
 0x13a   :  { %1072 = vmatpush1.bf16.msra.mxu0 %v4583_v16  ;;  %v720_v16 = vsel %vm394_vm2, %v7765_v5, %v4355_v36  ;;  %v4360_v36 = vunpack.i.l.bf16 %v4359_v17  ;;  %v7768_v5 = vunpack.c.l.bf16 %v5644_v57 }
 0x13b   :  { %1073 = vmatprep.subr.bf16.mxu0 %v7728_v32  ;;  %v736_v52 = vpack.c.bf16 %v721_v50, %v720_v16  ;;  %v7774_v16 = vld [vmem:[#allocation39_spill] sm:$0xff] }
 0x13c   :  { %v1341_v33 = vrot.slane %v7768_v5, 2  ;;  %v722_v50 = vsel %vm394_vm2, %v7774_v16, %v4360_v36  ;;  %v7777_v16 = vld [vmem:[#allocation41_spill] sm:$0xff] }
 0x13d   :  { %933 = vmatmul.mubr.bf16.gmra.mrb[20].mxu0 %v734_v10  ;;  %v5932_v10 = vsel %vm281_vm1, %v1331_v45, %v1332_v40  ;;  %v7769_v40 = vld [vmem:[#allocation48_spill] sm:$0xff] }
 0x13e   :  { %4046 = vmatprep.mubr.msk.bf16.mxu0 %vm394_vm2, %v7764_v56  ;;  %1074 = vmatpush1.bf16.msra.mxu0 %v4584_v13  ;;  %v4361_v56 = vunpack.i.h.bf16 %v4359_v17  ;;  %v1338_v13 = vrot.slane %v7767_v27, 2  ;;  %v1337_v45 = vrot.slane %v7769_v40, 2  ;;  %v4364_v17 = vpop.permute.xlu0 %4363 }
 0x13f   :  { %1075 = vmatprep.subr.bf16.mxu0 %v7728_v32  ;;  %v4366_v60 = vunpack.i.h.bf16 %v4364_v17  ;;  %v4365_v53 = vunpack.i.l.bf16 %v4364_v17  ;;  %v7782_v17 = vld [vmem:[#allocation43_spill] sm:$0xff] }
 0x140   :  { %v5955_v57 = vsel %vm281_vm1, %v1337_v45, %v1338_v13 }
 0x142   :  { %1076 = vmatpush1.bf16.msra.mxu0 %v4585_v2  ;;  %v7775_v2 = vld [vmem:[#allocation40_spill] sm:$0xff] }
 0x143   :  { %1559 = vmatprep.subr.bf16.mxu0 %v7728_v32  ;;  %v723_v30 = vsel %vm394_vm2, %v7775_v2, %v4361_v56  ;;  %v395_v56 = vsel %vm394_vm2, %v7777_v16, %v4365_v53  ;;  %v7778_v2 = vld [vmem:[#allocation77_spill] sm:$0xff]  ;;  %v4374_v53 = vpop.permute.xlu0 %4373 }
 0x144   :  { %v738_v5 = vpack.c.bf16 %v723_v30, %v722_v50  ;;  %v7780_v13 = vpack.c.bf16 %v7778_v2, %v7779_v44  ;;  %v4587_v50 = vld [vmem:[#allocation9 + $0xc8] sm:$0xff]   ;;  %v7781_v30 = vpack.c.bf16 %v5704_v46, %v5700_v61  ;;  %v4375_v16 = vunpack.i.l.bf16 %v4374_v53 }
 0x145   :  { %941 = vmatmul.mubr.bf16.gmra.mrb[24].mxu0 %v736_v52  ;;  %v5958_v52 = vsel %vm281_vm1, %v1340_v6, %v1341_v33  ;;  %v4369_v33 = vpop.permute.xlu1 %4368  ;;  %v4586_v6 = vld [vmem:[#allocation9 + $0xc0] sm:$0xff]   ;;  %v7784_v46 = vpack.c.bf16 %v5715_v42, %v5711_v14  ;;  %v7785_v14 = vpack.c.bf16 %v5725_v11, %v5721_v20  ;;  %v4591_v42 = vld [vmem:[#allocation9 + $0xe8] sm:$0xff]   ;;  %v7786_v20 = vpack.c.bf16 %v5740_v28, %v5735_v58  ;;  %v4593_v11 = vld [vmem:[#allocation9 + $0xf8] sm:$0xff]  }
 0x146   :  { %4047 = vmatprep.mubr.msk.bf16.mxu0 %vm394_vm2, %v7773_v55  ;;  %v7776_v55 = vld [vmem:[#allocation42_spill] sm:$0xff]  ;;  %v4371_v40 = vunpack.i.h.bf16 %v4369_v33  ;;  %v4370_v27 = vunpack.i.l.bf16 %v4369_v33  ;;  %v399_v61 = vsel %vm394_vm2, %v7704_v63, %v4375_v16  ;;  %v4594_v16 = vld [vmem:[#allocation9 + $0x100] sm:$0xff]   ;;  %v7787_v58 = vpack.c.bf16 %v5750_v12, %v5747_v54 }
 0x147   :  { %v396_v36 = vsel %vm394_vm2, %v7776_v55, %v4366_v60  ;;  %v7783_v60 = vld [vmem:[#allocation44_spill] sm:$0xff]  ;;  %v7789_v12 = vpack.c.bf16 %v5760_v41, %v5757_v34  ;;  %v7790_v54 = vld [vmem:[#allocation54_spill] sm:$0xff]  ;;  %v7792_v41 = vpack.c.bf16 %v5774_v37, %v5771_v25  ;;  %v7797_v25 = vld [vmem:[#allocation45_spill] sm:$0xff] }
 0x148   :  { %v411_v45 = vpack.c.bf16 %v396_v36, %v395_v56  ;;  %v398_v44 = vsel %vm394_vm2, %v7783_v60, %v4371_v40  ;;  %v4376_v36 = vunpack.i.h.bf16 %v4374_v53  ;;  %v4588_v56 = vld [vmem:[#allocation9 + $0xd0] sm:$0xff]   ;;  %v7793_v34 = vld [vmem:[#allocation56_spill] sm:$0xff]  ;;  %v7798_v37 = vpack.c.bf16 %v5788_v21, %v7797_v25 }
 0x149   :  { %v4379_v2 = vpop.permute.xlu1 %4378  ;;  %v4592_v60 = vld [vmem:[#allocation9 + $0xf0] sm:$0xff]  }
 0x14a   :  { %v400_v40 = vsel %vm394_vm2, %v7705_v29, %v4376_v36  ;;  %v4381_v33 = vunpack.i.h.bf16 %v4379_v2 }
 0x14c   :  { %v402_v29 = vsel %vm394_vm2, %v7707_v8, %v4381_v33 }
 0x14d   :  { %949 = vmatmul.mubr.bf16.gmra.mrb[28].mxu0 %v738_v5  ;;  %v397_v5 = vsel %vm394_vm2, %v7782_v17, %v4370_v27  ;;  %v4589_v27 = vld [vmem:[#allocation9 + $0xd8] sm:$0xff]  }
 0x14e   :  { %4060 = vmatprep.mubr.msk.bf16.mxu0 %vm394_vm2, %v7780_v13  ;;  %v413_v55 = vpack.c.bf16 %v398_v44, %v397_v5  ;;  %v415_v13 = vpack.c.bf16 %v400_v40, %v399_v61  ;;  %v4389_v44 = vpop.permute.xlu1 %4388 }
 0x14f   :  { %v4390_v36 = vunpack.i.l.bf16 %v4389_v44 }
 0x155   :  { %1086 = vmatmul.mubr.bf16.vlgmr.msra.gmra.mrb[0].mxu0 %v411_v45  ;;  %v4380_v45 = vunpack.i.l.bf16 %v4379_v2  ;;  %v4596_v2 = vld [vmem:[#allocation9 + $0x110] sm:$0xff]  }
 0x156   :  { %1560 = vmatpush1.bf16.msra.mxu0 %v4586_v6  ;;  %4061 = vmatprep.mubr.msk.bf16.mxu0 %vm394_vm2, %v7781_v30  ;;  %v4590_v6 = vld [vmem:[#allocation9 + $0xe0] sm:$0xff]  }
 0x157   :  { %1561 = vmatprep.subr.bf16.mxu0 %v7728_v32  ;;  %v401_v63 = vsel %vm394_vm2, %v7706_v31, %v4380_v45  ;;  %v4597_v45 = vld [vmem:[#allocation9 + $0x118] sm:$0xff]  }
 0x158   :  { %v417_v30 = vpack.c.bf16 %v402_v29, %v401_v63 }
 0x15a   :  { %1562 = vmatpush1.bf16.msra.mxu0 %v4587_v50  ;;  %v4384_v50 = vpop.permute.xlu0 %4383 }
 0x15b   :  { %1563 = vmatprep.subr.bf16.mxu0 %v7728_v32  ;;  %v4386_v17 = vunpack.i.h.bf16 %v4384_v50  ;;  %v4385_v5 = vunpack.i.l.bf16 %v4384_v50  ;;  %v7794_v50 = vld [vmem:[#allocation57_spill] sm:$0xff] }
 0x15d   :  { %1094 = vmatmul.mubr.bf16.gmra.mrb[4].mxu0 %v413_v55  ;;  %v403_v31 = vsel %vm394_vm2, %v7708_v62, %v4385_v5  ;;  %v404_v8 = vsel %vm394_vm2, %v7710_v35, %v4386_v17  ;;  %v4391_v55 = vunpack.i.h.bf16 %v4389_v44  ;;  %v405_v62 = vsel %vm394_vm2, %v7712_v38, %v4390_v36  ;;  %v7788_v35 = vld [vmem:[#allocation53_spill] sm:$0xff] }
 0x15e   :  { %1564 = vmatpush1.bf16.msra.mxu0 %v4588_v56  ;;  %4062 = vmatprep.mubr.msk.bf16.mxu0 %vm394_vm2, %v7784_v46  ;;  %v419_v53 = vpack.c.bf16 %v404_v8, %v403_v31  ;;  %v4595_v56 = vld [vmem:[#allocation9 + $0x108] sm:$0xff]   ;;  %v4394_v46 = vpop.permute.xlu0 %4393  ;;  %v7795_v31 = vld [vmem:[#allocation59_spill] sm:$0xff] }
 0x15f   :  { %1565 = vmatprep.subr.bf16.mxu0 %v7728_v32  ;;  %v406_v28 = vsel %vm394_vm2, %v7788_v35, %v4391_v55  ;;  %v4396_v40 = vunpack.i.h.bf16 %v4394_v46 }
 0x160   :  { %v421_v61 = vpack.c.bf16 %v406_v28, %v405_v62 }
 0x162   :  { %1566 = vmatpush1.bf16.msra.mxu0 %v4589_v27  ;;  %v4395_v27 = vunpack.i.l.bf16 %v4394_v46  ;;  %v4404_v17 = vpop.permute.xlu0 %4403 }
 0x163   :  { %1567 = vmatprep.subr.bf16.mxu0 %v7728_v32 }
 0x164   :  { %v407_v38 = vsel %vm394_vm2, %v7790_v54, %v4395_v27 }
 0x165   :  { %1102 = vmatmul.mubr.bf16.gmra.mrb[8].mxu0 %v415_v13  ;;  %v7791_v13 = vld [vmem:[#allocation55_spill] sm:$0xff] }
 0x166   :  { %1568 = vmatpush1.bf16.msra.mxu0 %v4590_v6  ;;  %4063 = vmatprep.mubr.msk.bf16.mxu0 %vm394_vm2, %v7785_v14  ;;  %v408_v33 = vsel %vm394_vm2, %v7791_v13, %v4396_v40  ;;  %v4399_v6 = vpop.permute.xlu1 %4398  ;;  %v4414_v28 = vpop.permute.xlu0 %4413 }
 0x167   :  { %1569 = vmatprep.subr.bf16.mxu0 %v7728_v32  ;;  %v423_v14 = vpack.c.bf16 %v408_v33, %v407_v38  ;;  %v4401_v63 = vunpack.i.h.bf16 %v4399_v6  ;;  %v4400_v29 = vunpack.i.l.bf16 %v4399_v6  ;;  %v4415_v46 = vunpack.i.l.bf16 %v4414_v28 }
 0x168   :  { %v7802_v38 = vpack.c.bf16 %v5887_v48, %v5884_v43  ;;  %v7804_v48 = vld [vmem:[#allocation69_spill] sm:$0xff] }
 0x16a   :  { %1570 = vmatpush1.bf16.msra.mxu0 %v4591_v42  ;;  %v409_v42 = vsel %vm394_vm2, %v7793_v34, %v4400_v29  ;;  %v7805_v29 = vpack.c.bf16 %v5935_v59, %v5932_v10  ;;  %v7810_v59 = vld [vmem:[#allocation78_spill] sm:$0xff] }
 0x16b   :  { %1571 = vmatprep.subr.bf16.mxu0 %v7728_v32 }
 0x16d   :  { %1110 = vmatmul.mubr.bf16.gmra.mrb[12].mxu0 %v417_v30  ;;  %v410_v30 = vsel %vm394_vm2, %v7794_v50, %v4401_v63 }
 0x16e   :  { %4064 = vmatprep.mubr.msk.bf16.mxu0 %vm394_vm2, %v7786_v20  ;;  %1572 = vmatpush1.bf16.msra.mxu0 %v4592_v60  ;;  %v425_v5 = vpack.c.bf16 %v410_v30, %v409_v42  ;;  %v4406_v60 = vunpack.i.h.bf16 %v4404_v17  ;;  %v4405_v20 = vunpack.i.l.bf16 %v4404_v17  ;;  %v7808_v17 = vpack.c.bf16 %v5958_v52, %v5955_v57 }
 0x16f   :  { %1573 = vmatprep.subr.bf16.mxu0 %v7728_v32 }
 0x170   :  { %v1408_v8 = vsel %vm394_vm2, %v7795_v31, %v4406_v60 }
 0x172   :  { %1574 = vmatpush1.bf16.msra.mxu0 %v4593_v11  ;;  %v7796_v11 = vld [vmem:[#allocation58_spill] sm:$0xff] }
 0x173   :  { %1575 = vmatprep.subr.bf16.mxu0 %v7728_v32  ;;  %v1407_v44 = vsel %vm394_vm2, %v7796_v11, %v4405_v20 }
 0x174   :  { %v1423_v55 = vpack.c.bf16 %v1408_v8, %v1407_v44 }
 0x175   :  { %1118 = vmatmul.mubr.bf16.gmra.mrb[16].mxu0 %v419_v53  ;;  %v4409_v53 = vpop.permute.xlu1 %4408 }
 0x176   :  { %4065 = vmatprep.mubr.msk.bf16.mxu0 %vm394_vm2, %v7787_v58  ;;  %1576 = vmatpush1.bf16.msra.mxu0 %v4594_v16  ;;  %v4411_v36 = vunpack.i.h.bf16 %v4409_v53  ;;  %v4410_v16 = vunpack.i.l.bf16 %v4409_v53  ;;  %v7799_v58 = vpack.c.bf16 %v5815_v0, %v5812_v49  ;;  %v1411_v49 = vsel %vm394_vm2, %v5485_v39, %v4415_v46  ;;  %v4424_v39 = vpop.permute.xlu0 %4423 }
 0x177   :  { %1577 = vmatprep.subr.bf16.mxu0 %v7728_v32  ;;  %v4426_v54 = vunpack.i.h.bf16 %v4424_v39 }
 0x178   :  { %v1409_v62 = vsel %vm394_vm2, %v5453_v24, %v4410_v16  ;;  %v1410_v35 = vsel %vm394_vm2, %v5457_v9, %v4411_v36 }
 0x179   :  { %v1425_v21 = vpack.c.bf16 %v1410_v35, %v1409_v62  ;;  %v4419_v24 = vpop.permute.xlu1 %4418 }
 0x17a   :  { %1578 = vmatpush1.bf16.msra.mxu0 %v4595_v56  ;;  %v4416_v56 = vunpack.i.h.bf16 %v4414_v28  ;;  %v4421_v27 = vunpack.i.h.bf16 %v4419_v24  ;;  %v4420_v9 = vunpack.i.l.bf16 %v4419_v24 }
 0x17b   :  { %1579 = vmatprep.subr.bf16.mxu0 %v7728_v32 }
 0x17c   :  { %v1412_v0 = vsel %vm394_vm2, %v7735_v15, %v4416_v56  ;;  %v4425_v15 = vunpack.i.l.bf16 %v4424_v39 }
 0x17d   :  { %1126 = vmatmul.mubr.bf16.gmra.mrb[20].mxu0 %v421_v61  ;;  %v7800_v61 = vpack.c.bf16 %v5839_v4, %v5836_v3  ;;  %v1427_v40 = vpack.c.bf16 %v1412_v0, %v1411_v49  ;;  %v1413_v3 = vsel %vm394_vm2, %v5523_v47, %v4420_v9  ;;  %v1414_v4 = vsel %vm394_vm2, %v7738_v51, %v4421_v27  ;;  %v4429_v47 = vpop.permute.xlu1 %4428 }
 0x17e   :  { %4066 = vmatprep.mubr.msk.bf16.mxu0 %vm394_vm2, %v7789_v12  ;;  %1580 = vmatpush1.bf16.msra.mxu0 %v4596_v2  ;;  %v7801_v2 = vpack.c.bf16 %v5863_v19, %v5860_v23  ;;  %v1429_v12 = vpack.c.bf16 %v1414_v4, %v1413_v3  ;;  %v1415_v23 = vsel %vm394_vm2, %v5558_v26, %v4425_v15  ;;  %v4431_v33 = vunpack.i.h.bf16 %v4429_v47  ;;  %v4434_v26 = vpop.permute.xlu0 %4433 }
 0x17f   :  { %1581 = vmatprep.subr.bf16.mxu0 %v7728_v32  ;;  %v1416_v19 = vsel %vm394_vm2, %v5561_v1, %v4426_v54  ;;  %v4430_v51 = vunpack.i.l.bf16 %v4429_v47  ;;  %v4436_v63 = vunpack.i.h.bf16 %v4434_v26  ;;  %v4435_v1 = vunpack.i.l.bf16 %v4434_v26 }
 0x180   :  { %v1431_v13 = vpack.c.bf16 %v1416_v19, %v1415_v23  ;;  %v1418_v6 = vsel %vm394_vm2, %v7804_v48, %v4431_v33 }
 0x181   :  { %v1417_v43 = vsel %vm394_vm2, %v5597_v18, %v4430_v51  ;;  %v4439_v18 = vpop.permute.xlu1 %4438 }
 0x182   :  { %1582 = vmatpush1.bf16.msra.mxu0 %v4597_v45  ;;  %v7803_v45 = vpack.c.bf16 %v5911_v22, %v5908_v7  ;;  %v7807_v22 = vld [vmem:[#allocation75_spill] sm:$0xff]  ;;  %v4441_v50 = vunpack.i.h.bf16 %v4439_v18  ;;  %v4440_v30 = vunpack.i.l.bf16 %v4439_v18 }
 0x183   :  { %v1420_v34 = vsel %vm394_vm2, %v7807_v22, %v4436_v63 }
 0x184   :  { %v1422_v60 = vsel %vm394_vm2, %v7810_v59, %v4441_v50 }
 0x185   :  { %1134 = vmatmul.mubr.bf16.gmra.mrb[24].mxu0 %v423_v14  ;;  %v1433_v14 = vpack.c.bf16 %v1418_v6, %v1417_v43 }
 0x186   :  { %4067 = vmatprep.mubr.msk.bf16.mxu0 %vm394_vm2, %v7792_v41  ;;  %v7806_v41 = vld [vmem:[#allocation72_spill] sm:$0xff] }
 0x187   :  { %v1419_v7 = vsel %vm394_vm2, %v7806_v41, %v4435_v1 }
 0x188   :  { %v1435_v42 = vpack.c.bf16 %v1420_v34, %v1419_v7 }
 0x18d   :  { %1142 = vmatmul.mubr.bf16.gmra.mrb[28].mxu0 %v425_v5  ;;  %v7809_v5 = vld [vmem:[#allocation48_spill] sm:$0xff] }
 0x18e   :  { %4080 = vmatprep.mubr.msk.bf16.mxu0 %vm394_vm2, %v7798_v37  ;;  %v1421_v10 = vsel %vm394_vm2, %v7809_v5, %v4440_v30 }
 0x18f   :  { %v1437_v20 = vpack.c.bf16 %v1422_v60, %v1421_v10 }
 0x195   :  { %1592 = vmatmul.mubr.bf16.vlgmr.msra.gmra.mrb[0].mxu0 %v1423_v55 }
 0x196   :  { %4081 = vmatprep.mubr.msk.bf16.mxu0 %vm394_vm2, %v7799_v58 }
 0x19d   :  { %1600 = vmatmul.mubr.bf16.gmra.mrb[4].mxu0 %v1425_v21 }
 0x19e   :  { %4082 = vmatprep.mubr.msk.bf16.mxu0 %vm394_vm2, %v7800_v61 }
 0x1a5   :  { %1608 = vmatmul.mubr.bf16.gmra.mrb[8].mxu0 %v1427_v40 }
 0x1a6   :  { %4083 = vmatprep.mubr.msk.bf16.mxu0 %vm394_vm2, %v7801_v2 }
 0x1ad   :  { %1616 = vmatmul.mubr.bf16.gmra.mrb[12].mxu0 %v1429_v12 }
 0x1ae   :  { %4084 = vmatprep.mubr.msk.bf16.mxu0 %vm394_vm2, %v7802_v38 }
 0x1b5   :  { %1624 = vmatmul.mubr.bf16.gmra.mrb[16].mxu0 %v1431_v13 }
 0x1b6   :  { %4085 = vmatprep.mubr.msk.bf16.mxu0 %vm394_vm2, %v7803_v45 }
 0x1bd   :  { %1632 = vmatmul.mubr.bf16.gmra.mrb[20].mxu0 %v1433_v14 }
 0x1be   :  { %4086 = vmatprep.mubr.msk.bf16.mxu0 %vm394_vm2, %v7805_v29 }
 0x1c5   :  { %1640 = vmatmul.mubr.bf16.gmra.mrb[24].mxu0 %v1435_v42 }
 0x1c6   :  { %4087 = vmatprep.mubr.msk.bf16.mxu0 %vm394_vm2, %v7808_v17 }
 0x1cd   :  { %1648 = vmatmul.mubr.bf16.gmra.mrb[28].mxu0 %v1437_v20 }
 0x268   :  { %v6165_v57 = vpop.f32.mrb[0].mxu0 }
 0x269   :  { %v1711_v52 = vmul.f32 %v6165_v57, %v6165_v57  ;;  %v1595_v31 = vpop.f32.mrb[1].mxu0  ;;  %v1672_v11 = vsel %vm394_vm2, %v6165_v57, 0.0 }
 0x26a   :  { %v6169_v8 = vpop.f32.mrb[2].mxu0 }
 0x26b   :  { %v1673_v44 = vsel %vm394_vm2, %v6169_v8, 0.0  ;;  %v1712_v25 = vmul.f32 %v6169_v8, %v6169_v8  ;;  %v1598_v37 = vpop.f32.mrb[3].mxu0  ;;  %v1727_v55 = vsel %vm394_vm2, %v1711_v52, 0.0 }
 0x26c   :  { %v1674_v53 = vadd.f32 %v1673_v44, %v1672_v11 }
 0x26d   :  { %v1728_v36 = vsel %vm394_vm2, %v1712_v25, 0.0 }
 0x26e   :  { %v1729_v16 = vadd.f32 %v1728_v36, %v1727_v55 }
 0x270   :  { %v6179_v58 = vpop.f32.mrb[4].mxu0 }
 0x271   :  { %v1675_v62 = vsel %vm394_vm2, %v6179_v58, 0.0  ;;  %v1713_v35 = vmul.f32 %v6179_v58, %v6179_v58  ;;  %v1603_v28 = vpop.f32.mrb[5].mxu0 }
 0x272   :  { %v1676_v21 = vadd.f32 %v1675_v62, %v1674_v53  ;;  %v6185_v56 = vpop.f32.mrb[6].mxu0 }
 0x273   :  { %v1730_v46 = vsel %vm394_vm2, %v1713_v35, 0.0  ;;  %v1677_v61 = vsel %vm394_vm2, %v6185_v56, 0.0  ;;  %v1714_v49 = vmul.f32 %v6185_v56, %v6185_v56  ;;  %v1606_v0 = vpop.f32.mrb[7].mxu0 }
 0x274   :  { %v1731_v24 = vadd.f32 %v1730_v46, %v1729_v16  ;;  %v1678_v40 = vadd.f32 %v1677_v61, %v1676_v21 }
 0x275   :  { %v1732_v27 = vsel %vm394_vm2, %v1714_v49, 0.0 }
 0x276   :  { %v1733_v9 = vadd.f32 %v1732_v27, %v1731_v24 }
 0x278   :  { %v6193_v2 = vpop.f32.mrb[8].mxu0 }
 0x279   :  { %v1679_v3 = vsel %vm394_vm2, %v6193_v2, 0.0  ;;  %v1715_v4 = vmul.f32 %v6193_v2, %v6193_v2  ;;  %v1611_v39 = vpop.f32.mrb[9].mxu0 }
 0x27a   :  { %v1680_v12 = vadd.f32 %v1679_v3, %v1678_v40  ;;  %v6199_v54 = vpop.f32.mrb[10].mxu0 }
 0x27b   :  { %v1734_v15 = vsel %vm394_vm2, %v1715_v4, 0.0  ;;  %v1681_v38 = vsel %vm394_vm2, %v6199_v54, 0.0  ;;  %v1716_v23 = vmul.f32 %v6199_v54, %v6199_v54  ;;  %v1614_v19 = vpop.f32.mrb[11].mxu0 }
 0x27c   :  { %v1735_v47 = vadd.f32 %v1734_v15, %v1733_v9  ;;  %v1682_v13 = vadd.f32 %v1681_v38, %v1680_v12 }
 0x27d   :  { %v1736_v33 = vsel %vm394_vm2, %v1716_v23, 0.0 }
 0x27e   :  { %v1737_v51 = vadd.f32 %v1736_v33, %v1735_v47 }
 0x280   :  { %v6215_v45 = vpop.f32.mrb[12].mxu0 }
 0x281   :  { %v1683_v43 = vsel %vm394_vm2, %v6215_v45, 0.0  ;;  %v1717_v48 = vmul.f32 %v6215_v45, %v6215_v45  ;;  %v1619_v6 = vpop.f32.mrb[13].mxu0 }
 0x282   :  { %v1684_v26 = vadd.f32 %v1683_v43, %v1682_v13  ;;  %v6221_v14 = vpop.f32.mrb[14].mxu0 }
 0x283   :  { %v1738_v63 = vsel %vm394_vm2, %v1717_v48, 0.0  ;;  %v1685_v1 = vsel %vm394_vm2, %v6221_v14, 0.0  ;;  %v1718_v29 = vmul.f32 %v6221_v14, %v6221_v14  ;;  %v1622_v41 = vpop.f32.mrb[15].mxu0 }
 0x284   :  { %v1739_v7 = vadd.f32 %v1738_v63, %v1737_v51  ;;  %v1686_v22 = vadd.f32 %v1685_v1, %v1684_v26 }
 0x285   :  { %v1740_v34 = vsel %vm394_vm2, %v1718_v29, 0.0 }
 0x286   :  { %v1741_v18 = vadd.f32 %v1740_v34, %v1739_v7 }
 0x288   :  { %v6229_v42 = vpop.f32.mrb[16].mxu0 }
 0x289   :  { %v1687_v50 = vsel %vm394_vm2, %v6229_v42, 0.0  ;;  %v1719_v30 = vmul.f32 %v6229_v42, %v6229_v42  ;;  %v1627_v17 = vpop.f32.mrb[17].mxu0 }
 0x28a   :  { %v1688_v5 = vadd.f32 %v1687_v50, %v1686_v22  ;;  %v6235_v10 = vpop.f32.mrb[18].mxu0 }
 0x28b   :  { %v1742_v59 = vsel %vm394_vm2, %v1719_v30, 0.0  ;;  %v1689_v60 = vsel %vm394_vm2, %v6235_v10, 0.0  ;;  %v1720_v20 = vmul.f32 %v6235_v10, %v6235_v10  ;;  %v1630_v52 = vpop.f32.mrb[19].mxu0 }
 0x28c   :  { %v1743_v31 = vadd.f32 %v1742_v59, %v1741_v18  ;;  %v1690_v11 = vadd.f32 %v1689_v60, %v1688_v5 }
 0x28d   :  { %v1744_v44 = vsel %vm394_vm2, %v1720_v20, 0.0 }
 0x28e   :  { %v1745_v25 = vadd.f32 %v1744_v44, %v1743_v31  ;;  %v4598_v44 = vld [vmem:[#allocation13 + $0x60] sm:$0xff]  }
 0x28f   :  { %2925 = vmatpush1.bf16.msra.mxu1 %v4598_v44 }
 0x290   :  { %v6243_v37 = vpop.f32.mrb[20].mxu0  ;;  %2926 = vmatprep.subr.bf16.mxu1 %v7728_v32 }
 0x291   :  { %v1691_v53 = vsel %vm394_vm2, %v6243_v37, 0.0  ;;  %v1721_v55 = vmul.f32 %v6243_v37, %v6243_v37  ;;  %v1635_v36 = vpop.f32.mrb[21].mxu0 }
 0x292   :  { %v1692_v16 = vadd.f32 %v1691_v53, %v1690_v11  ;;  %v6249_v62 = vpop.f32.mrb[22].mxu0 }
 0x293   :  { %v1746_v35 = vsel %vm394_vm2, %v1721_v55, 0.0  ;;  %v1693_v28 = vsel %vm394_vm2, %v6249_v62, 0.0  ;;  %v1722_v21 = vmul.f32 %v6249_v62, %v6249_v62  ;;  %v1638_v46 = vpop.f32.mrb[23].mxu0  ;;  %v4599_v55 = vld [vmem:[#allocation13 + $0x68] sm:$0xff]  }
 0x294   :  { %v1747_v61 = vadd.f32 %v1746_v35, %v1745_v25  ;;  %v1694_v49 = vadd.f32 %v1693_v28, %v1692_v16  ;;  %2927 = vmatpush1.bf16.msra.mxu1 %v4599_v55 }
 0x295   :  { %v1748_v0 = vsel %vm394_vm2, %v1722_v21, 0.0  ;;  %v4600_v21 = vld [vmem:[#allocation13 + $0x70] sm:$0xff]   ;;  %2928 = vmatprep.subr.bf16.mxu1 %v7728_v32 }
 0x296   :  { %v1749_v24 = vadd.f32 %v1748_v0, %v1747_v61  ;;  %v1775_v0 = vlaneseq }
 0x298   :  { %v6257_v40 = vpop.f32.mrb[24].mxu0  ;;  %2929 = vmatpush1.bf16.msra.mxu1 %v4600_v21 }
 0x299   :  { %v1695_v27 = vsel %vm394_vm2, %v6257_v40, 0.0  ;;  %v1723_v9 = vmul.f32 %v6257_v40, %v6257_v40  ;;  %v1643_v3 = vpop.f32.mrb[25].mxu0  ;;  %2930 = vmatprep.subr.bf16.mxu1 %v7728_v32 }
 0x29a   :  { %v1696_v4 = vadd.f32 %v1695_v27, %v1694_v49  ;;  %v6263_v39 = vpop.f32.mrb[26].mxu0  ;;  %v4601_v49 = vld [vmem:[#allocation13 + $0x78] sm:$0xff]   ;;  %v1776_v27 = vshrl.u32 %v1775_v0, 7  ;;  %v2092_v3 = vld [vmem:[#allocation2 + $0x54] sm:$0x3] }
 0x29b   :  { %v1750_v12 = vsel %vm394_vm2, %v1723_v9, 0.0  ;;  %v1697_v15 = vsel %vm394_vm2, %v6263_v39, 0.0  ;;  %v1724_v38 = vmul.f32 %v6263_v39, %v6263_v39  ;;  %v1646_v23 = vpop.f32.mrb[27].mxu0  ;;  %v2076_v9 = vld [vmem:[#allocation2 + $0x4] sm:$0x3] }
 0x29c   :  { %v1751_v19 = vadd.f32 %v1750_v12, %v1749_v24  ;;  %v1698_v47 = vadd.f32 %v1697_v15, %v1696_v4  ;;  %2931 = vmatpush1.bf16.msra.mxu1 %v4601_v49  ;;  %v4602_v24 = vld [vmem:[#allocation13 + $0x80] sm:$0xff]   ;;  %v4603_v4 = vld [vmem:[#allocation13 + $0x88] sm:$0xff]   ;;  %v1767_v12 = vld [vmem:[#allocation10] sm:$0x1]  ;;  %v6290_v15 = vsub.s32 0, %v1776_v27  ;;  %v6292_v23 = vunpack.c.l.bf16 %v2076_v9 }
 0x29d   :  { %v1752_v13 = vsel %vm394_vm2, %v1724_v38, 0.0  ;;  %2932 = vmatprep.subr.bf16.mxu1 %v7728_v32 }
 0x29e   :  { %v1753_v33 = vadd.f32 %v1752_v13, %v1751_v19  ;;  %7811 = vst [vmem:[#allocation46_spill] sm:$0xff] %v6290_v15  ;;  %7812 = vst [vmem:[#allocation47_spill] sm:$0xff] %v6292_v23  ;;  %v6294_v19 = vunpack.c.l.bf16 %v2092_v3  ;;  %v3230_v13 = vld [vmem:[#allocation2 + $0x4c] sm:$0x3] }
 0x2a0   :  { %v6271_v51 = vpop.f32.mrb[28].mxu0  ;;  %2933 = vmatpush1.bf16.msra.mxu1 %v4602_v24  ;;  %7813 = vst [vmem:[#allocation49_spill] sm:$0xff] %v6294_v19 }
 0x2a1   :  { %v1699_v43 = vsel %vm394_vm2, %v6271_v51, 0.0  ;;  %v1725_v48 = vmul.f32 %v6271_v51, %v6271_v51  ;;  %v1651_v6 = vpop.f32.mrb[29].mxu0  ;;  %2934 = vmatprep.subr.bf16.mxu1 %v7728_v32 }
 0x2a2   :  { %v1700_v26 = vadd.f32 %v1699_v43, %v1698_v47  ;;  %v6277_v63 = vpop.f32.mrb[30].mxu0  ;;  %v4604_v43 = vld [vmem:[#allocation13 + $0x90] sm:$0xff]  }
 0x2a3   :  { %v1754_v1 = vsel %vm394_vm2, %v1725_v48, 0.0  ;;  %v1701_v29 = vsel %vm394_vm2, %v6277_v63, 0.0  ;;  %v1726_v41 = vmul.f32 %v6277_v63, %v6277_v63  ;;  %v1654_v7 = vpop.f32.mrb[31].mxu0  ;;  %v1771_v48 = vld [vmem:[#allocation12] sm:$0x1] }
 0x2a4   :  { %v1755_v22 = vadd.f32 %v1754_v1, %v1753_v33  ;;  %v1702_v34 = vadd.f32 %v1701_v29, %v1700_v26  ;;  %v3246_v33 = vld [vmem:[#allocation2 + $0x9c] sm:$0x3]  ;;  %2935 = vmatpush1.bf16.msra.mxu1 %v4603_v4  ;;  %v6303_v1 = vstv %s7387_s5  ;;  %v2236_v29 = vrot.slane %v6292_v23, 2  ;;  %s4861_s5 = smov [#allocation18]  }
 0x2a5   :  { %v1756_v18 = vsel %vm394_vm2, %v1726_v41, 0.0  ;;  %2936 = vmatprep.subr.bf16.mxu1 %v7728_v32  ;;  %v6307_v7 = vunpack.c.l.bf16 %v3230_v13 }
 0x2a6   :  { %v1703_v50 = vrot.slane %v1702_v34, 4  ;;  %v1757_v30 = vadd.f32 %v1756_v18, %v1755_v22  ;;  %v6309_v22 = vunpack.c.l.bf16 %v3246_v33  ;;  %v4608_v33 = vld [vmem:[#allocation13 + $0xb0] sm:$0xff]  }
 0x2a7   :  { %7814 = vst [vmem:[#allocation50_spill] sm:$0xff] %v6307_v7 }
 0x2a8   :  { %v1704_v17 = vadd.f32 %v1703_v50, %v1702_v34  ;;  %v1758_v5 = vrot.slane %v1757_v30, 4  ;;  %7815 = vst [vmem:[#allocation51_spill] sm:$0xff] %v6309_v22  ;;  %2937 = vmatpush1.bf16.msra.mxu1 %v4604_v43 }
 0x2a9   :  { %2938 = vmatprep.subr.bf16.mxu1 %v7728_v32 }
 0x2aa   :  { %v1705_v59 = vrot.slane %v1704_v17, 2  ;;  %v1759_v60 = vadd.f32 %v1758_v5, %v1757_v30 }
 0x2ac   :  { %v1706_v20 = vadd.f32 %v1705_v59, %v1704_v17  ;;  %v1760_v52 = vrot.slane %v1759_v60, 2  ;;  %v4605_v17 = vld [vmem:[#allocation13 + $0x98] sm:$0xff]  }
 0x2ad   :  { %2939 = vmatpush1.bf16.msra.mxu1 %v4605_v17 }
 0x2ae   :  { %v1707_v31 = vrot.slane %v1706_v20, 1  ;;  %v1761_v11 = vadd.f32 %v1760_v52, %v1759_v60  ;;  %2940 = vmatprep.subr.bf16.mxu1 %v7728_v32 }
 0x2b0   :  { %v1708_v25 = vadd.f32 %v1707_v31, %v1706_v20  ;;  %v1762_v53 = vrot.slane %v1761_v11, 1  ;;  %v4606_v31 = vld [vmem:[#allocation13 + $0xa0] sm:$0xff]  }
 0x2b1   :  { %2941 = vmatpush1.bf16.msra.mxu1 %v4606_v31 }
 0x2b2   :  { %v1710_v36 = vmul.f32 0.0078125, %v1708_v25  ;;  %v1763_v16 = vadd.f32 %v1762_v53, %v1761_v11  ;;  %2942 = vmatprep.subr.bf16.mxu1 %v7728_v32 }
 0x2b4   :  { %v1764_v35 = vmul.f32 0.0078125, %v1763_v16  ;;  %v1765_v28 = vmul.f32 %v1710_v36, %v1710_v36 }
 0x2b6   :  { %v1766_v46 = vsub.f32 %v1764_v35, %v1765_v28  ;;  %v4607_v35 = vld [vmem:[#allocation13 + $0xa8] sm:$0xff]  }
 0x2b7   :  { %2943 = vmatpush1.bf16.msra.mxu1 %v4607_v35 }
 0x2b8   :  { %v1768_v61 = vadd.f32 1e-05, %v1766_v46  ;;  %2944 = vmatprep.subr.bf16.mxu1 %v7728_v32 }
 0x2ba   :  { %4634 = vrsqrt.f32 %v1768_v61 }
 0x2bb   :  { %2945 = vmatpush1.bf16.msra.mxu1 %v4608_v33 }
 0x2bc   :  { %2946 = vmatprep.subr.bf16.mxu1 %v7728_v32 }
 0x2c4   :  { %v4635_v38 = vpop.eup %4634 }
 0x2c5   :  { %v1770_v47 = vmul.f32 %v4635_v38, %v1767_v12 }
 0x2c7   :  { %v1772_v6 = vmul.f32 %v1770_v47, %v1710_v36  ;;  %v6298_v26 = vrot.slane %v1770_v47, %v6290_v15 }
 0x2c9   :  { %v1773_v34 = vsub.f32 %v1771_v48, %v1772_v6  ;;  %v1795_v18 = vmul.f32 %v6298_v26, %v6277_v63  ;;  %v1782_v50 = vmul.f32 %v6298_v26, %v6179_v58  ;;  %v1783_v30 = vmul.f32 %v6298_v26, %v6185_v56 }
 0x2ca   :  { %v1780_v5 = vmul.f32 %v6298_v26, %v6165_v57  ;;  %v1781_v59 = vmul.f32 %v6298_v26, %v6169_v8  ;;  %v1786_v60 = vmul.f32 %v6298_v26, %v6215_v45  ;;  %v1787_v63 = vmul.f32 %v6298_v26, %v6221_v14 }
 0x2cb   :  { %v6327_v58 = vrot.slane %v1773_v34, %v6290_v15  ;;  %v1784_v56 = vmul.f32 %v6298_v26, %v6193_v2  ;;  %v1785_v57 = vmul.f32 %v6298_v26, %v6199_v54  ;;  %v6335_v8 = vmul.f32 %v6298_v26, %v6243_v37 }
 0x2cc   :  { %v6339_v45 = vmul.f32 %v6298_v26, %v6249_v62  ;;  %v6343_v14 = vmul.f32 %v6298_v26, %v6229_v42  ;;  %v6347_v20 = vmul.f32 %v6298_v26, %v6235_v10  ;;  %v6351_v2 = vmul.f32 %v6298_v26, %v6271_v51 }
 0x2cd   :  { %v1817_v54 = vadd.f32 %v6327_v58, %v1795_v18  ;;  %v1804_v37 = vadd.f32 %v6327_v58, %v1782_v50  ;;  %v1805_v52 = vadd.f32 %v6327_v58, %v1783_v30  ;;  %v1802_v62 = vadd.f32 %v6327_v58, %v1780_v5 }
 0x2ce   :  { %v1803_v42 = vadd.f32 %v6327_v58, %v1781_v59  ;;  %v1808_v11 = vadd.f32 %v6327_v58, %v1786_v60  ;;  %v1809_v10 = vadd.f32 %v6327_v58, %v1787_v63  ;;  %v6361_v44 = vadd.f32 %v6327_v58, %v1784_v56 }
 0x2cf   :  { %vm1834_vm8 = vcmp.ge.f32.partialorder %v1817_v54, 0.0  ;;  %v1851_v51 = vmul.f32 %v6303_v1, %v1817_v54  ;;  %vm1821_vm9 = vcmp.ge.f32.partialorder %v1804_v37, 0.0  ;;  %vm1822_vm10 = vcmp.ge.f32.partialorder %v1805_v52, 0.0 }
 0x2d0   :  { %v1838_v25 = vmul.f32 %v6303_v1, %v1804_v37  ;;  %v1839_v53 = vmul.f32 %v6303_v1, %v1805_v52  ;;  %vm1819_vm11 = vcmp.ge.f32.partialorder %v1802_v62, 0.0  ;;  %vm1820_vm12 = vcmp.ge.f32.partialorder %v1803_v42, 0.0 }
 0x2d1   :  { %v1867_v55 = vsel %vm1834_vm8, %v1817_v54, %v1851_v51  ;;  %v1836_v36 = vmul.f32 %v6303_v1, %v1802_v62  ;;  %v1837_v16 = vmul.f32 %v6303_v1, %v1803_v42  ;;  %vm1825_vm13 = vcmp.ge.f32.partialorder %v1808_v11, 0.0 }
 0x2d2   :  { %v4179_v28 = vpack.c.bf16 %v1867_v55, %v1867_v55  ;;  %v1854_v21 = vsel %vm1821_vm9, %v1804_v37, %v1838_v25  ;;  %v1855_v46 = vsel %vm1822_vm10, %v1805_v52, %v1839_v53  ;;  %vm1826_vm14 = vcmp.ge.f32.partialorder %v1809_v10, 0.0  ;;  %v4609_v53 = vld [vmem:[#allocation13 + $0xb8] sm:$0xff]  }
 0x2d3   :  { %v4166_v61 = vpack.c.bf16 %v1854_v21, %v1854_v21  ;;  %v4167_v49 = vpack.c.bf16 %v1855_v46, %v1855_v46  ;;  %v1852_v0 = vsel %vm1819_vm11, %v1802_v62, %v1836_v36  ;;  %v1853_v24 = vsel %vm1820_vm12, %v1803_v42, %v1837_v16  ;;  %2947 = vmatpush1.bf16.msra.mxu1 %v4609_v53 }
 0x2d4   :  { %v2008_v27 = vrot.slane %v4179_v28, 7  ;;  %v4164_v9 = vpack.c.bf16 %v1852_v0, %v1852_v0  ;;  %v4165_v3 = vpack.c.bf16 %v1853_v24, %v1853_v24  ;;  %v1842_v4 = vmul.f32 %v6303_v1, %v1808_v11  ;;  %3117 = vmatprep.subr.bf16.mxu1 %v7728_v32 }
 0x2d5   :  { %v1982_v12 = vrot.slane %v4166_v61, 7  ;;  %v1984_v38 = vrot.slane %v4167_v49, 7  ;;  %v1843_v47 = vmul.f32 %v6303_v1, %v1809_v10  ;;  %v1807_v13 = vadd.f32 %v6327_v58, %v1785_v57 }
 0x2d6   :  { %v2009_v43 = vrot.slane %v2008_v27, 4  ;;  %2073 = vst.msk [vmem:[#allocation2 + $0x90] sm:$0xe] %vm2042_vm7, %v2008_v27  ;;  %v1978_v48 = vrot.slane %v4164_v9, 7  ;;  %v1980_v6 = vrot.slane %v4165_v3, 7  ;;  %v1858_v34 = vsel %vm1825_vm13, %v1808_v11, %v1842_v4 }
 0x2d7   :  { %v1983_v18 = vrot.slane %v1982_v12, 4  ;;  %v1985_v50 = vrot.slane %v1984_v38, 4  ;;  %2047 = vst.msk [vmem:[#allocation2 + $0x18] sm:$0xe] %vm2042_vm7, %v1982_v12  ;;  %2049 = vst.msk [vmem:[#allocation2 + $0x20] sm:$0xe] %vm2042_vm7, %v1984_v38  ;;  %v1859_v30 = vsel %vm1826_vm14, %v1809_v10, %v1843_v47  ;;  %v4170_v17 = vpack.c.bf16 %v1858_v34, %v1858_v34 }
 0x2d8   :  { %2074 = vst.msk [vmem:[#allocation2 + $0x94] sm:$0x1] %vm1880_vm3, %v2009_v43  ;;  %v1979_v5 = vrot.slane %v1978_v48, 4  ;;  %v1981_v59 = vrot.slane %v1980_v6, 4  ;;  %v4171_v60 = vpack.c.bf16 %v1859_v30, %v1859_v30  ;;  %vm1823_vm15 = vcmp.ge.f32.partialorder %v6361_v44, 0.0 }
 0x2d9   :  { %2043 = vst.msk [vmem:[#allocation2 + $0x8] sm:$0xe] %vm2042_vm7, %v1978_v48  ;;  %2045 = vst.msk [vmem:[#allocation2 + $0x10] sm:$0xe] %vm2042_vm7, %v1980_v6  ;;  %v1990_v63 = vrot.slane %v4170_v17, 7  ;;  %vm1824_vm4 = vcmp.ge.f32.partialorder %v1807_v13, 0.0  ;;  %v1840_v56 = vmul.f32 %v6303_v1, %v6361_v44  ;;  %v1841_v57 = vmul.f32 %v6303_v1, %v1807_v13 }
 0x2da   :  { %2048 = vst.msk [vmem:[#allocation2 + $0x1c] sm:$0x1] %vm1880_vm3, %v1983_v18  ;;  %2050 = vst.msk [vmem:[#allocation2 + $0x24] sm:$0x1] %vm1880_vm3, %v1985_v50  ;;  %v1992_v54 = vrot.slane %v4171_v60, 7  ;;  %v1812_v37 = vadd.f32 %v6327_v58, %v6335_v8  ;;  %v1813_v52 = vadd.f32 %v6327_v58, %v6339_v45  ;;  %v6396_v62 = vadd.f32 %v6327_v58, %v6343_v14 }
 0x2db   :  { %2044 = vst.msk [vmem:[#allocation2 + $0xc] sm:$0x1] %vm1880_vm3, %v1979_v5  ;;  %2046 = vst.msk [vmem:[#allocation2 + $0x14] sm:$0x1] %vm1880_vm3, %v1981_v59  ;;  %v1991_v31 = vrot.slane %v1990_v63, 4  ;;  %v1856_v42 = vsel %vm1823_vm15, %v6361_v44, %v1840_v56  ;;  %v1857_v11 = vsel %vm1824_vm4, %v1807_v13, %v1841_v57  ;;  %v6405_v8 = vadd.f32 %v6327_v58, %v6347_v20 }
 0x2dc   :  { %2055 = vst.msk [vmem:[#allocation2 + $0x38] sm:$0xe] %vm2042_vm7, %v1990_v63  ;;  %v1993_v10 = vrot.slane %v1992_v54, 4  ;;  %2057 = vst.msk [vmem:[#allocation2 + $0x40] sm:$0xe] %vm2042_vm7, %v1992_v54  ;;  %v4168_v45 = vpack.c.bf16 %v1856_v42, %v1856_v42  ;;  %v4169_v14 = vpack.c.bf16 %v1857_v11, %v1857_v11  ;;  %vm1829_vm5 = vcmp.ge.f32.partialorder %v1812_v37, 0.0 }
 0x2dd   :  { %2056 = vst.msk [vmem:[#allocation2 + $0x3c] sm:$0x1] %vm1880_vm3, %v1991_v31  ;;  %vm1830_vm8 = vcmp.ge.f32.partialorder %v1813_v52, 0.0  ;;  %v1846_v51 = vmul.f32 %v6303_v1, %v1812_v37  ;;  %v1847_v25 = vmul.f32 %v6303_v1, %v1813_v52  ;;  %v6415_v16 = vmul.f32 %v6303_v1, %v6396_v62 }
 0x2de   :  { %v2456_v55 = vld [vmem:[#allocation2 + $0x18] ss:$8 sps:$4 sm:$0xff]   ;;  %2058 = vst.msk [vmem:[#allocation2 + $0x44] sm:$0x1] %vm1880_vm3, %v1993_v10  ;;  %v1986_v20 = vrot.slane %v4168_v45, 7  ;;  %v1988_v36 = vrot.slane %v4169_v14, 7 }
 0x2df   :  { %v6418_v28 = vunpack.c.l.bf16 %v2456_v55  ;;  %v6420_v21 = vunpack.c.h.bf16 %v2456_v55  ;;  %v6423_v61 = vsel %vm1829_vm5, %v1812_v37, %v1846_v51  ;;  %v6425_v49 = vsel %vm1830_vm8, %v1813_v52, %v1847_v25 }
 0x2e0   :  { %v2452_v46 = vld [vmem:[#allocation2 + $0x8] ss:$8 sps:$4 sm:$0xff]   ;;  %v1987_v3 = vrot.slane %v1986_v20, 4  ;;  %v1989_v4 = vrot.slane %v1988_v36, 4  ;;  %2051 = vst.msk [vmem:[#allocation2 + $0x28] sm:$0xe] %vm2042_vm7, %v1986_v20 }
 0x2e1   :  { %v2457_v0 = vld [vmem:[#allocation2 + $0x1c] sm:$0x3]  ;;  %v2459_v24 = vld [vmem:[#allocation2 + $0x24] sm:$0x3]  ;;  %v6427_v27 = vunpack.c.l.bf16 %v2452_v46  ;;  %v6429_v9 = vunpack.c.h.bf16 %v2452_v46  ;;  %2053 = vst.msk [vmem:[#allocation2 + $0x30] sm:$0xe] %vm2042_vm7, %v1988_v36 }
 0x2e2   :  { %v6434_v12 = vunpack.c.l.bf16 %v2457_v0  ;;  %v6436_v38 = vunpack.c.l.bf16 %v2459_v24  ;;  %v2618_v47 = vrot.slane %v6418_v28, 2  ;;  %v2621_v13 = vrot.slane %v6420_v21, 2  ;;  %v2453_v33 = vld [vmem:[#allocation2 + $0xc] sm:$0x3]  ;;  %v2455_v43 = vld [vmem:[#allocation2 + $0x14] sm:$0x3] }
 0x2e3   :  { %v6440_v48 = vunpack.c.l.bf16 %v2453_v33  ;;  %v6442_v6 = vunpack.c.l.bf16 %v2455_v43  ;;  %v2660_v34 = vrot.slane %v6427_v27, 3  ;;  %v2663_v18 = vrot.slane %v6429_v9, 3  ;;  %2052 = vst.msk [vmem:[#allocation2 + $0x2c] sm:$0x1] %vm1880_vm3, %v1987_v3  ;;  %2054 = vst.msk [vmem:[#allocation2 + $0x34] sm:$0x1] %vm1880_vm3, %v1989_v4 }
 0x2e4   :  { %vm1827_vm9 = vcmp.ge.f32.partialorder %v6396_v62, 0.0  ;;  %v2619_v50 = vrot.slane %v6434_v12, 2  ;;  %v2622_v30 = vrot.slane %v6436_v38, 2  ;;  %v2612_v17 = vrot.slane %v6427_v27, 2  ;;  %v2464_v59 = vld [vmem:[#allocation2 + $0x38] ss:$8 sps:$4 sm:$0xff]  }
 0x2e5   :  { %v2615_v5 = vrot.slane %v6429_v9, 2  ;;  %vm1828_vm10 = vcmp.ge.f32.partialorder %v6405_v8, 0.0  ;;  %v2661_v60 = vrot.slane %v6440_v48, 3  ;;  %v2664_v63 = vrot.slane %v6442_v6, 3  ;;  %v2465_v54 = vld [vmem:[#allocation2 + $0x3c] sm:$0x3] }
 0x2e6   :  { %v2613_v56 = vrot.slane %v6440_v48, 2  ;;  %v2616_v57 = vrot.slane %v6442_v6, 2  ;;  %v2620_v37 = vsel %vm281_vm1, %v2618_v47, %v2619_v50  ;;  %v2623_v52 = vsel %vm281_vm1, %v2621_v13, %v2622_v30  ;;  %v2467_v31 = vld [vmem:[#allocation2 + $0x44] sm:$0x3] }
 0x2e7   :  { %v6460_v42 = vunpack.c.l.bf16 %v2464_v59  ;;  %v6462_v11 = vunpack.c.l.bf16 %v2465_v54  ;;  %v4447_v10 = vpack.i.bf16 %v2623_v52, %v2620_v37  ;;  %v2662_v45 = vsel %vm2283_vm6, %v2660_v34, %v2661_v60 }
 0x2e8   :  { %v2665_v14 = vsel %vm2283_vm6, %v2663_v18, %v2664_v63  ;;  %v2614_v51 = vsel %vm281_vm1, %v2612_v17, %v2613_v56  ;;  %v2617_v53 = vsel %vm281_vm1, %v2615_v5, %v2616_v57  ;;  %v6468_v55 = vunpack.c.h.bf16 %v2464_v59  ;;  %v2460_v36 = vld [vmem:[#allocation2 + $0x28] ss:$8 sps:$4 sm:$0xff]  }
 0x2e9   :  { %v2789_v25 = vpack.c.bf16 %v2665_v14, %v2662_v45  ;;  %v6470_v20 = vunpack.c.l.bf16 %v2467_v31  ;;  %4448 = vrot.lane.b32.xlu1 %v4447_v10, %s4854_s24  ;;  %v4442_v46 = vpack.i.bf16 %v2617_v53, %v2614_v51  ;;  %v2630_v0 = vrot.slane %v6460_v42, 2  ;;  %v2483_v10 = vld [vmem:[#allocation2 + $0x94] sm:$0x3]  ;;  %v2079_v53 = vld [vmem:[#allocation2 + $0x10] ss:$8 sps:$4 sm:$0xff]  }
 0x2ea   :  { %v2631_v24 = vrot.slane %v6462_v11, 2  ;;  %v6475_v3 = vunpack.c.l.bf16 %v2460_v36  ;;  %v2633_v4 = vrot.slane %v6468_v55, 2  ;;  %v2461_v13 = vld [vmem:[#allocation2 + $0x2c] sm:$0x3]  ;;  %v2463_v33 = vld [vmem:[#allocation2 + $0x34] sm:$0x3]  ;;  %v6480_v43 = vunpack.c.h.bf16 %v2460_v36 }
 0x2eb   :  { %4116 = vmatprep.mubr.msk.bf16.mxu1 %vm394_vm2, %v2789_v25  ;;  %v2634_v47 = vrot.slane %v6470_v20, 2  ;;  %v4174_v34 = vpack.c.bf16 %v6423_v61, %v6423_v61  ;;  %4443 = vrot.lane.b32.xlu0 %v4442_v46, %s4854_s24  ;;  %v6486_v50 = vunpack.c.l.bf16 %v2461_v13  ;;  %v6488_v30 = vunpack.c.l.bf16 %v2463_v33  ;;  %v2080_v36 = vld [vmem:[#allocation2 + $0x14] sm:$0x3]  ;;  %v2082_v13 = vld [vmem:[#allocation2 + $0x1c] sm:$0x3] }
 0x2ec   :  { %v2632_v18 = vsel %vm281_vm1, %v2630_v0, %v2631_v24  ;;  %v2624_v17 = vrot.slane %v6475_v3, 2  ;;  %v2627_v59 = vrot.slane %v6480_v43, 2  ;;  %v4175_v60 = vpack.c.bf16 %v6425_v49, %v6425_v49 }
 0x2ed   :  { %v2635_v5 = vsel %vm281_vm1, %v2633_v4, %v2634_v47  ;;  %v1998_v63 = vrot.slane %v4174_v34, 7  ;;  %v2625_v61 = vrot.slane %v6486_v50, 2  ;;  %v2628_v57 = vrot.slane %v6488_v30, 2 }
 0x2ee   :  { %v4457_v56 = vpack.i.bf16 %v2635_v5, %v2632_v18  ;;  %v1845_v54 = vmul.f32 %v6303_v1, %v6405_v8  ;;  %v2000_v52 = vrot.slane %v4175_v60, 7  ;;  %v1860_v31 = vsel %vm1827_vm9, %v6396_v62, %v6415_v16 }
 0x2ef   :  { %v1999_v37 = vrot.slane %v1998_v63, 4  ;;  %2063 = vst.msk [vmem:[#allocation2 + $0x68] sm:$0xe] %vm2042_vm7, %v1998_v63  ;;  %v1816_v49 = vadd.f32 %v6327_v58, %v6351_v2  ;;  %v2626_v45 = vsel %vm281_vm1, %v2624_v17, %v2625_v61  ;;  %v2629_v14 = vsel %vm281_vm1, %v2627_v59, %v2628_v57 }
 0x2f0   :  { %4458 = vrot.lane.b32.xlu1 %v4457_v56, %s4854_s24  ;;  %v1861_v51 = vsel %vm1828_vm10, %v6405_v8, %v1845_v54  ;;  %v4172_v25 = vpack.c.bf16 %v1860_v31, %v1860_v31  ;;  %v4452_v46 = vpack.i.bf16 %v2629_v14, %v2626_v45  ;;  %v2001_v0 = vrot.slane %v2000_v52, 4  ;;  %2065 = vst.msk [vmem:[#allocation2 + $0x70] sm:$0xe] %vm2042_vm7, %v2000_v52 }
 0x2f1   :  { %2064 = vst.msk [vmem:[#allocation2 + $0x6c] sm:$0x1] %vm1880_vm3, %v1999_v37  ;;  %v4173_v2 = vpack.c.bf16 %v1861_v51, %v1861_v51  ;;  %vm1833_vm11 = vcmp.ge.f32.partialorder %v1816_v49, 0.0  ;;  %v1850_v16 = vmul.f32 %v6303_v1, %v1816_v49  ;;  %v6515_v24 = vunpack.c.l.bf16 %v2483_v10 }
 0x2f2   :  { %v1994_v62 = vrot.slane %v4172_v25, 7  ;;  %v1792_v4 = vmul.f32 %v6298_v26, %v6257_v40  ;;  %4453 = vrot.lane.b32.xlu0 %v4452_v46, %s4854_s24  ;;  %2066 = vst.msk [vmem:[#allocation2 + $0x74] sm:$0x1] %vm1880_vm3, %v2001_v0  ;;  %v1793_v47 = vmul.f32 %v6298_v26, %v6263_v39  ;;  %v6523_v33 = vunpack.c.l.bf16 %v2079_v53  ;;  %v2075_v26 = vld [vmem:[#allocation2] ss:$8 sps:$4 sm:$0xff]  }
 0x2f3   :  { %v1996_v8 = vrot.slane %v4173_v2, 7  ;;  %v6525_v34 = vunpack.c.l.bf16 %v2080_v36  ;;  %v1866_v17 = vsel %vm1833_vm11, %v1816_v49, %v1850_v16  ;;  %v6532_v39 = vunpack.c.h.bf16 %v2079_v53 }
 0x2f4   :  { %7816 = vst [vmem:[#allocation52_spill] sm:$0xff] %v6523_v33  ;;  %v1995_v18 = vrot.slane %v1994_v62, 4  ;;  %2059 = vst.msk [vmem:[#allocation2 + $0x58] sm:$0xe] %vm2042_vm7, %v1994_v62  ;;  %v1814_v40 = vadd.f32 %v6327_v58, %v1792_v4  ;;  %v4178_v60 = vpack.c.bf16 %v1866_v17, %v1866_v17  ;;  %v1815_v63 = vadd.f32 %v6327_v58, %v1793_v47 }
 0x2f5   :  { %7817 = vst [vmem:[#allocation25_spill] sm:$0xff] %v6525_v34  ;;  %v1997_v59 = vrot.slane %v1996_v8, 4  ;;  %2061 = vst.msk [vmem:[#allocation2 + $0x60] sm:$0xe] %vm2042_vm7, %v1996_v8  ;;  %v6536_v61 = vunpack.c.l.bf16 %v2082_v13  ;;  %v2241_v57 = vrot.slane %v6523_v33, 2  ;;  %v2242_v58 = vrot.slane %v6525_v34, 2 }
 0x2f6   :  { %7818 = vst [vmem:[#allocation26_spill] sm:$0xff] %v6532_v39  ;;  %2060 = vst.msk [vmem:[#allocation2 + $0x5c] sm:$0x1] %vm1880_vm3, %v1995_v18  ;;  %vm1831_vm12 = vcmp.ge.f32.partialorder %v1814_v40, 0.0  ;;  %v1848_v56 = vmul.f32 %v6303_v1, %v1814_v40  ;;  %v2006_v54 = vrot.slane %v4178_v60, 7  ;;  %vm1832_vm13 = vcmp.ge.f32.partialorder %v1815_v63, 0.0 }
 0x2f7   :  { %7819 = vst [vmem:[#allocation27_spill] sm:$0xff] %v6536_v61  ;;  %2062 = vst.msk [vmem:[#allocation2 + $0x64] sm:$0x1] %vm1880_vm3, %v1997_v59  ;;  %v1849_v37 = vmul.f32 %v6303_v1, %v1815_v63  ;;  %v2472_v52 = vld [vmem:[#allocation2 + $0x68] ss:$8 sps:$4 sm:$0xff]   ;;  %v2244_v10 = vrot.slane %v6532_v39, 2  ;;  %v6544_v14 = vunpack.c.l.bf16 %v2075_v26  ;;  %v6554_v2 = vsel %vm281_vm1, %v2241_v57, %v2242_v58 }
 0x2f8   :  { %v2473_v31 = vld [vmem:[#allocation2 + $0x6c] sm:$0x3]  ;;  %v1864_v49 = vsel %vm1831_vm12, %v1814_v40, %v1848_v56  ;;  %v2245_v45 = vrot.slane %v6536_v61, 2  ;;  %v6546_v51 = vunpack.c.l.bf16 %v2472_v52  ;;  %v6550_v53 = vunpack.c.h.bf16 %v2472_v52  ;;  %2071 = vst.msk [vmem:[#allocation2 + $0x88] sm:$0xe] %vm2042_vm7, %v2006_v54 }
 0x2f9   :  { %7820 = vst [vmem:[#allocation28_spill] sm:$0xff] %v6544_v14  ;;  %v6548_v25 = vunpack.c.l.bf16 %v2473_v31  ;;  %v2007_v36 = vrot.slane %v2006_v54, 4  ;;  %v2475_v1 = vld [vmem:[#allocation2 + $0x74] sm:$0x3]  ;;  %v1865_v46 = vsel %vm1832_vm13, %v1815_v63, %v1849_v37  ;;  %v4176_v0 = vpack.c.bf16 %v1864_v49, %v1864_v49  ;;  %v2078_v13 = vld [vmem:[#allocation2 + $0xc] sm:$0x3] }
 0x2fa   :  { %v6557_v62 = vsel %vm281_vm1, %v2244_v10, %v2245_v45  ;;  %v6559_v16 = vunpack.c.l.bf16 %v2475_v1  ;;  %v2642_v4 = vrot.slane %v6546_v51, 2  ;;  %v2645_v47 = vrot.slane %v6550_v53, 2  ;;  %v2084_v59 = vld [vmem:[#allocation2 + $0x24] sm:$0x3] }
 0x2fb   :  { %v2643_v8 = vrot.slane %v6548_v25, 2  ;;  %2072 = vst.msk [vmem:[#allocation2 + $0x8c] sm:$0x1] %vm1880_vm3, %v2007_v36  ;;  %v4177_v17 = vpack.c.bf16 %v1865_v46, %v1865_v46  ;;  %v2002_v40 = vrot.slane %v4176_v0, 7  ;;  %v6567_v60 = vunpack.c.h.bf16 %v2075_v26  ;;  %v2087_v46 = vld [vmem:[#allocation2 + $0x30] ss:$8 sps:$4 sm:$0xff]  }
 0x2fc   :  { %v2468_v18 = vld [vmem:[#allocation2 + $0x58] ss:$8 sps:$4 sm:$0xff]   ;;  %v2646_v56 = vrot.slane %v6559_v16, 2  ;;  %v6578_v10 = vunpack.c.l.bf16 %v2078_v13  ;;  %v2235_v13 = vrot.slane %v6544_v14, 2 }
 0x2fd   :  { %7821 = vst [vmem:[#allocation60_spill] sm:$0xff] %v6567_v60  ;;  %v2644_v63 = vsel %vm281_vm1, %v2642_v4, %v2643_v8  ;;  %v2469_v57 = vld [vmem:[#allocation2 + $0x5c] sm:$0x3]  ;;  %v6571_v54 = vunpack.c.l.bf16 %v2468_v18  ;;  %v6573_v37 = vunpack.c.h.bf16 %v2468_v18  ;;  %v2003_v31 = vrot.slane %v2002_v40, 4  ;;  %2067 = vst.msk [vmem:[#allocation2 + $0x78] sm:$0xe] %vm2042_vm7, %v2002_v40 }
 0x2fe   :  { %v2471_v58 = vld [vmem:[#allocation2 + $0x64] sm:$0x3]  ;;  %v6575_v52 = vunpack.c.l.bf16 %v2469_v57  ;;  %v2004_v49 = vrot.slane %v4177_v17, 7  ;;  %v2647_v26 = vsel %vm281_vm1, %v2645_v47, %v2646_v56  ;;  %v2238_v56 = vrot.slane %v6567_v60, 2  ;;  %v2088_v57 = vld [vmem:[#allocation2 + $0x34] sm:$0x3] }
 0x2ff   :  { %v6581_v45 = vunpack.c.l.bf16 %v2471_v58  ;;  %v2636_v36 = vrot.slane %v6571_v54, 2  ;;  %v2639_v1 = vrot.slane %v6573_v37, 2  ;;  %v4467_v0 = vpack.i.bf16 %v2647_v26, %v2644_v63  ;;  %v2480_v8 = vld [vmem:[#allocation2 + $0x88] ss:$8 sps:$4 sm:$0xff]   ;;  %2068 = vst.msk [vmem:[#allocation2 + $0x7c] sm:$0x1] %vm1880_vm3, %v2003_v31 }
 0x300   :  { %v2637_v4 = vrot.slane %v6575_v52, 2  ;;  %v2005_v18 = vrot.slane %v2004_v49, 4  ;;  %2069 = vst.msk [vmem:[#allocation2 + $0x80] sm:$0xe] %vm2042_vm7, %v2004_v49  ;;  %v6590_v17 = vunpack.c.l.bf16 %v2480_v8  ;;  %v6592_v40 = vunpack.c.h.bf16 %v2480_v8  ;;  %v2090_v26 = vld [vmem:[#allocation2 + $0x3c] sm:$0x3] }
 0x301   :  { %v2640_v47 = vrot.slane %v6581_v45, 2  ;;  %4468 = vrot.lane.b32.xlu1 %v4467_v0, %s4854_s24  ;;  %v6601_v31 = vsel %vm281_vm1, %v2235_v13, %v2236_v29  ;;  %v2239_v49 = vrot.slane %v6578_v10, 2  ;;  %v6604_v8 = vunpack.c.l.bf16 %v2087_v46 }
 0x302   :  { %v2638_v63 = vsel %vm281_vm1, %v2636_v36, %v2637_v4  ;;  %v2481_v58 = vld [vmem:[#allocation2 + $0x8c] sm:$0x3]  ;;  %2070 = vst.msk [vmem:[#allocation2 + $0x84] sm:$0x1] %vm1880_vm3, %v2005_v18  ;;  %v2654_v0 = vrot.slane %v6590_v17, 2  ;;  %v2657_v36 = vrot.slane %v6592_v40, 2  ;;  %v6614_v29 = vunpack.c.l.bf16 %v2088_v57 }
 0x303   :  { %7822 = vst [vmem:[#allocation29_spill] sm:$0xff] %v6604_v8  ;;  %v2641_v35 = vsel %vm281_vm1, %v2639_v1, %v2640_v47  ;;  %v6607_v44 = vunpack.c.l.bf16 %v2481_v58  ;;  %v2083_v4 = vld [vmem:[#allocation2 + $0x20] ss:$8 sps:$4 sm:$0xff]   ;;  %v6612_v41 = vsel %vm281_vm1, %v2238_v56, %v2239_v49  ;;  %v6616_v13 = vunpack.c.h.bf16 %v2087_v46  ;;  %v2086_v57 = vld [vmem:[#allocation2 + $0x2c] sm:$0x3] }
 0x304   :  { %v4462_v18 = vpack.i.bf16 %v2641_v35, %v2638_v63  ;;  %7823 = vst [vmem:[#allocation30_spill] sm:$0xff] %v6614_v29  ;;  %v7825_v1 = vrot.slane %v6515_v24, 2  ;;  %v6624_v15 = vunpack.c.l.bf16 %v2090_v26  ;;  %v2253_v35 = vrot.slane %v6604_v8, 2 }
 0x305   :  { %7824 = vst [vmem:[#allocation63_spill] sm:$0xff] %v6616_v13  ;;  %v2655_v5 = vrot.slane %v6607_v44, 2  ;;  %v2254_v56 = vrot.slane %v6614_v29, 2  ;;  %v2256_v46 = vrot.slane %v6616_v13, 2  ;;  %v6630_v63 = vunpack.c.l.bf16 %v2083_v4  ;;  %v2095_v13 = vld [vmem:[#allocation2 + $0x60] ss:$8 sps:$4 sm:$0xff]  }
 0x306   :  { %v2659_v47 = vsel %vm281_vm1, %v2657_v36, %v7825_v1  ;;  %7826 = vst [vmem:[#allocation66_spill] sm:$0xff] %v6624_v15  ;;  %4463 = vrot.lane.b32.xlu0 %v4462_v18, %s4854_s24  ;;  %v2477_v36 = vld [vmem:[#allocation2 + $0x7c] sm:$0x3]  ;;  %v2257_v1 = vrot.slane %v6624_v15, 2  ;;  %v6634_v58 = vunpack.c.l.bf16 %v2084_v59  ;;  %v6636_v26 = vunpack.c.h.bf16 %v2083_v4  ;;  %v2096_v15 = vld [vmem:[#allocation2 + $0x64] sm:$0x3] }
 0x307   :  { %7827 = vst [vmem:[#allocation62_spill] sm:$0xff] %v6630_v63  ;;  %v2656_v49 = vsel %vm281_vm1, %v2654_v0, %v2655_v5  ;;  %v2476_v39 = vld [vmem:[#allocation2 + $0x78] ss:$8 sps:$4 sm:$0xff]   ;;  %v6640_v8 = vunpack.c.l.bf16 %v2477_v36  ;;  %v2255_v34 = vsel %vm281_vm1, %v2253_v35, %v2254_v56  ;;  %v6646_v0 = vunpack.c.l.bf16 %v2086_v57  ;;  %v2098_v36 = vld [vmem:[#allocation2 + $0x6c] sm:$0x3] }
 0x308   :  { %7828 = vst [vmem:[#allocation61_spill] sm:$0xff] %v6634_v58  ;;  %7829 = vst [vmem:[#allocation31_spill] sm:$0xff] %v6636_v26  ;;  %v4477_v18 = vpack.i.bf16 %v2659_v47, %v2656_v49  ;;  %v6638_v33 = vunpack.c.l.bf16 %v2476_v39  ;;  %v6642_v29 = vunpack.c.h.bf16 %v2476_v39  ;;  %v2258_v5 = vsel %vm281_vm1, %v2256_v46, %v2257_v1 }
 0x309   :  { %v2479_v61 = vld [vmem:[#allocation2 + $0x84] sm:$0x3]  ;;  %7830 = vst [vmem:[#allocation32_spill] sm:$0xff] %v6646_v0  ;;  %v2247_v59 = vrot.slane %v6630_v63, 2  ;;  %v2649_v39 = vrot.slane %v6640_v8, 2  ;;  %v4497_v60 = vpack.i.bf16 %v2258_v5, %v2255_v34  ;;  %v2248_v35 = vrot.slane %v6634_v58, 2 }
 0x30a   :  { %4478 = vrot.lane.b32.xlu1 %v4477_v18, %s4854_s24  ;;  %v6650_v4 = vunpack.c.l.bf16 %v2479_v61  ;;  %v2648_v47 = vrot.slane %v6638_v33, 2  ;;  %v2651_v49 = vrot.slane %v6642_v29, 2  ;;  %v2250_v56 = vrot.slane %v6636_v26, 2  ;;  %v2091_v63 = vld [vmem:[#allocation2 + $0x50] ss:$8 sps:$4 sm:$0xff]  }
 0x30b   :  { %v2251_v46 = vrot.slane %v6646_v0, 2  ;;  %v6660_v61 = vunpack.c.l.bf16 %v2095_v13  ;;  %v6662_v18 = vunpack.c.l.bf16 %v2096_v15  ;;  %v6665_v14 = vsel %vm281_vm1, %v2247_v59, %v2248_v35  ;;  %v2094_v0 = vld [vmem:[#allocation2 + $0x5c] sm:$0x3]  ;;  %v2103_v58 = vld [vmem:[#allocation2 + $0x80] ss:$8 sps:$4 sm:$0xff]  }
 0x30c   :  { %v2650_v57 = vsel %vm281_vm1, %v2648_v47, %v2649_v39  ;;  %v2652_v1 = vrot.slane %v6650_v4, 2  ;;  %v6670_v5 = vunpack.c.h.bf16 %v2095_v13  ;;  %v6672_v26 = vunpack.c.l.bf16 %v2098_v36  ;;  %v2104_v13 = vld [vmem:[#allocation2 + $0x84] sm:$0x3] }
 0x30d   :  { %7831 = vst [vmem:[#allocation65_spill] sm:$0xff] %v6660_v61  ;;  %7832 = vst [vmem:[#allocation64_spill] sm:$0xff] %v6662_v18  ;;  %v6668_v34 = vsel %vm281_vm1, %v2250_v56, %v2251_v46  ;;  %v7835_v15 = vpack.i.bf16 %v6557_v62, %v6554_v2  ;;  %v2265_v39 = vrot.slane %v6660_v61, 2  ;;  %v2266_v35 = vrot.slane %v6662_v18, 2  ;;  %v2100_v61 = vld [vmem:[#allocation2 + $0x74] sm:$0x3] }
 0x30e   :  { %7833 = vst [vmem:[#allocation33_spill] sm:$0xff] %v6670_v5  ;;  %7834 = vst [vmem:[#allocation34_spill] sm:$0xff] %v6672_v26  ;;  %v2653_v47 = vsel %vm281_vm1, %v2651_v49, %v2652_v1  ;;  %v4492_v59 = vpack.i.bf16 %v6668_v34, %v6665_v14  ;;  %v2268_v36 = vrot.slane %v6670_v5, 2  ;;  %v2269_v46 = vrot.slane %v6672_v26, 2  ;;  %v2106_v49 = vld [vmem:[#allocation2 + $0x8c] sm:$0x3] }
 0x30f   :  { %4488 = vrot.lane.b32.xlu1 %v7835_v15, %s4854_s24  ;;  %v4472_v56 = vpack.i.bf16 %v2653_v47, %v2650_v57  ;;  %v6685_v23 = vunpack.c.l.bf16 %v2091_v63  ;;  %v2267_v1 = vsel %vm281_vm1, %v2265_v39, %v2266_v35  ;;  %v6688_v2 = vunpack.c.h.bf16 %v2091_v63  ;;  %v2099_v5 = vld [vmem:[#allocation2 + $0x70] ss:$8 sps:$4 sm:$0xff]   ;;  %v3219_v18 = vld [vmem:[#allocation2 + $0x20] ss:$8 sps:$4 sm:$0xff]  }
 0x310   :  { %v6690_v62 = vunpack.c.l.bf16 %v2094_v0  ;;  %v6692_v14 = vunpack.c.l.bf16 %v2103_v58  ;;  %v2270_v34 = vsel %vm281_vm1, %v2268_v36, %v2269_v46  ;;  %v6697_v47 = vunpack.c.l.bf16 %v2104_v13 }
 0x311   :  { %7836 = vst [vmem:[#allocation68_spill] sm:$0xff] %v6688_v2  ;;  %4473 = vrot.lane.b32.xlu0 %v4472_v56, %s4854_s24  ;;  %v2259_v57 = vrot.slane %v6685_v23, 2  ;;  %v6699_v15 = vunpack.c.h.bf16 %v2103_v58  ;;  %v4507_v63 = vpack.i.bf16 %v2270_v34, %v2267_v1  ;;  %v2262_v0 = vrot.slane %v6688_v2, 2  ;;  %v2102_v56 = vld [vmem:[#allocation2 + $0x7c] sm:$0x3] }
 0x312   :  { %7837 = vst [vmem:[#allocation67_spill] sm:$0xff] %v6692_v14  ;;  %7838 = vst [vmem:[#allocation35_spill] sm:$0xff] %v6697_v47  ;;  %v2263_v39 = vrot.slane %v6690_v62, 2  ;;  %v6704_v35 = vunpack.c.l.bf16 %v2106_v49  ;;  %v7841_v36 = vrot.slane %v6294_v19, 2  ;;  %v2277_v13 = vrot.slane %v6692_v14, 2 }
 0x313   :  { %7839 = vst [vmem:[#allocation36_spill] sm:$0xff] %v6699_v15  ;;  %4498 = vrot.lane.b32.xlu1 %v4497_v60, %s4854_s24  ;;  %v2278_v58 = vrot.slane %v6697_v47, 2  ;;  %v2280_v26 = vrot.slane %v6699_v15, 2  ;;  %v6714_v34 = vunpack.c.l.bf16 %v2099_v5  ;;  %v6716_v49 = vunpack.c.l.bf16 %v2100_v61  ;;  %v3220_v2 = vld [vmem:[#allocation2 + $0x24] sm:$0x3] }
 0x314   :  { %7840 = vst [vmem:[#allocation71_spill] sm:$0xff] %v6704_v35  ;;  %v2261_v46 = vsel %vm281_vm1, %v2259_v57, %v7841_v36  ;;  %v2264_v60 = vsel %vm281_vm1, %v2262_v0, %v2263_v39  ;;  %v2281_v1 = vrot.slane %v6704_v35, 2  ;;  %v7843_v57 = vpack.i.bf16 %v6612_v41, %v6601_v31  ;;  %v3222_v0 = vld [vmem:[#allocation2 + $0x2c] sm:$0x3]  ;;  %v3215_v41 = vld [vmem:[#allocation2 + $0x10] ss:$8 sps:$4 sm:$0xff]  }
 0x315   :  { %7842 = vst [vmem:[#allocation70_spill] sm:$0xff] %v6714_v34  ;;  %v4502_v36 = vpack.i.bf16 %v2264_v60, %v2261_v46  ;;  %v2279_v14 = vsel %vm281_vm1, %v2277_v13, %v2278_v58  ;;  %v6723_v47 = vunpack.c.h.bf16 %v2099_v5  ;;  %v6725_v15 = vunpack.c.l.bf16 %v2102_v56  ;;  %v3216_v31 = vld [vmem:[#allocation2 + $0x14] sm:$0x3] }
 0x316   :  { %4483 = vrot.lane.b32.xlu0 %v7843_v57, %s4854_s24  ;;  %v2282_v39 = vsel %vm281_vm1, %v2280_v26, %v2281_v1  ;;  %v2271_v61 = vrot.slane %v6714_v34, 2  ;;  %v2272_v35 = vrot.slane %v6716_v49, 2  ;;  %v6731_v19 = vunpack.c.l.bf16 %v3219_v18  ;;  %v3218_v1 = vld [vmem:[#allocation2 + $0x1c] sm:$0x3]  ;;  %v3228_v34 = vld [vmem:[#allocation2 + $0x44] sm:$0x3] }
 0x317   :  { %7844 = vst [vmem:[#allocation37_spill] sm:$0xff] %v6723_v47  ;;  %7845 = vst [vmem:[#allocation38_spill] sm:$0xff] %v6725_v15  ;;  %4508 = vrot.lane.b32.xlu1 %v4507_v63, %s4854_s24  ;;  %v4517_v46 = vpack.i.bf16 %v2282_v39, %v2279_v14  ;;  %v2274_v13 = vrot.slane %v6723_v47, 2  ;;  %v2275_v5 = vrot.slane %v6725_v15, 2  ;;  %v6735_v56 = vunpack.c.l.bf16 %v3220_v2  ;;  %v3227_v2 = vld [vmem:[#allocation2 + $0x40] ss:$8 sps:$4 sm:$0xff]  }
 0x318   :  { %7846 = vst [vmem:[#allocation74_spill] sm:$0xff] %v6731_v19  ;;  %v2273_v58 = vsel %vm281_vm1, %v2271_v61, %v2272_v35  ;;  %v6738_v63 = vunpack.c.h.bf16 %v3219_v18  ;;  %v6740_v26 = vunpack.c.l.bf16 %v3222_v0  ;;  %v3381_v60 = vrot.slane %v6731_v19, 2  ;;  %v3223_v19 = vld [vmem:[#allocation2 + $0x30] ss:$8 sps:$4 sm:$0xff]  }
 0x319   :  { %7847 = vst [vmem:[#allocation73_spill] sm:$0xff] %v6735_v56  ;;  %v2276_v57 = vsel %vm281_vm1, %v2274_v13, %v2275_v5  ;;  %v3382_v14 = vrot.slane %v6735_v56, 2  ;;  %v6746_v39 = vunpack.c.l.bf16 %v3215_v41  ;;  %v6748_v47 = vunpack.c.l.bf16 %v3216_v31  ;;  %v3224_v56 = vld [vmem:[#allocation2 + $0x34] sm:$0x3] }
 0x31a   :  { %7848 = vst [vmem:[#allocation39_spill] sm:$0xff] %v6738_v63  ;;  %7849 = vst [vmem:[#allocation40_spill] sm:$0xff] %v6740_v26  ;;  %4493 = vrot.lane.b32.xlu0 %v4492_v59, %s4854_s24  ;;  %v4512_v18 = vpack.i.bf16 %v2276_v57, %v2273_v58  ;;  %v3384_v35 = vrot.slane %v6738_v63, 2  ;;  %v3385_v0 = vrot.slane %v6740_v26, 2  ;;  %v6753_v61 = vunpack.c.h.bf16 %v3215_v41  ;;  %v3226_v41 = vld [vmem:[#allocation2 + $0x3c] sm:$0x3] }
 0x31b   :  { %7850 = vst [vmem:[#allocation42_spill] sm:$0xff] %v6746_v39  ;;  %4518 = vrot.lane.b32.xlu1 %v4517_v46, %s4854_s24  ;;  %v3383_v59 = vsel %vm281_vm1, %v3381_v60, %v3382_v14  ;;  %v6756_v13 = vunpack.c.l.bf16 %v3218_v1  ;;  %v3375_v5 = vrot.slane %v6746_v39, 2  ;;  %v3376_v31 = vrot.slane %v6748_v47, 2  ;;  %v3238_v39 = vld [vmem:[#allocation2 + $0x7c] sm:$0x3] }
 0x31c   :  { %7851 = vst [vmem:[#allocation41_spill] sm:$0xff] %v6753_v61  ;;  %v3386_v15 = vsel %vm281_vm1, %v3384_v35, %v3385_v0  ;;  %v3378_v46 = vrot.slane %v6753_v61, 2  ;;  %v6762_v58 = vunpack.c.l.bf16 %v3227_v2  ;;  %v6764_v57 = vunpack.c.l.bf16 %v3228_v34  ;;  %v3235_v34 = vld [vmem:[#allocation2 + $0x70] ss:$8 sps:$4 sm:$0xff]  }
 0x31d   :  { %7852 = vst [vmem:[#allocation77_spill] sm:$0xff] %v6756_v13  ;;  %v4527_v60 = vpack.i.bf16 %v3386_v15, %v3383_v59  ;;  %v3377_v1 = vsel %vm281_vm1, %v3375_v5, %v3376_v31  ;;  %v3379_v14 = vrot.slane %v6756_v13, 2  ;;  %v6769_v63 = vunpack.c.h.bf16 %v3227_v2  ;;  %v3236_v2 = vld [vmem:[#allocation2 + $0x74] sm:$0x3]  ;;  %v3231_v13 = vld [vmem:[#allocation2 + $0x60] ss:$8 sps:$4 sm:$0xff]  }
 0x31e   :  { %7853 = vst [vmem:[#allocation76_spill] sm:$0xff] %v6762_v58  ;;  %7854 = vst [vmem:[#allocation43_spill] sm:$0xff] %v6764_v57  ;;  %4503 = vrot.lane.b32.xlu0 %v4502_v36, %s4854_s24  ;;  %v3393_v26 = vrot.slane %v6762_v58, 2  ;;  %v3394_v35 = vrot.slane %v6764_v57, 2  ;;  %v6773_v0 = vunpack.c.l.bf16 %v3223_v19  ;;  %v6775_v61 = vunpack.c.l.bf16 %v3224_v56 }
 0x31f   :  { %7855 = vst [vmem:[#allocation44_spill] sm:$0xff] %v6769_v63  ;;  %4528 = vrot.lane.b32.xlu1 %v4527_v60, %s4854_s24  ;;  %v3380_v36 = vsel %vm281_vm1, %v3378_v46, %v3379_v14  ;;  %v3396_v15 = vrot.slane %v6769_v63, 2  ;;  %v6780_v59 = vunpack.c.h.bf16 %v3223_v19  ;;  %v6782_v5 = vunpack.c.l.bf16 %v3226_v41 }
 0x320   :  { %7856 = vst [vmem:[#allocation53_spill] sm:$0xff] %v6773_v0  ;;  %v4522_v31 = vpack.i.bf16 %v3380_v36, %v3377_v1  ;;  %v3395_v58 = vsel %vm281_vm1, %v3393_v26, %v3394_v35  ;;  %v3387_v57 = vrot.slane %v6773_v0, 2  ;;  %v3388_v56 = vrot.slane %v6775_v61, 2  ;;  %v3232_v1 = vld [vmem:[#allocation2 + $0x64] sm:$0x3] }
 0x321   :  { %7857 = vst [vmem:[#allocation54_spill] sm:$0xff] %v6780_v59  ;;  %7858 = vst [vmem:[#allocation55_spill] sm:$0xff] %v6782_v5  ;;  %v7859_v46 = vrot.slane %v6307_v7, 2  ;;  %v3390_v19 = vrot.slane %v6780_v59, 2  ;;  %v3391_v41 = vrot.slane %v6782_v5, 2  ;;  %v6793_v14 = vunpack.c.l.bf16 %v3235_v34 }
 0x322   :  { %4513 = vrot.lane.b32.xlu0 %v4512_v18, %s4854_s24  ;;  %v3389_v35 = vsel %vm281_vm1, %v3387_v57, %v3388_v56  ;;  %v6796_v36 = vunpack.c.l.bf16 %v3236_v2  ;;  %v6798_v63 = vunpack.c.h.bf16 %v3235_v34  ;;  %v3234_v0 = vld [vmem:[#allocation2 + $0x6c] sm:$0x3]  ;;  %v6801_v7 = vunpack.c.l.bf16 %v3238_v39  ;;  %v3243_v59 = vld [vmem:[#allocation2 + $0x90] ss:$8 sps:$4 sm:$0xff]   ;;  %v3244_v5 = vld [vmem:[#allocation2 + $0x94] sm:$0x3] }
 0x323   :  { %v3398_v60 = vsel %vm281_vm1, %v3396_v15, %v7859_v46  ;;  %7860 = vst [vmem:[#allocation56_spill] sm:$0xff] %v6793_v14  ;;  %v3392_v18 = vsel %vm281_vm1, %v3390_v19, %v3391_v41  ;;  %v3405_v15 = vrot.slane %v6793_v14, 2  ;;  %v6804_v46 = vunpack.c.l.bf16 %v3231_v13 }
 0x324   :  { %v4537_v26 = vpack.i.bf16 %v3398_v60, %v3395_v58  ;;  %7861 = vst [vmem:[#allocation57_spill] sm:$0xff] %v6796_v36  ;;  %7862 = vst [vmem:[#allocation59_spill] sm:$0xff] %v6798_v63  ;;  %v4532_v58 = vpack.i.bf16 %v3392_v18, %v3389_v35  ;;  %v3406_v57 = vrot.slane %v6796_v36, 2  ;;  %v3408_v2 = vrot.slane %v6798_v63, 2  ;;  %v3240_v63 = vld [vmem:[#allocation2 + $0x84] sm:$0x3] }
 0x325   :  { %7863 = vst [vmem:[#allocation58_spill] sm:$0xff] %v6801_v7  ;;  %7864 = vst [vmem:[#allocation45_spill] sm:$0xff] %v6804_v46  ;;  %v6809_v34 = vunpack.c.l.bf16 %v3232_v1  ;;  %v3409_v39 = vrot.slane %v6801_v7, 2  ;;  %v6813_v56 = vunpack.c.h.bf16 %v3231_v13  ;;  %v6815_v60 = vunpack.c.l.bf16 %v3234_v0  ;;  %v3239_v1 = vld [vmem:[#allocation2 + $0x80] ss:$8 sps:$4 sm:$0xff]  }
 0x326   :  { %4538 = vrot.lane.b32.xlu1 %v4537_v26, %s4854_s24  ;;  %4523 = vrot.lane.b32.xlu0 %v4522_v31, %s4854_s24  ;;  %v3399_v19 = vrot.slane %v6804_v46, 2  ;;  %v3407_v41 = vsel %vm281_vm1, %v3405_v15, %v3406_v57  ;;  %v6820_v35 = vunpack.c.l.bf16 %v3243_v59  ;;  %v6822_v18 = vunpack.c.l.bf16 %v3244_v5  ;;  %v3242_v7 = vld [vmem:[#allocation2 + $0x8c] sm:$0x3] }
 0x327   :  { %7865 = vst [vmem:[#allocation69_spill] sm:$0xff] %v6813_v56  ;;  %v3400_v26 = vrot.slane %v6809_v34, 2  ;;  %v3410_v31 = vsel %vm281_vm1, %v3408_v2, %v3409_v39  ;;  %v3402_v14 = vrot.slane %v6813_v56, 2  ;;  %v3403_v13 = vrot.slane %v6815_v60, 2 }
 0x328   :  { %7866 = vst [vmem:[#allocation72_spill] sm:$0xff] %v6820_v35  ;;  %7867 = vst [vmem:[#allocation75_spill] sm:$0xff] %v6822_v18  ;;  %v6827_v0 = vunpack.c.h.bf16 %v3243_v59  ;;  %v4547_v36 = vpack.i.bf16 %v3410_v31, %v3407_v41  ;;  %v3417_v57 = vrot.slane %v6820_v35, 2  ;;  %v3418_v46 = vrot.slane %v6822_v18, 2 }
 0x329   :  { %v3401_v15 = vsel %vm281_vm1, %v3399_v19, %v3400_v26  ;;  %v3404_v5 = vsel %vm281_vm1, %v3402_v14, %v3403_v13  ;;  %v6835_v39 = vunpack.c.l.bf16 %v3239_v1  ;;  %v6837_v56 = vunpack.c.l.bf16 %v3240_v63 }
 0x32a   :  { %7868 = vst [vmem:[#allocation48_spill] sm:$0xff] %v6827_v0  ;;  %4533 = vrot.lane.b32.xlu0 %v4532_v58, %s4854_s24  ;;  %v3420_v2 = vrot.slane %v6827_v0, 2  ;;  %4548 = vrot.lane.b32.xlu1 %v4547_v36, %s4854_s24  ;;  %v3419_v59 = vsel %vm281_vm1, %v3417_v57, %v3418_v46  ;;  %v6841_v41 = vunpack.c.h.bf16 %v3239_v1  ;;  %v6843_v19 = vunpack.c.l.bf16 %v3242_v7 }
 0x32b   :  { %v4542_v26 = vpack.i.bf16 %v3404_v5, %v3401_v15  ;;  %v7870_v31 = vrot.slane %v6309_v22, 2  ;;  %v3411_v14 = vrot.slane %v6835_v39, 2  ;;  %v3412_v13 = vrot.slane %v6837_v56, 2 }
 0x32c   :  { %7869 = vst [vmem:[#allocation78_spill] sm:$0xff] %v6841_v41  ;;  %v3414_v63 = vrot.slane %v6841_v41, 2  ;;  %v3415_v36 = vrot.slane %v6843_v19, 2  ;;  %v2684_v15 = vrot.slane %v6571_v54, 3  ;;  %v2685_v57 = vrot.slane %v6575_v52, 3 }
 0x32d   :  { %v3422_v58 = vsel %vm281_vm1, %v3420_v2, %v7870_v31  ;;  %v3413_v46 = vsel %vm281_vm1, %v3411_v14, %v3412_v13  ;;  %v2687_v5 = vrot.slane %v6573_v37, 3  ;;  %v2688_v2 = vrot.slane %v6581_v45, 3 }
 0x32e   :  { %v4557_v0 = vpack.i.bf16 %v3422_v58, %v3419_v59  ;;  %4543 = vrot.lane.b32.xlu0 %v4542_v26, %s4854_s24  ;;  %v3416_v7 = vsel %vm281_vm1, %v3414_v63, %v3415_v36  ;;  %v6862_v59 = vsel %vm2283_vm6, %v2684_v15, %v2685_v57  ;;  %v2573_v31 = vrot.slane %v6575_v52, 1 }
 0x32f   :  { %v4552_v1 = vpack.i.bf16 %v3416_v7, %v3413_v46  ;;  %v6865_v26 = vsel %vm2283_vm6, %v2687_v5, %v2688_v2  ;;  %v2575_v14 = vrot.slane %v6573_v37, 1  ;;  %v2576_v13 = vrot.slane %v6581_v45, 1 }
 0x330   :  { %4558 = vrot.lane.b32.xlu1 %v4557_v0, %s4854_s24  ;;  %v2572_v0 = vrot.slane %v6571_v54, 1  ;;  %v2696_v46 = vrot.slane %v6638_v33, 3  ;;  %v2697_v7 = vrot.slane %v6640_v8, 3  ;;  %v2699_v54 = vrot.slane %v6642_v29, 3 }
 0x331   :  { %v6877_v36 = vsel %vm232_vm0, %v2575_v14, %v2576_v13  ;;  %v2700_v52 = vrot.slane %v6650_v4, 3  ;;  %v2585_v45 = vrot.slane %v6640_v8, 1  ;;  %v2587_v15 = vrot.slane %v6642_v29, 1 }
 0x332   :  { %4553 = vrot.lane.b32.xlu0 %v4552_v1, %s4854_s24  ;;  %v6874_v63 = vsel %vm232_vm0, %v2572_v0, %v2573_v31  ;;  %v2584_v1 = vrot.slane %v6638_v33, 1  ;;  %v6885_v37 = vsel %vm2283_vm6, %v2696_v46, %v2697_v7  ;;  %v2588_v57 = vrot.slane %v6650_v4, 1 }
 0x333   :  { %v6891_v5 = vsel %vm2283_vm6, %v2699_v54, %v2700_v52  ;;  %v2549_v31 = vrot.slane %v6440_v48, 1  ;;  %v2552_v8 = vrot.slane %v6442_v6, 1  ;;  %v2667_v29 = vrot.slane %v6434_v12, 3 }
 0x334   :  { %v6896_v0 = vsel %vm232_vm0, %v2584_v1, %v2585_v45  ;;  %v6899_v33 = vsel %vm232_vm0, %v2587_v15, %v2588_v57  ;;  %v2670_v4 = vrot.slane %v6436_v38, 3  ;;  %v2548_v13 = vrot.slane %v6427_v27, 1 }
 0x335   :  { %v2551_v46 = vrot.slane %v6429_v9, 1  ;;  %v2666_v7 = vrot.slane %v6418_v28, 3  ;;  %v2669_v54 = vrot.slane %v6420_v21, 3  ;;  %v4610_v9 = vld [vmem:[#allocation13] sm:$0xff]   ;;  %v2555_v22 = vrot.slane %v6434_v12, 1 }
 0x336   :  { %v2550_v48 = vsel %vm232_vm0, %v2548_v13, %v2549_v31  ;;  %v2558_v35 = vrot.slane %v6436_v38, 1  ;;  %v2554_v31 = vrot.slane %v6418_v28, 1  ;;  %v2675_v28 = vrot.slane %v6480_v43, 3 }
 0x337   :  { %v2553_v6 = vsel %vm232_vm0, %v2551_v46, %v2552_v8  ;;  %v2668_v15 = vsel %vm2283_vm6, %v2666_v7, %v2667_v29  ;;  %v2671_v57 = vsel %vm2283_vm6, %v2669_v54, %v2670_v4  ;;  %v2557_v8 = vrot.slane %v6420_v21, 1  ;;  %v4612_v54 = vld [vmem:[#allocation13 + $0x10] sm:$0xff]  }
 0x338   :  { %v2791_v41 = vpack.c.bf16 %v2671_v57, %v2668_v15  ;;  %v2673_v29 = vrot.slane %v6486_v50, 3  ;;  %v2676_v4 = vrot.slane %v6488_v30, 3  ;;  %v2556_v12 = vsel %vm232_vm0, %v2554_v31, %v2555_v22 }
 0x339   :  { %v2559_v38 = vsel %vm232_vm0, %v2557_v8, %v2558_v35  ;;  %v2561_v22 = vrot.slane %v6486_v50, 1  ;;  %v2564_v35 = vrot.slane %v6488_v30, 1  ;;  %v2679_v15 = vrot.slane %v6462_v11, 3 }
 0x33a   :  { %v2682_v57 = vrot.slane %v6470_v20, 3 }
 0x35b   :  { %v4449_v45 = vpop.permute.xlu1 %4448 }
 0x35c   :  { %v4450_v18 = vunpack.i.l.bf16 %v4449_v45 }
 0x35d   :  { %v4444_v14 = vpop.permute.xlu0 %4443 }
 0x35e   :  { %v4446_v52 = vunpack.i.h.bf16 %v4444_v14  ;;  %v4445_v1 = vunpack.i.l.bf16 %v4444_v14  ;;  %v4451_v14 = vunpack.i.h.bf16 %v4449_v45  ;;  %v2774_v21 = vsel %vm394_vm2, %v2556_v12, %v4450_v18 }
 0x35f   :  { %v2560_v18 = vrot.slane %v6475_v3, 1  ;;  %v2567_v12 = vrot.slane %v6462_v11, 1 }
 0x360   :  { %v2772_v2 = vsel %vm394_vm2, %v2550_v48, %v4445_v1  ;;  %v2773_v27 = vsel %vm394_vm2, %v2553_v6, %v4446_v52  ;;  %v2775_v13 = vsel %vm394_vm2, %v2559_v38, %v4451_v14  ;;  %v2563_v6 = vrot.slane %v6480_v43, 1 }
 0x361   :  { %v2788_v58 = vpack.c.bf16 %v2773_v27, %v2772_v2  ;;  %v4611_v2 = vld [vmem:[#allocation13 + $0x8] sm:$0xff]   ;;  %v2790_v52 = vpack.c.bf16 %v2775_v13, %v2774_v21  ;;  %v4613_v27 = vld [vmem:[#allocation13 + $0x18] sm:$0xff]   ;;  %v2562_v50 = vsel %vm232_vm0, %v2560_v18, %v2561_v22  ;;  %v2570_v38 = vrot.slane %v6470_v20, 1 }
 0x362   :  { %v2565_v30 = vsel %vm232_vm0, %v2563_v6, %v2564_v35  ;;  %v4459_v31 = vpop.permute.xlu1 %4458  ;;  %v2566_v13 = vrot.slane %v6460_v42, 1  ;;  %v2691_v18 = vrot.slane %v6548_v25, 3  ;;  %v2694_v6 = vrot.slane %v6559_v16, 3 }
 0x363   :  { %2957 = vmatmul.mubr.bf16.vlgmr.msra.gmra.mrb[0].mxu1 %v2788_v58  ;;  %v2672_v58 = vrot.slane %v6475_v3, 3  ;;  %v2681_v3 = vrot.slane %v6468_v55, 3 }
 0x364   :  { %3118 = vmatpush1.bf16.msra.mxu1 %v4610_v9  ;;  %4117 = vmatprep.mubr.msk.bf16.mxu1 %vm394_vm2, %v2791_v41  ;;  %v4454_v46 = vpop.permute.xlu0 %4453  ;;  %v2677_v41 = vsel %vm2283_vm6, %v2675_v28, %v2676_v4  ;;  %v2678_v9 = vrot.slane %v6460_v42, 3  ;;  %v4614_v4 = vld [vmem:[#allocation13 + $0x20] sm:$0xff]   ;;  %v4460_v28 = vunpack.i.l.bf16 %v4459_v31  ;;  %v4616_v42 = vld [vmem:[#allocation13 + $0x30] sm:$0xff]  }
 0x365   :  { %3119 = vmatprep.subr.bf16.mxu1 %v7728_v32  ;;  %v2674_v7 = vsel %vm2283_vm6, %v2672_v58, %v2673_v29  ;;  %v4456_v1 = vunpack.i.h.bf16 %v4454_v46  ;;  %v4455_v45 = vunpack.i.l.bf16 %v4454_v46  ;;  %v2683_v29 = vsel %vm2283_vm6, %v2681_v3, %v2682_v57  ;;  %v4617_v57 = vld [vmem:[#allocation13 + $0x38] sm:$0xff]  }
 0x366   :  { %v2793_v48 = vpack.c.bf16 %v2677_v41, %v2674_v7  ;;  %v2680_v8 = vsel %vm2283_vm6, %v2678_v9, %v2679_v15  ;;  %v4461_v58 = vunpack.i.h.bf16 %v4459_v31  ;;  %v2569_v46 = vrot.slane %v6468_v55, 1  ;;  %v4615_v7 = vld [vmem:[#allocation13 + $0x28] sm:$0xff]   ;;  %v4618_v9 = vld [vmem:[#allocation13 + $0x40] sm:$0xff]  }
 0x367   :  { %v2776_v43 = vsel %vm394_vm2, %v2562_v50, %v4455_v45  ;;  %v2777_v14 = vsel %vm394_vm2, %v2565_v30, %v4456_v1  ;;  %v2795_v21 = vpack.c.bf16 %v2683_v29, %v2680_v8  ;;  %v2568_v41 = vsel %vm232_vm0, %v2566_v13, %v2567_v12  ;;  %v4619_v12 = vld [vmem:[#allocation13 + $0x48] sm:$0xff]  }
 0x368   :  { %3120 = vmatpush1.bf16.msra.mxu1 %v4611_v2  ;;  %v2792_v2 = vpack.c.bf16 %v2777_v14, %v2776_v43  ;;  %v2778_v11 = vsel %vm394_vm2, %v2568_v41, %v4460_v28  ;;  %v7871_v15 = vpack.c.bf16 %v6865_v26, %v6862_v59  ;;  %v2579_v3 = vrot.slane %v6548_v25, 1 }
 0x369   :  { %3121 = vmatprep.subr.bf16.mxu1 %v7728_v32  ;;  %v2582_v59 = vrot.slane %v6559_v16, 1  ;;  %v2702_v41 = vrot.slane %v6590_v17, 3 }
 0x36b   :  { %2965 = vmatmul.mubr.bf16.gmra.mrb[4].mxu1 %v2790_v52 }
 0x36c   :  { %4118 = vmatprep.mubr.msk.bf16.mxu1 %vm394_vm2, %v2793_v48  ;;  %3122 = vmatpush1.bf16.msra.mxu1 %v4612_v54  ;;  %v2571_v54 = vsel %vm232_vm0, %v2569_v46, %v2570_v38  ;;  %v2703_v46 = vrot.slane %v6607_v44, 3 }
 0x36d   :  { %3123 = vmatprep.subr.bf16.mxu1 %v7728_v32  ;;  %v2779_v20 = vsel %vm394_vm2, %v2571_v54, %v4461_v58  ;;  %v2705_v54 = vrot.slane %v6592_v40, 3 }
 0x36e   :  { %v2794_v55 = vpack.c.bf16 %v2779_v20, %v2778_v11  ;;  %v2704_v20 = vsel %vm2283_vm6, %v2702_v41, %v2703_v46  ;;  %v4622_v46 = vld [vmem:[#allocation13 + $0xc0] sm:$0xff]  }
 0x370   :  { %3124 = vmatpush1.bf16.msra.mxu1 %v4613_v27  ;;  %v2690_v27 = vrot.slane %v6546_v51, 3 }
 0x371   :  { %3125 = vmatprep.subr.bf16.mxu1 %v7728_v32 }
 0x372   :  { %v2692_v50 = vsel %vm2283_vm6, %v2690_v27, %v2691_v18 }
 0x373   :  { %2973 = vmatmul.mubr.bf16.gmra.mrb[8].mxu1 %v2792_v2  ;;  %v2581_v2 = vrot.slane %v6550_v53, 1 }
 0x374   :  { %4119 = vmatprep.mubr.msk.bf16.mxu1 %vm394_vm2, %v2795_v21  ;;  %3126 = vmatpush1.bf16.msra.mxu1 %v4614_v4  ;;  %v2578_v4 = vrot.slane %v6546_v51, 1  ;;  %v4620_v21 = vld [vmem:[#allocation13 + $0x50] sm:$0xff]  }
 0x375   :  { %3127 = vmatprep.subr.bf16.mxu1 %v7728_v32  ;;  %v2583_v16 = vsel %vm232_vm0, %v2581_v2, %v2582_v59 }
 0x376   :  { %v2580_v25 = vsel %vm232_vm0, %v2578_v4, %v2579_v3  ;;  %v7877_v4 = vld [vmem:[#allocation27_spill] sm:$0xff] }
 0x377   :  { %v2294_v2 = vrot.slane %v7877_v4, 3 }
 0x378   :  { %v4464_v52 = vpop.permute.xlu0 %4463  ;;  %3128 = vmatpush1.bf16.msra.mxu1 %v4615_v7  ;;  %v2706_v7 = vrot.slane %v6515_v24, 3 }
 0x379   :  { %v4466_v22 = vunpack.i.h.bf16 %v4464_v52  ;;  %v4465_v35 = vunpack.i.l.bf16 %v4464_v52  ;;  %3129 = vmatprep.subr.bf16.mxu1 %v7728_v32 }
 0x37a   :  { %v2707_v52 = vsel %vm2283_vm6, %v2705_v54, %v2706_v7 }
 0x37b   :  { %v2780_v1 = vsel %vm394_vm2, %v6874_v63, %v4465_v35  ;;  %v2781_v45 = vsel %vm394_vm2, %v6877_v36, %v4466_v22  ;;  %2981 = vmatmul.mubr.bf16.gmra.mrb[12].mxu1 %v2794_v55  ;;  %v2693_v63 = vrot.slane %v6550_v53, 3  ;;  %v4469_v36 = vpop.permute.xlu1 %4468  ;;  %v2591_v22 = vrot.slane %v6607_v44, 1 }
 0x37c   :  { %v2796_v48 = vpack.c.bf16 %v2781_v45, %v2780_v1  ;;  %4120 = vmatprep.mubr.msk.bf16.mxu1 %vm394_vm2, %v7871_v15  ;;  %3130 = vmatpush1.bf16.msra.mxu1 %v4616_v42  ;;  %v4471_v26 = vunpack.i.h.bf16 %v4469_v36  ;;  %v4470_v43 = vunpack.i.l.bf16 %v4469_v36  ;;  %v2803_v42 = vpack.c.bf16 %v2707_v52, %v2704_v20 }
 0x37d   :  { %3131 = vmatprep.subr.bf16.mxu1 %v7728_v32  ;;  %v2695_v30 = vsel %vm2283_vm6, %v2693_v63, %v2694_v6  ;;  %v2590_v55 = vrot.slane %v6590_v17, 1  ;;  %v2593_v1 = vrot.slane %v6592_v40, 1  ;;  %v2288_v45 = vrot.slane %v6578_v10, 3  ;;  %v7874_v6 = vld [vmem:[#allocation28_spill] sm:$0xff] }
 0x37e   :  { %v2799_v31 = vpack.c.bf16 %v2695_v30, %v2692_v50  ;;  %v2782_v51 = vsel %vm394_vm2, %v2580_v25, %v4470_v43  ;;  %v2783_v53 = vsel %vm394_vm2, %v2583_v16, %v4471_v26  ;;  %v2284_v15 = vrot.slane %v7874_v6, 3 }
 0x37f   :  { %v2798_v13 = vpack.c.bf16 %v2783_v53, %v2782_v51  ;;  %v4479_v11 = vpop.permute.xlu1 %4478  ;;  %v2592_v44 = vsel %vm232_vm0, %v2590_v55, %v2591_v22  ;;  %v2171_v30 = vrot.slane %v7874_v6, 1  ;;  %v7880_v22 = vld [vmem:[#allocation61_spill] sm:$0xff] }
 0x380   :  { %3132 = vmatpush1.bf16.msra.mxu1 %v4617_v57  ;;  %v4480_v35 = vunpack.i.l.bf16 %v4479_v11  ;;  %v7875_v57 = vld [vmem:[#allocation60_spill] sm:$0xff] }
 0x381   :  { %3133 = vmatprep.subr.bf16.mxu1 %v7728_v32  ;;  %v2287_v27 = vrot.slane %v7875_v57, 3 }
 0x382   :  { %v2786_v63 = vsel %vm394_vm2, %v2592_v44, %v4480_v35 }
 0x383   :  { %v4474_v14 = vpop.permute.xlu0 %4473  ;;  %2989 = vmatmul.mubr.bf16.gmra.mrb[16].mxu1 %v2796_v48  ;;  %v7873_v48 = vld [vmem:[#allocation47_spill] sm:$0xff]  ;;  %v2289_v40 = vsel %vm2283_vm6, %v2287_v27, %v2288_v45  ;;  %v7882_v45 = vld [vmem:[#allocation62_spill] sm:$0xff] }
 0x384   :  { %v4476_v8 = vunpack.i.h.bf16 %v4474_v14  ;;  %v4475_v29 = vunpack.i.l.bf16 %v4474_v14  ;;  %4121 = vmatprep.mubr.msk.bf16.mxu1 %vm394_vm2, %v2799_v31  ;;  %3134 = vmatpush1.bf16.msra.mxu1 %v4618_v9  ;;  %v2285_v18 = vrot.slane %v7873_v48, 3  ;;  %v2172_v50 = vrot.slane %v7873_v48, 1 }
 0x385   :  { %3135 = vmatprep.subr.bf16.mxu1 %v7728_v32  ;;  %v2175_v9 = vrot.slane %v6578_v10, 1  ;;  %v2174_v31 = vrot.slane %v7875_v57, 1  ;;  %v7878_v10 = vld [vmem:[#allocation52_spill] sm:$0xff]  ;;  %v2296_v48 = vrot.slane %v7882_v45, 3 }
 0x386   :  { %v2784_v38 = vsel %vm394_vm2, %v6896_v0, %v4475_v29  ;;  %v2785_v58 = vsel %vm394_vm2, %v6899_v33, %v4476_v8  ;;  %v7872_v0 = vpack.c.bf16 %v6891_v5, %v6885_v37  ;;  %v4621_v33 = vld [vmem:[#allocation13 + $0x58] sm:$0xff]   ;;  %v2594_v37 = vrot.slane %v6515_v24, 1  ;;  %v7876_v8 = vld [vmem:[#allocation25_spill] sm:$0xff] }
 0x387   :  { %v2800_v28 = vpack.c.bf16 %v2785_v58, %v2784_v38  ;;  %v4481_v5 = vunpack.i.h.bf16 %v4479_v11  ;;  %v2286_v59 = vsel %vm2283_vm6, %v2284_v15, %v2285_v18  ;;  %v2291_v29 = vrot.slane %v7876_v8, 3  ;;  %v7879_v38 = vld [vmem:[#allocation26_spill] sm:$0xff]  ;;  %v7883_v18 = vld [vmem:[#allocation31_spill] sm:$0xff] }
 0x388   :  { %3136 = vmatpush1.bf16.msra.mxu1 %v4619_v12  ;;  %v2595_v24 = vsel %vm232_vm0, %v2593_v1, %v2594_v37  ;;  %v4484_v36 = vpop.permute.xlu0 %4483  ;;  %v2413_v14 = vpack.c.bf16 %v2289_v40, %v2286_v59  ;;  %v2173_v12 = vsel %vm232_vm0, %v2171_v30, %v2172_v50  ;;  %v2176_v25 = vsel %vm232_vm0, %v2174_v31, %v2175_v9 }
 0x389   :  { %3137 = vmatprep.subr.bf16.mxu1 %v7728_v32  ;;  %v2787_v17 = vsel %vm394_vm2, %v2595_v24, %v4481_v5  ;;  %v4486_v26 = vunpack.i.h.bf16 %v4484_v36  ;;  %v4485_v43 = vunpack.i.l.bf16 %v4484_v36  ;;  %v2290_v16 = vrot.slane %v7878_v10, 3  ;;  %v7881_v5 = vld [vmem:[#allocation32_spill] sm:$0xff] }
 0x38a   :  { %v2802_v3 = vpack.c.bf16 %v2787_v17, %v2786_v63  ;;  %v2293_v58 = vrot.slane %v7879_v38, 3  ;;  %v2177_v20 = vrot.slane %v7878_v10, 1  ;;  %v2180_v52 = vrot.slane %v7879_v38, 1  ;;  %v4624_v63 = vld [vmem:[#allocation13 + $0xd0] sm:$0xff]  }
 0x38b   :  { %2997 = vmatmul.mubr.bf16.gmra.mrb[20].mxu1 %v2798_v13  ;;  %v2396_v51 = vsel %vm394_vm2, %v2173_v12, %v4485_v43  ;;  %v2397_v53 = vsel %vm394_vm2, %v2176_v25, %v4486_v26  ;;  %v2297_v37 = vrot.slane %v7880_v22, 3  ;;  %v2300_v35 = vrot.slane %v7881_v5, 3  ;;  %v7884_v26 = vld [vmem:[#allocation30_spill] sm:$0xff]  ;;  %v7887_v25 = vld [vmem:[#allocation63_spill] sm:$0xff] }
 0x38c   :  { %4122 = vmatprep.mubr.msk.bf16.mxu1 %vm394_vm2, %v7872_v0  ;;  %3138 = vmatpush1.bf16.msra.mxu1 %v4620_v21  ;;  %v2292_v21 = vsel %vm2283_vm6, %v2290_v16, %v2291_v29  ;;  %v2295_v13 = vsel %vm2283_vm6, %v2293_v58, %v2294_v2  ;;  %v2412_v7 = vpack.c.bf16 %v2397_v53, %v2396_v51  ;;  %v2178_v0 = vrot.slane %v7876_v8, 1  ;;  %v4494_v15 = vpop.permute.xlu0 %4493  ;;  %v4625_v8 = vld [vmem:[#allocation13 + $0xd8] sm:$0xff]   ;;  %v7886_v2 = vld [vmem:[#allocation29_spill] sm:$0xff] }
 0x38d   :  { %3139 = vmatprep.subr.bf16.mxu1 %v7728_v32  ;;  %v2415_v11 = vpack.c.bf16 %v2295_v13, %v2292_v21  ;;  %v2299_v44 = vrot.slane %v7883_v18, 3  ;;  %v2298_v57 = vsel %vm2283_vm6, %v2296_v48, %v2297_v37  ;;  %v2184_v36 = vrot.slane %v7880_v22, 1 }
 0x38e   :  { %v2179_v55 = vsel %vm232_vm0, %v2177_v20, %v2178_v0  ;;  %v2187_v40 = vrot.slane %v7881_v5, 1  ;;  %v4496_v50 = vunpack.i.h.bf16 %v4494_v15  ;;  %v4495_v30 = vunpack.i.l.bf16 %v4494_v15  ;;  %v7888_v5 = vld [vmem:[#allocation49_spill] sm:$0xff] }
 0x38f   :  { %v2301_v27 = vsel %vm2283_vm6, %v2299_v44, %v2300_v35  ;;  %v2186_v59 = vrot.slane %v7883_v18, 1  ;;  %v2303_v43 = vrot.slane %v7884_v26, 3  ;;  %v2302_v12 = vrot.slane %v7886_v2, 3 }
 0x390   :  { %3140 = vmatpush1.bf16.msra.mxu1 %v4621_v33  ;;  %v2181_v33 = vrot.slane %v7877_v4, 1  ;;  %v2417_v9 = vpack.c.bf16 %v2301_v27, %v2298_v57  ;;  %v2305_v10 = vrot.slane %v7887_v25, 3  ;;  %v2190_v13 = vrot.slane %v7884_v26, 1  ;;  %v4504_v48 = vpop.permute.xlu0 %4503 }
 0x391   :  { %3687 = vmatprep.subr.bf16.mxu1 %v7728_v32  ;;  %v2188_v4 = vsel %vm232_vm0, %v2186_v59, %v2187_v40  ;;  %v2304_v51 = vsel %vm2283_vm6, %v2302_v12, %v2303_v43  ;;  %v2308_v20 = vrot.slane %v6685_v23, 3  ;;  %v2309_v35 = vrot.slane %v7888_v5, 3  ;;  %v7892_v43 = vld [vmem:[#allocation65_spill] sm:$0xff] }
 0x392   :  { %v2182_v1 = vsel %vm232_vm0, %v2180_v52, %v2181_v33  ;;  %v2401_v38 = vsel %vm394_vm2, %v2188_v4, %v4496_v50  ;;  %v4627_v52 = vld [vmem:[#allocation13 + $0xe8] sm:$0xff]   ;;  %v2195_v44 = vrot.slane %v6685_v23, 1  ;;  %v2196_v57 = vrot.slane %v7888_v5, 1  ;;  %v7890_v50 = vld [vmem:[#allocation64_spill] sm:$0xff] }
 0x393   :  { %3005 = vmatmul.mubr.bf16.gmra.mrb[24].mxu1 %v2800_v28  ;;  %v4489_v28 = vpop.permute.xlu1 %4488  ;;  %v2310_v15 = vsel %vm2283_vm6, %v2308_v20, %v2309_v35  ;;  %v2199_v27 = vrot.slane %v6690_v62, 1  ;;  %v7896_v20 = vld [vmem:[#allocation37_spill] sm:$0xff] }
 0x394   :  { %4123 = vmatprep.mubr.msk.bf16.mxu1 %vm394_vm2, %v2803_v42  ;;  %v4491_v41 = vunpack.i.h.bf16 %v4489_v28  ;;  %v4490_v54 = vunpack.i.l.bf16 %v4489_v28  ;;  %v4623_v42 = vld [vmem:[#allocation13 + $0xc8] sm:$0xff]   ;;  %v4626_v28 = vld [vmem:[#allocation13 + $0xe0] sm:$0xff]   ;;  %v2197_v59 = vsel %vm232_vm0, %v2195_v44, %v2196_v57  ;;  %v4514_v5 = vpop.permute.xlu0 %4513  ;;  %v7897_v57 = vld [vmem:[#allocation35_spill] sm:$0xff] }
 0x395   :  { %v4515_v44 = vunpack.i.l.bf16 %v4514_v5 }
 0x396   :  { %v2398_v24 = vsel %vm394_vm2, %v2179_v55, %v4490_v54  ;;  %v2399_v6 = vsel %vm394_vm2, %v2182_v1, %v4491_v41  ;;  %v2189_v41 = vrot.slane %v7886_v2, 1  ;;  %v2192_v54 = vrot.slane %v7887_v25, 1  ;;  %v4630_v25 = vld [vmem:[#allocation13 + $0x100] sm:$0xff]  }
 0x397   :  { %v2414_v17 = vpack.c.bf16 %v2399_v6, %v2398_v24  ;;  %v4499_v58 = vpop.permute.xlu1 %4498  ;;  %v4628_v24 = vld [vmem:[#allocation13 + $0xf0] sm:$0xff]  }
 0x398   :  { %v4500_v0 = vunpack.i.l.bf16 %v4499_v58  ;;  %v2191_v22 = vsel %vm232_vm0, %v2189_v41, %v2190_v13  ;;  %v2321_v13 = vrot.slane %v6716_v49, 3 }
 0x39a   :  { %v2402_v1 = vsel %vm394_vm2, %v2191_v22, %v4500_v0  ;;  %v4631_v0 = vld [vmem:[#allocation13 + $0x108] sm:$0xff]  }
 0x39b   :  { %3013 = vmatmul.mubr.bf16.gmra.mrb[28].mxu1 %v2802_v3  ;;  %v2183_v3 = vrot.slane %v7882_v45, 1  ;;  %v4509_v4 = vpop.permute.xlu1 %4508 }
 0x39c   :  { %4136 = vmatprep.mubr.msk.bf16.mxu1 %vm394_vm2, %v2413_v14  ;;  %v7885_v14 = vld [vmem:[#allocation66_spill] sm:$0xff] }
 0x39d   :  { %v2306_v31 = vrot.slane %v7885_v14, 3  ;;  %v2185_v29 = vsel %vm232_vm0, %v2183_v3, %v2184_v36  ;;  %v4629_v3 = vld [vmem:[#allocation13 + $0xf8] sm:$0xff]  }
 0x39e   :  { %v2400_v16 = vsel %vm394_vm2, %v2185_v29, %v4495_v30  ;;  %v2315_v30 = vrot.slane %v7890_v50, 3 }
 0x39f   :  { %v2307_v53 = vsel %vm2283_vm6, %v2305_v10, %v2306_v31  ;;  %v2416_v21 = vpack.c.bf16 %v2401_v38, %v2400_v16  ;;  %v2202_v16 = vrot.slane %v7890_v50, 1  ;;  %v7899_v50 = vld [vmem:[#allocation67_spill] sm:$0xff] }
 0x3a0   :  { %v2419_v33 = vpack.c.bf16 %v2307_v53, %v2304_v51  ;;  %v4510_v51 = vunpack.i.l.bf16 %v4509_v4 }
 0x3a3   :  { %3150 = vmatmul.mubr.bf16.vlgmr.msra.gmra.mrb[0].mxu1 %v2412_v7  ;;  %v4501_v7 = vunpack.i.h.bf16 %v4499_v58  ;;  %v4511_v58 = vunpack.i.h.bf16 %v4509_v4 }
 0x3a4   :  { %3688 = vmatpush1.bf16.msra.mxu1 %v4622_v46  ;;  %4137 = vmatprep.mubr.msk.bf16.mxu1 %vm394_vm2, %v2415_v11  ;;  %v2193_v46 = vrot.slane %v7885_v14, 1  ;;  %v2312_v11 = vrot.slane %v6690_v62, 3  ;;  %v2314_v62 = vrot.slane %v7892_v43, 3  ;;  %v7893_v14 = vld [vmem:[#allocation33_spill] sm:$0xff] }
 0x3a5   :  { %3689 = vmatprep.subr.bf16.mxu1 %v7728_v32  ;;  %v2317_v31 = vrot.slane %v7893_v14, 3 }
 0x3a6   :  { %v2194_v37 = vsel %vm232_vm0, %v2192_v54, %v2193_v46  ;;  %v2316_v2 = vsel %vm2283_vm6, %v2314_v62, %v2315_v30  ;;  %v7894_v46 = vld [vmem:[#allocation38_spill] sm:$0xff]  ;;  %v2326_v30 = vrot.slane %v7899_v50, 3 }
 0x3a7   :  { %v2403_v45 = vsel %vm394_vm2, %v2194_v37, %v4501_v7  ;;  %v2324_v7 = vrot.slane %v7894_v46, 3  ;;  %v7895_v54 = vld [vmem:[#allocation70_spill] sm:$0xff] }
 0x3a8   :  { %3690 = vmatpush1.bf16.msra.mxu1 %v4623_v42  ;;  %v7889_v42 = vld [vmem:[#allocation68_spill] sm:$0xff]  ;;  %v2418_v6 = vpack.c.bf16 %v2403_v45, %v2402_v1  ;;  %v2208_v45 = vrot.slane %v6716_v49, 1 }
 0x3a9   :  { %3691 = vmatprep.subr.bf16.mxu1 %v7728_v32  ;;  %v2311_v55 = vrot.slane %v7889_v42, 3  ;;  %v2198_v40 = vrot.slane %v7889_v42, 1  ;;  %v4633_v49 = vld [vmem:[#allocation13 + $0x118] sm:$0xff]  }
 0x3ab   :  { %3158 = vmatmul.mubr.bf16.gmra.mrb[4].mxu1 %v2414_v17  ;;  %v2313_v18 = vsel %vm2283_vm6, %v2311_v55, %v2312_v11  ;;  %v4505_v17 = vunpack.i.l.bf16 %v4504_v48  ;;  %v2200_v26 = vsel %vm232_vm0, %v2198_v40, %v2199_v27  ;;  %v2320_v11 = vrot.slane %v7895_v54, 3  ;;  %v4632_v55 = vld [vmem:[#allocation13 + $0x110] sm:$0xff]  }
 0x3ac   :  { %4138 = vmatprep.mubr.msk.bf16.mxu1 %vm394_vm2, %v2417_v9  ;;  %3692 = vmatpush1.bf16.msra.mxu1 %v4624_v63  ;;  %v4506_v63 = vunpack.i.h.bf16 %v4504_v48  ;;  %v2421_v36 = vpack.c.bf16 %v2313_v18, %v2310_v15  ;;  %v7891_v9 = vld [vmem:[#allocation34_spill] sm:$0xff]  ;;  %v2211_v48 = vrot.slane %v7894_v46, 1  ;;  %v4516_v18 = vunpack.i.h.bf16 %v4514_v5 }
 0x3ad   :  { %3693 = vmatprep.subr.bf16.mxu1 %v7728_v32  ;;  %v2318_v23 = vrot.slane %v7891_v9, 3  ;;  %v2205_v38 = vrot.slane %v7891_v9, 1  ;;  %v2322_v35 = vsel %vm2283_vm6, %v2320_v11, %v2321_v13  ;;  %v2210_v15 = vrot.slane %v7896_v20, 1  ;;  %v7900_v9 = vld [vmem:[#allocation36_spill] sm:$0xff] }
 0x3ae   :  { %v2405_v29 = vsel %vm394_vm2, %v2200_v26, %v4506_v63  ;;  %v2327_v27 = vrot.slane %v7897_v57, 3  ;;  %v7898_v63 = vld [vmem:[#allocation71_spill] sm:$0xff]  ;;  %v4519_v26 = vpop.permute.xlu1 %4518 }
 0x3af   :  { %v2319_v12 = vsel %vm2283_vm6, %v2317_v31, %v2318_v23  ;;  %v2212_v40 = vsel %vm232_vm0, %v2210_v15, %v2211_v48  ;;  %v2329_v23 = vrot.slane %v7900_v9, 3  ;;  %v2214_v31 = vrot.slane %v7897_v57, 1  ;;  %v7906_v48 = vld [vmem:[#allocation74_spill] sm:$0xff] }
 0x3b0   :  { %3694 = vmatpush1.bf16.msra.mxu1 %v4625_v8  ;;  %v2404_v8 = vsel %vm394_vm2, %v2197_v59, %v4505_v17  ;;  %v2423_v53 = vpack.c.bf16 %v2319_v12, %v2316_v2  ;;  %v2330_v17 = vrot.slane %v7898_v63, 3  ;;  %v2409_v59 = vsel %vm394_vm2, %v2212_v40, %v4516_v18 }
 0x3b1   :  { %3695 = vmatprep.subr.bf16.mxu1 %v7728_v32  ;;  %v2420_v10 = vpack.c.bf16 %v2405_v29, %v2404_v8  ;;  %v2217_v8 = vrot.slane %v7898_v63, 1  ;;  %v4521_v29 = vunpack.i.h.bf16 %v4519_v26  ;;  %v4520_v4 = vunpack.i.l.bf16 %v4519_v26 }
 0x3b2   :  { %v2331_v62 = vsel %vm2283_vm6, %v2329_v23, %v2330_v17  ;;  %v2216_v12 = vrot.slane %v7900_v9, 1  ;;  %v3429_v18 = vrot.slane %v7906_v48, 3  ;;  %v4529_v57 = vpop.permute.xlu1 %4528  ;;  %v3317_v9 = vrot.slane %v7906_v48, 1 }
 0x3b3   :  { %3166 = vmatmul.mubr.bf16.gmra.mrb[8].mxu1 %v2416_v21  ;;  %v2204_v21 = vrot.slane %v7893_v14, 1  ;;  %v4531_v40 = vunpack.i.h.bf16 %v4529_v57 }
 0x3b4   :  { %4139 = vmatprep.mubr.msk.bf16.mxu1 %vm394_vm2, %v2419_v33  ;;  %3696 = vmatpush1.bf16.msra.mxu1 %v4626_v28  ;;  %v2201_v28 = vrot.slane %v7892_v43, 1  ;;  %v2328_v43 = vsel %vm2283_vm6, %v2326_v30, %v2327_v27 }
 0x3b5   :  { %3697 = vmatprep.subr.bf16.mxu1 %v7728_v32  ;;  %v2206_v41 = vsel %vm232_vm0, %v2204_v21, %v2205_v38  ;;  %v2427_v2 = vpack.c.bf16 %v2331_v62, %v2328_v43 }
 0x3b6   :  { %v2203_v33 = vsel %vm232_vm0, %v2201_v28, %v2202_v16  ;;  %v2407_v37 = vsel %vm394_vm2, %v2206_v41, %v4511_v58  ;;  %v2218_v58 = vsel %vm232_vm0, %v2216_v12, %v2217_v8  ;;  %v7903_v28 = vld [vmem:[#allocation41_spill] sm:$0xff]  ;;  %v3312_v41 = vrot.slane %v6748_v47, 1  ;;  %v7910_v8 = vld [vmem:[#allocation54_spill] sm:$0xff] }
 0x3b7   :  { %v2406_v22 = vsel %vm394_vm2, %v2203_v33, %v4510_v51  ;;  %v7902_v51 = vld [vmem:[#allocation42_spill] sm:$0xff]  ;;  %v3426_v21 = vrot.slane %v7903_v28, 3  ;;  %v2411_v46 = vsel %vm394_vm2, %v2218_v58, %v4521_v29  ;;  %v3314_v5 = vrot.slane %v7903_v28, 1 }
 0x3b8   :  { %3698 = vmatpush1.bf16.msra.mxu1 %v4627_v52  ;;  %v2323_v52 = vrot.slane %v7896_v20, 3  ;;  %v2422_v1 = vpack.c.bf16 %v2407_v37, %v2406_v22  ;;  %v3311_v37 = vrot.slane %v7902_v51, 1  ;;  %v3438_v29 = vrot.slane %v7910_v8, 3 }
 0x3b9   :  { %3699 = vmatprep.subr.bf16.mxu1 %v7728_v32 }
 0x3ba   :  { %v2325_v42 = vsel %vm2283_vm6, %v2323_v52, %v2324_v7  ;;  %v4524_v7 = vpop.permute.xlu0 %4523 }
 0x3bb   :  { %3174 = vmatmul.mubr.bf16.gmra.mrb[12].mxu1 %v2418_v6  ;;  %v2207_v6 = vrot.slane %v7895_v54, 1  ;;  %v4526_v20 = vunpack.i.h.bf16 %v4524_v7  ;;  %v4525_v52 = vunpack.i.l.bf16 %v4524_v7  ;;  %v7912_v7 = vld [vmem:[#allocation76_spill] sm:$0xff] }
 0x3bc   :  { %4140 = vmatprep.mubr.msk.bf16.mxu1 %vm394_vm2, %v2421_v36  ;;  %3700 = vmatpush1.bf16.msra.mxu1 %v4628_v24  ;;  %v2425_v24 = vpack.c.bf16 %v2325_v42, %v2322_v35  ;;  %v7904_v35 = vld [vmem:[#allocation73_spill] sm:$0xff] }
 0x3bd   :  { %3701 = vmatprep.subr.bf16.mxu1 %v7728_v32  ;;  %v2209_v36 = vsel %vm232_vm0, %v2207_v6, %v2208_v45  ;;  %v3430_v42 = vrot.slane %v7904_v35, 3  ;;  %v3313_v45 = vsel %vm232_vm0, %v3311_v37, %v3312_v41  ;;  %v7913_v41 = vld [vmem:[#allocation44_spill] sm:$0xff]  ;;  %v4539_v37 = vpop.permute.xlu1 %4538 }
 0x3be   :  { %v3535_v15 = vsel %vm394_vm2, %v3313_v45, %v4525_v52  ;;  %v4540_v48 = vunpack.i.l.bf16 %v4539_v37 }
 0x3bf   :  { %v3431_v27 = vsel %vm2283_vm6, %v3429_v18, %v3430_v42 }
 0x3c0   :  { %3702 = vmatpush1.bf16.msra.mxu1 %v4629_v3  ;;  %v2408_v3 = vsel %vm394_vm2, %v2209_v36, %v4515_v44  ;;  %v7907_v44 = vld [vmem:[#allocation39_spill] sm:$0xff] }
 0x3c1   :  { %3703 = vmatprep.subr.bf16.mxu1 %v7728_v32  ;;  %v2424_v14 = vpack.c.bf16 %v2409_v59, %v2408_v3  ;;  %v3320_v23 = vrot.slane %v7907_v44, 1  ;;  %v3436_v3 = vrot.slane %v6775_v61, 3  ;;  %v7908_v59 = vld [vmem:[#allocation55_spill] sm:$0xff] }
 0x3c2   :  { %v3439_v26 = vrot.slane %v7908_v59, 3 }
 0x3c3   :  { %3182 = vmatmul.mubr.bf16.gmra.mrb[16].mxu1 %v2420_v10  ;;  %v7901_v10 = vld [vmem:[#allocation77_spill] sm:$0xff] }
 0x3c4   :  { %4141 = vmatprep.mubr.msk.bf16.mxu1 %vm394_vm2, %v2423_v53  ;;  %3704 = vmatpush1.bf16.msra.mxu1 %v4630_v25  ;;  %v3424_v25 = vrot.slane %v6748_v47, 3  ;;  %v3427_v16 = vrot.slane %v7901_v10, 3  ;;  %v3423_v53 = vrot.slane %v7902_v51, 3  ;;  %v3315_v54 = vrot.slane %v7901_v10, 1 }
 0x3c5   :  { %3705 = vmatprep.subr.bf16.mxu1 %v7728_v32 }
 0x3c6   :  { %v3428_v33 = vsel %vm2283_vm6, %v3426_v21, %v3427_v16  ;;  %v3316_v47 = vsel %vm232_vm0, %v3314_v5, %v3315_v54  ;;  %v3324_v16 = vrot.slane %v6775_v61, 1  ;;  %v3326_v21 = vrot.slane %v7910_v8, 1  ;;  %v7917_v8 = vld [vmem:[#allocation57_spill] sm:$0xff] }
 0x3c7   :  { %v3536_v6 = vsel %vm394_vm2, %v3316_v47, %v4526_v20  ;;  %v3444_v54 = vrot.slane %v7913_v41, 3  ;;  %v4541_v47 = vunpack.i.h.bf16 %v4539_v37 }
 0x3c8   :  { %3706 = vmatpush1.bf16.msra.mxu1 %v4631_v0  ;;  %v3425_v0 = vsel %vm2283_vm6, %v3423_v53, %v3424_v25  ;;  %v3551_v17 = vpack.c.bf16 %v3536_v6, %v3535_v15  ;;  %v3440_v25 = vsel %vm2283_vm6, %v3438_v29, %v3439_v26  ;;  %v3451_v6 = vrot.slane %v6815_v60, 3 }
 0x3c9   :  { %3707 = vmatprep.subr.bf16.mxu1 %v7728_v32  ;;  %v3552_v22 = vpack.c.bf16 %v3428_v33, %v3425_v0  ;;  %v3441_v0 = vrot.slane %v7912_v7, 3  ;;  %v3454_v29 = vrot.slane %v7917_v8, 3 }
 0x3cb   :  { %3190 = vmatmul.mubr.bf16.gmra.mrb[20].mxu1 %v2422_v1 }
 0x3cc   :  { %4142 = vmatprep.mubr.msk.bf16.mxu1 %vm394_vm2, %v2425_v24  ;;  %3708 = vmatpush1.bf16.msra.mxu1 %v4632_v55  ;;  %v7905_v55 = vld [vmem:[#allocation40_spill] sm:$0xff]  ;;  %v3432_v24 = vrot.slane %v7907_v44, 3  ;;  %v3329_v44 = vrot.slane %v7912_v7, 1 }
 0x3cd   :  { %3709 = vmatprep.subr.bf16.mxu1 %v7728_v32  ;;  %v2213_v32 = vrot.slane %v7899_v50, 1  ;;  %v3433_v1 = vrot.slane %v7905_v55, 3  ;;  %v3321_v36 = vrot.slane %v7905_v55, 1  ;;  %v4530_v50 = vunpack.i.l.bf16 %v4529_v57 }
 0x3cf   :  { %v2215_v38 = vsel %vm232_vm0, %v2213_v32, %v2214_v31  ;;  %v3434_v63 = vsel %vm2283_vm6, %v3432_v24, %v3433_v1  ;;  %v3322_v62 = vsel %vm232_vm0, %v3320_v23, %v3321_v36  ;;  %v4534_v32 = vpop.permute.xlu0 %4533  ;;  %v3332_v1 = vrot.slane %v7913_v41, 1 }
 0x3d0   :  { %3710 = vmatpush1.bf16.msra.mxu1 %v4633_v49  ;;  %v2410_v13 = vsel %vm394_vm2, %v2215_v38, %v4520_v4  ;;  %v3318_v49 = vrot.slane %v7904_v35, 1  ;;  %v3554_v30 = vpack.c.bf16 %v3434_v63, %v3431_v27  ;;  %v3327_v38 = vrot.slane %v7908_v59, 1  ;;  %v7915_v27 = vld [vmem:[#allocation45_spill] sm:$0xff] }
 0x3d1   :  { %v2426_v11 = vpack.c.bf16 %v2411_v46, %v2410_v13  ;;  %v4536_v58 = vunpack.i.h.bf16 %v4534_v32  ;;  %v4535_v51 = vunpack.i.l.bf16 %v4534_v32  ;;  %v7911_v13 = vld [vmem:[#allocation43_spill] sm:$0xff]  ;;  %v3448_v24 = vrot.slane %v6809_v34, 3 }
 0x3d2   :  { %v3319_v43 = vsel %vm232_vm0, %v3317_v9, %v3318_v49  ;;  %v3442_v46 = vrot.slane %v7911_v13, 3  ;;  %v3328_v61 = vsel %vm232_vm0, %v3326_v21, %v3327_v38  ;;  %v3330_v35 = vrot.slane %v7911_v13, 1 }
 0x3d3   :  { %3198 = vmatmul.mubr.bf16.gmra.mrb[24].mxu1 %v2424_v14  ;;  %v7909_v14 = vld [vmem:[#allocation53_spill] sm:$0xff]  ;;  %v3537_v4 = vsel %vm394_vm2, %v3319_v43, %v4530_v50  ;;  %v3447_v63 = vrot.slane %v7915_v27, 3  ;;  %v4544_v50 = vpop.permute.xlu0 %4543  ;;  %v3339_v59 = vrot.slane %v6815_v60, 1  ;;  %v3342_v21 = vrot.slane %v7917_v8, 1 }
 0x3d4   :  { %4143 = vmatprep.mubr.msk.bf16.mxu1 %vm394_vm2, %v2427_v2  ;;  %v3435_v31 = vrot.slane %v7909_v14, 3  ;;  %v3538_v2 = vsel %vm394_vm2, %v3322_v62, %v4531_v40  ;;  %v3323_v28 = vrot.slane %v7909_v14, 1  ;;  %v3443_v5 = vsel %vm2283_vm6, %v3441_v0, %v3442_v46 }
 0x3d5   :  { %v3553_v10 = vpack.c.bf16 %v3538_v2, %v3537_v4  ;;  %v3331_v15 = vsel %vm232_vm0, %v3329_v44, %v3330_v35  ;;  %v4546_v26 = vunpack.i.h.bf16 %v4544_v50  ;;  %v4545_v43 = vunpack.i.l.bf16 %v4544_v50  ;;  %v7918_v4 = vld [vmem:[#allocation58_spill] sm:$0xff] }
 0x3d6   :  { %v3437_v12 = vsel %vm2283_vm6, %v3435_v31, %v3436_v3  ;;  %v3325_v33 = vsel %vm232_vm0, %v3323_v28, %v3324_v16  ;;  %v3541_v36 = vsel %vm394_vm2, %v3331_v15, %v4540_v48  ;;  %v3336_v3 = vrot.slane %v6809_v34, 1 }
 0x3d7   :  { %v3556_v53 = vpack.c.bf16 %v3440_v25, %v3437_v12  ;;  %v3539_v52 = vsel %vm394_vm2, %v3325_v33, %v4535_v51  ;;  %v3335_v14 = vrot.slane %v7915_v27, 1  ;;  %v3457_v2 = vrot.slane %v7918_v4, 3  ;;  %v7919_v12 = vld [vmem:[#allocation56_spill] sm:$0xff]  ;;  %v7920_v25 = vld [vmem:[#allocation59_spill] sm:$0xff] }
 0x3d8   :  { %v3453_v60 = vrot.slane %v7919_v12, 3  ;;  %v3345_v13 = vrot.slane %v7918_v4, 1  ;;  %v3341_v33 = vrot.slane %v7919_v12, 1  ;;  %v3460_v41 = vrot.slane %v6837_v56, 3 }
 0x3d9   :  { %v3337_v32 = vsel %vm232_vm0, %v3335_v14, %v3336_v3  ;;  %v3351_v48 = vrot.slane %v6843_v19, 1 }
 0x3da   :  { %v3543_v16 = vsel %vm394_vm2, %v3337_v32, %v4545_v43  ;;  %v3455_v51 = vsel %vm2283_vm6, %v3453_v60, %v3454_v29 }
 0x3db   :  { %3206 = vmatmul.mubr.bf16.gmra.mrb[28].mxu1 %v2426_v11  ;;  %v7914_v11 = vld [vmem:[#allocation50_spill] sm:$0xff] }
 0x3dc   :  { %4156 = vmatprep.mubr.msk.bf16.mxu1 %vm394_vm2, %v3552_v22  ;;  %v3445_v20 = vrot.slane %v7914_v11, 3  ;;  %v3540_v22 = vsel %vm394_vm2, %v3328_v61, %v4536_v58  ;;  %v3333_v45 = vrot.slane %v7914_v11, 1  ;;  %v4549_v58 = vpop.permute.xlu1 %4548  ;;  %v3344_v61 = vrot.slane %v7920_v25, 1 }
 0x3dd   :  { %v3555_v42 = vpack.c.bf16 %v3540_v22, %v3539_v52  ;;  %v4551_v46 = vunpack.i.h.bf16 %v4549_v58  ;;  %v4550_v7 = vunpack.i.l.bf16 %v4549_v58  ;;  %v3343_v11 = vsel %vm232_vm0, %v3341_v33, %v3342_v21  ;;  %v7921_v22 = vld [vmem:[#allocation78_spill] sm:$0xff] }
 0x3de   :  { %v3446_v55 = vsel %vm2283_vm6, %v3444_v54, %v3445_v20  ;;  %v3334_v57 = vsel %vm232_vm0, %v3332_v1, %v3333_v45  ;;  %v3463_v54 = vrot.slane %v6843_v19, 3  ;;  %v3346_v20 = vsel %vm232_vm0, %v3344_v61, %v3345_v13 }
 0x3df   :  { %v3558_v18 = vpack.c.bf16 %v3446_v55, %v3443_v5  ;;  %v3542_v40 = vsel %vm394_vm2, %v3334_v57, %v4541_v47  ;;  %v3459_v52 = vrot.slane %v6835_v39, 3  ;;  %v3462_v37 = vrot.slane %v7921_v22, 3  ;;  %v7922_v57 = vld [vmem:[#allocation75_spill] sm:$0xff] }
 0x3e0   :  { %v3557_v23 = vpack.c.bf16 %v3542_v40, %v3541_v36  ;;  %v3545_v5 = vsel %vm394_vm2, %v3343_v11, %v4550_v7  ;;  %v3546_v35 = vsel %vm394_vm2, %v3346_v20, %v4551_v46  ;;  %v3348_v45 = vrot.slane %v6837_v56, 1  ;;  %v7923_v56 = vld [vmem:[#allocation72_spill] sm:$0xff]  ;;  %v7925_v40 = vld [vmem:[#allocation51_spill] sm:$0xff] }
 0x3e1   :  { %v3461_v55 = vsel %vm2283_vm6, %v3459_v52, %v3460_v41  ;;  %v3464_v1 = vsel %vm2283_vm6, %v3462_v37, %v3463_v54  ;;  %v3561_v47 = vpack.c.bf16 %v3546_v35, %v3545_v5  ;;  %v3350_v15 = vrot.slane %v7921_v22, 1  ;;  %v7924_v36 = vld [vmem:[#allocation48_spill] sm:$0xff] }
 0x3e2   :  { %v3466_v27 = vrot.slane %v7922_v57, 3  ;;  %v3468_v19 = vrot.slane %v7924_v36, 3  ;;  %v3469_v50 = vrot.slane %v7925_v40, 3  ;;  %v3354_v3 = vrot.slane %v7922_v57, 1 }
 0x3e3   :  { %3720 = vmatmul.mubr.bf16.vlgmr.msra.gmra.mrb[0].mxu1 %v3551_v17  ;;  %v7916_v17 = vld [vmem:[#allocation69_spill] sm:$0xff]  ;;  %v3356_v43 = vrot.slane %v7924_v36, 1  ;;  %v3353_v29 = vrot.slane %v7923_v56, 1 }
 0x3e4   :  { %4157 = vmatprep.mubr.msk.bf16.mxu1 %vm394_vm2, %v3554_v30  ;;  %v3450_v49 = vrot.slane %v7916_v17, 3  ;;  %v3449_v30 = vsel %vm2283_vm6, %v3447_v63, %v3448_v24  ;;  %v3338_v31 = vrot.slane %v7916_v17, 1  ;;  %v3564_v24 = vpack.c.bf16 %v3464_v1, %v3461_v55 }
 0x3e5   :  { %v3352_v17 = vsel %vm232_vm0, %v3350_v15, %v3351_v48  ;;  %v3355_v4 = vsel %vm232_vm0, %v3353_v29, %v3354_v3 }
 0x3e6   :  { %v3452_v9 = vsel %vm2283_vm6, %v3450_v49, %v3451_v6  ;;  %v3340_v34 = vsel %vm232_vm0, %v3338_v31, %v3339_v59  ;;  %v3347_v6 = vrot.slane %v6835_v39, 1  ;;  %v3465_v49 = vrot.slane %v7923_v56, 3 }
 0x3e7   :  { %v3560_v62 = vpack.c.bf16 %v3452_v9, %v3449_v30  ;;  %v3544_v38 = vsel %vm394_vm2, %v3340_v34, %v4546_v26  ;;  %v4559_v9 = vpop.permute.xlu1 %4558  ;;  %v3470_v26 = vsel %vm2283_vm6, %v3468_v19, %v3469_v50 }
 0x3e8   :  { %v3559_v28 = vpack.c.bf16 %v3544_v38, %v3543_v16  ;;  %v3349_v63 = vsel %vm232_vm0, %v3347_v6, %v3348_v45  ;;  %v4561_v14 = vunpack.i.h.bf16 %v4559_v9  ;;  %v4560_v31 = vunpack.i.l.bf16 %v4559_v9 }
 0x3ea   :  { %v3549_v32 = vsel %vm394_vm2, %v3355_v4, %v4560_v31 }
 0x3eb   :  { %3728 = vmatmul.mubr.bf16.gmra.mrb[4].mxu1 %v3553_v10  ;;  %v3456_v10 = vrot.slane %v7920_v25, 3 }
 0x3ec   :  { %4158 = vmatprep.mubr.msk.bf16.mxu1 %vm394_vm2, %v3556_v53 }
 0x3ed   :  { %v3458_v53 = vsel %vm2283_vm6, %v3456_v10, %v3457_v2 }
 0x3ee   :  { %v3562_v0 = vpack.c.bf16 %v3458_v53, %v3455_v51 }
 0x3f3   :  { %3736 = vmatmul.mubr.bf16.gmra.mrb[8].mxu1 %v3555_v42  ;;  %v4554_v42 = vpop.permute.xlu0 %4553 }
 0x3f4   :  { %4159 = vmatprep.mubr.msk.bf16.mxu1 %vm394_vm2, %v3558_v18  ;;  %v4556_v18 = vunpack.i.h.bf16 %v4554_v42  ;;  %v4555_v44 = vunpack.i.l.bf16 %v4554_v42 }
 0x3f6   :  { %v3547_v30 = vsel %vm394_vm2, %v3349_v63, %v4555_v44  ;;  %v3548_v39 = vsel %vm394_vm2, %v3352_v17, %v4556_v18 }
 0x3f7   :  { %v3563_v59 = vpack.c.bf16 %v3548_v39, %v3547_v30 }
 0x3fb   :  { %3744 = vmatmul.mubr.bf16.gmra.mrb[12].mxu1 %v3557_v23  ;;  %v3467_v23 = vsel %vm2283_vm6, %v3465_v49, %v3466_v27 }
 0x3fc   :  { %4160 = vmatprep.mubr.msk.bf16.mxu1 %vm394_vm2, %v3560_v62  ;;  %v3357_v62 = vrot.slane %v7925_v40, 1  ;;  %v3566_v8 = vpack.c.bf16 %v3470_v26, %v3467_v23 }
 0x3fe   :  { %v3358_v2 = vsel %vm232_vm0, %v3356_v43, %v3357_v62 }
 0x3ff   :  { %v3550_v34 = vsel %vm394_vm2, %v3358_v2, %v4561_v14 }
 0x400   :  { %v3565_v12 = vpack.c.bf16 %v3550_v34, %v3549_v32 }
 0x403   :  { %3752 = vmatmul.mubr.bf16.gmra.mrb[16].mxu1 %v3559_v28 }
 0x404   :  { %4161 = vmatprep.mubr.msk.bf16.mxu1 %vm394_vm2, %v3562_v0 }
 0x40b   :  { %3760 = vmatmul.mubr.bf16.gmra.mrb[20].mxu1 %v3561_v47 }
 0x40c   :  { %4162 = vmatprep.mubr.msk.bf16.mxu1 %vm394_vm2, %v3564_v24 }
 0x413   :  { %3768 = vmatmul.mubr.bf16.gmra.mrb[24].mxu1 %v3563_v59 }
 0x414   :  { %4163 = vmatprep.mubr.msk.bf16.mxu1 %vm394_vm2, %v3566_v8 }
 0x41b   :  { %3776 = vmatmul.mubr.bf16.gmra.mrb[28].mxu1 %v3565_v12 }
 0x4b6   :  { %v7263_v60 = vpop.f32.mrb[0].mxu1 }
 0x4b7   :  { %v3838_v25 = vmul.f32 %v7263_v60, %v7263_v60  ;;  %v3723_v10 = vpop.f32.mrb[1].mxu1  ;;  %v3800_v38 = vsel %vm394_vm2, %v7263_v60, 0.0 }
 0x4b8   :  { %v7267_v16 = vpop.f32.mrb[2].mxu1 }
 0x4b9   :  { %v3801_v58 = vsel %vm394_vm2, %v7267_v16, 0.0  ;;  %v3839_v51 = vmul.f32 %v7267_v16, %v7267_v16  ;;  %v3726_v53 = vpop.f32.mrb[3].mxu1  ;;  %v3854_v21 = vsel %vm394_vm2, %v3838_v25, 0.0 }
 0x4ba   :  { %v3802_v28 = vadd.f32 %v3801_v58, %v3800_v38 }
 0x4bb   :  { %v3855_v13 = vsel %vm394_vm2, %v3839_v51, 0.0 }
 0x4bc   :  { %v3856_v46 = vadd.f32 %v3855_v13, %v3854_v21 }
 0x4be   :  { %v7277_v7 = vpop.f32.mrb[4].mxu1 }
 0x4bf   :  { %v3803_v0 = vsel %vm394_vm2, %v7277_v7, 0.0  ;;  %v3840_v33 = vmul.f32 %v7277_v7, %v7277_v7  ;;  %v3731_v61 = vpop.f32.mrb[5].mxu1 }
 0x4c0   :  { %v3804_v41 = vadd.f32 %v3803_v0, %v3802_v28  ;;  %v7283_v54 = vpop.f32.mrb[6].mxu1 }
 0x4c1   :  { %v3857_v11 = vsel %vm394_vm2, %v3840_v33, 0.0  ;;  %v3805_v20 = vsel %vm394_vm2, %v7283_v54, 0.0  ;;  %v3841_v52 = vmul.f32 %v7283_v54, %v7283_v54  ;;  %v3734_v22 = vpop.f32.mrb[7].mxu1 }
 0x4c2   :  { %v3858_v37 = vadd.f32 %v3857_v11, %v3856_v46  ;;  %v3806_v5 = vadd.f32 %v3805_v20, %v3804_v41 }
 0x4c3   :  { %v3859_v35 = vsel %vm394_vm2, %v3841_v52, 0.0 }
 0x4c4   :  { %v3860_v42 = vadd.f32 %v3859_v35, %v3858_v37 }
 0x4c6   :  { %v7291_v55 = vpop.f32.mrb[8].mxu1 }
 0x4c7   :  { %v3807_v1 = vsel %vm394_vm2, %v7291_v55, 0.0  ;;  %v3842_v45 = vmul.f32 %v7291_v55, %v7291_v55  ;;  %v3739_v47 = vpop.f32.mrb[9].mxu1 }
 0x4c8   :  { %v3808_v48 = vadd.f32 %v3807_v1, %v3806_v5  ;;  %v7297_v18 = vpop.f32.mrb[10].mxu1 }
 0x4c9   :  { %v3861_v44 = vsel %vm394_vm2, %v3842_v45, 0.0  ;;  %v3809_v24 = vsel %vm394_vm2, %v7297_v18, 0.0  ;;  %v3843_v6 = vmul.f32 %v7297_v18, %v7297_v18  ;;  %v3742_v15 = vpop.f32.mrb[11].mxu1 }
 0x4ca   :  { %v3862_v57 = vadd.f32 %v3861_v44, %v3860_v42  ;;  %v3810_v27 = vadd.f32 %v3809_v24, %v3808_v48 }
 0x4cb   :  { %v3863_v63 = vsel %vm394_vm2, %v3843_v6, 0.0 }
 0x4cc   :  { %v3864_v17 = vadd.f32 %v3863_v63, %v3862_v57 }
 0x4ce   :  { %v7305_v56 = vpop.f32.mrb[12].mxu1 }
 0x4cf   :  { %v3811_v49 = vsel %vm394_vm2, %v7305_v56, 0.0  ;;  %v3844_v36 = vmul.f32 %v7305_v56, %v7305_v56  ;;  %v3747_v19 = vpop.f32.mrb[13].mxu1 }
 0x4d0   :  { %v3812_v40 = vadd.f32 %v3811_v49, %v3810_v27  ;;  %v7311_v50 = vpop.f32.mrb[14].mxu1 }
 0x4d1   :  { %v3865_v30 = vsel %vm394_vm2, %v3844_v36, 0.0  ;;  %v3813_v39 = vsel %vm394_vm2, %v7311_v50, 0.0  ;;  %v3845_v9 = vmul.f32 %v7311_v50, %v7311_v50  ;;  %v3750_v23 = vpop.f32.mrb[15].mxu1 }
 0x4d2   :  { %v3866_v3 = vadd.f32 %v3865_v30, %v3864_v17  ;;  %v3814_v59 = vadd.f32 %v3813_v39, %v3812_v40 }
 0x4d3   :  { %v3867_v26 = vsel %vm394_vm2, %v3845_v9, 0.0 }
 0x4d4   :  { %v3868_v43 = vadd.f32 %v3867_v26, %v3866_v3 }
 0x4d6   :  { %v3753_v62 = vpop.f32.mrb[16].mxu1 }
 0x4d7   :  { %v3815_v14 = vsel %vm394_vm2, %v3753_v62, 0.0  ;;  %v3846_v31 = vmul.f32 %v3753_v62, %v3753_v62  ;;  %3927 = vrot.lane.b32.xlu0 %v3753_v62, %s4854_s24  ;;  %v3755_v8 = vpop.f32.mrb[17].mxu1 }
 0x4d8   :  { %v3816_v29 = vadd.f32 %v3815_v14, %v3814_v59  ;;  %v3756_v4 = vpop.f32.mrb[18].mxu1 }
 0x4d9   :  { %v3869_v2 = vsel %vm394_vm2, %v3846_v31, 0.0  ;;  %v3817_v32 = vsel %vm394_vm2, %v3756_v4, 0.0  ;;  %v3847_v34 = vmul.f32 %v3756_v4, %v3756_v4  ;;  %3929 = vrot.lane.b32.xlu1 %v3756_v4, %s4854_s24  ;;  %v3758_v12 = vpop.f32.mrb[19].mxu1 }
 0x4da   :  { %v3870_v25 = vadd.f32 %v3869_v2, %v3868_v43  ;;  %v3818_v10 = vadd.f32 %v3817_v32, %v3816_v29 }
 0x4db   :  { %v3871_v38 = vsel %vm394_vm2, %v3847_v34, 0.0 }
 0x4dc   :  { %v3872_v58 = vadd.f32 %v3871_v38, %v3870_v25 }
 0x4de   :  { %v3761_v51 = vpop.f32.mrb[20].mxu1 }
 0x4df   :  { %v3819_v53 = vsel %vm394_vm2, %v3761_v51, 0.0  ;;  %v3848_v28 = vmul.f32 %v3761_v51, %v3761_v51  ;;  %3931 = vrot.lane.b32.xlu0 %v3761_v51, %s4854_s24  ;;  %v3763_v21 = vpop.f32.mrb[21].mxu1 }
 0x4e0   :  { %v3820_v13 = vadd.f32 %v3819_v53, %v3818_v10  ;;  %v3764_v46 = vpop.f32.mrb[22].mxu1  ;;  %v3894_v21 = vld [vmem:[#allocation15] sm:$0x1] }
 0x4e1   :  { %v3873_v0 = vsel %vm394_vm2, %v3848_v28, 0.0  ;;  %v3821_v33 = vsel %vm394_vm2, %v3764_v46, 0.0  ;;  %v3849_v61 = vmul.f32 %v3764_v46, %v3764_v46  ;;  %3933 = vrot.lane.b32.xlu1 %v3764_v46, %s4854_s24  ;;  %v3766_v41 = vpop.f32.mrb[23].mxu1 }
 0x4e2   :  { %v3874_v11 = vadd.f32 %v3873_v0, %v3872_v58  ;;  %v3822_v20 = vadd.f32 %v3821_v33, %v3820_v13  ;;  %v3898_v0 = vld [vmem:[#allocation16] sm:$0x1]  ;;  %v7926_v33 = vld [vmem:[#allocation46_spill] sm:$0xff] }
 0x4e3   :  { %v3875_v52 = vsel %vm394_vm2, %v3849_v61, 0.0 }
 0x4e4   :  { %v3876_v22 = vadd.f32 %v3875_v52, %v3874_v11 }
 0x4e6   :  { %v3769_v37 = vpop.f32.mrb[24].mxu1 }
 0x4e7   :  { %v3823_v5 = vsel %vm394_vm2, %v3769_v37, 0.0  ;;  %v3850_v35 = vmul.f32 %v3769_v37, %v3769_v37  ;;  %3935 = vrot.lane.b32.xlu0 %v3769_v37, %s4854_s24  ;;  %v3771_v42 = vpop.f32.mrb[25].mxu1 }
 0x4e8   :  { %v3824_v1 = vadd.f32 %v3823_v5, %v3822_v20  ;;  %v3772_v45 = vpop.f32.mrb[26].mxu1 }
 0x4e9   :  { %v3877_v47 = vsel %vm394_vm2, %v3850_v35, 0.0  ;;  %v3825_v48 = vsel %vm394_vm2, %v3772_v45, 0.0  ;;  %v3851_v44 = vmul.f32 %v3772_v45, %v3772_v45  ;;  %3937 = vrot.lane.b32.xlu1 %v3772_v45, %s4854_s24  ;;  %v3774_v24 = vpop.f32.mrb[27].mxu1 }
 0x4ea   :  { %v3878_v6 = vadd.f32 %v3877_v47, %v3876_v22  ;;  %v3826_v15 = vadd.f32 %v3825_v48, %v3824_v1 }
 0x4eb   :  { %v3879_v57 = vsel %vm394_vm2, %v3851_v44, 0.0 }
 0x4ec   :  { %v3880_v27 = vadd.f32 %v3879_v57, %v3878_v6 }
 0x4ee   :  { %v3777_v63 = vpop.f32.mrb[28].mxu1 }
 0x4ef   :  { %v3827_v17 = vsel %vm394_vm2, %v3777_v63, 0.0  ;;  %v3852_v49 = vmul.f32 %v3777_v63, %v3777_v63  ;;  %v3779_v36 = vpop.f32.mrb[29].mxu1 }
 0x4f0   :  { %v3828_v19 = vadd.f32 %v3827_v17, %v3826_v15  ;;  %v3780_v40 = vpop.f32.mrb[30].mxu1 }
 0x4f1   :  { %v3881_v30 = vsel %vm394_vm2, %v3852_v49, 0.0  ;;  %v3829_v39 = vsel %vm394_vm2, %v3780_v40, 0.0  ;;  %v3853_v9 = vmul.f32 %v3780_v40, %v3780_v40  ;;  %v3782_v23 = vpop.f32.mrb[31].mxu1 }
 0x4f2   :  { %v3882_v3 = vadd.f32 %v3881_v30, %v3880_v27  ;;  %v3830_v59 = vadd.f32 %v3829_v39, %v3828_v19  ;;  %v3984_v39 = vld [vmem:[#allocation7 + $0x8] sm:$0xff] }
 0x4f3   :  { %v3883_v26 = vsel %vm394_vm2, %v3853_v9, 0.0  ;;  %v3985_v9 = vld [vmem:[#allocation7 + $0x10] sm:$0xff] }
 0x4f4   :  { %v3831_v43 = vrot.slane %v3830_v59, 4  ;;  %v3884_v62 = vadd.f32 %v3883_v26, %v3882_v3 }
 0x4f6   :  { %v3832_v14 = vadd.f32 %v3831_v43, %v3830_v59  ;;  %v3885_v31 = vrot.slane %v3884_v62, 4  ;;  %v3987_v43 = vld [vmem:[#allocation7 + $0x20] sm:$0xff] }
 0x4f8   :  { %v3833_v8 = vrot.slane %v3832_v14, 2  ;;  %v3886_v29 = vadd.f32 %v3885_v31, %v3884_v62  ;;  %v3988_v62 = vld [vmem:[#allocation7 + $0x28] sm:$0xff] }
 0x4fa   :  { %v3834_v4 = vadd.f32 %v3833_v8, %v3832_v14  ;;  %v3887_v2 = vrot.slane %v3886_v29, 2  ;;  %v3989_v14 = vld [vmem:[#allocation7 + $0x30] sm:$0xff] }
 0x4fc   :  { %v3835_v32 = vrot.slane %v3834_v4, 1  ;;  %v3888_v34 = vadd.f32 %v3887_v2, %v3886_v29 }
 0x4fe   :  { %v3836_v12 = vadd.f32 %v3835_v32, %v3834_v4  ;;  %v3889_v25 = vrot.slane %v3888_v34, 1 }
 0x500   :  { %v3837_v10 = vmul.f32 0.0078125, %v3836_v12  ;;  %v3890_v38 = vadd.f32 %v3889_v25, %v3888_v34  ;;  %v3990_v25 = vld [vmem:[#allocation7 + $0x38] sm:$0xff] }
 0x502   :  { %v3891_v58 = vmul.f32 0.0078125, %v3890_v38  ;;  %v3892_v51 = vmul.f32 %v3837_v10, %v3837_v10 }
 0x504   :  { %v3893_v53 = vsub.f32 %v3891_v58, %v3892_v51 }
 0x506   :  { %v3895_v28 = vadd.f32 1e-05, %v3893_v53 }
 0x508   :  { %4636 = vrsqrt.f32 %v3895_v28 }
 0x512   :  { %v4637_v13 = vpop.eup %4636 }
 0x513   :  { %v3897_v46 = vmul.f32 %v4637_v13, %v3894_v21 }
 0x515   :  { %v3905_v61 = vrot.slane %v3897_v46, %v7926_v33  ;;  %v3899_v41 = vmul.f32 %v3897_v46, %v3837_v10 }
 0x517   :  { %3906 = vrot.lane.b32.xlu0 %v3905_v61, %s4854_s24  ;;  %v3900_v11 = vsub.f32 %v3898_v0, %v3899_v41 }
 0x519   :  { %v3914_v20 = vrot.slane %v3900_v11, %v7926_v33 }
 0x51b   :  { %3939 = vrot.lane.b32.xlu0 %v3777_v63, %s4854_s24  ;;  %3915 = vrot.lane.b32.xlu1 %v3914_v20, %s4854_s24 }
 0x51f   :  { %3941 = vrot.lane.b32.xlu1 %v3780_v40, %s4854_s24  ;;  %v3983_v40 = vld [vmem:[#allocation7] sm:$0xff]  ;;  %s4012_s24 = sshll.u32 %s4861_s5, 4  ;;  %s4013_s24 = int_to_ptr.vmem [resolvable:$true] %s4012_s24 }
 0x520   :  { %s4814_s27 = scalar_lea.vmem %s4013_s24, 1024  ;;  %p4819_p9 = scmp.lt.s32.totalorder %s4013_s24, %s4013_s24 }
 0x521   :  { %p4815_p8 = scmp.ne.s32.totalorder %s4013_s24, %s4814_s27  ;;  %p4820_p10 = scmp.lt.s32.totalorder %s4814_s27, %s4814_s27 }
 0x523   :  { %p4821_p11 = por %p4820_p10, %p4819_p9 }
 0x525   :  { %p4822_p12 = pnand %p4821_p11, %p4815_p8 }
 0x549   :  { %v3928_v52 = vpop.permute.xlu0 %3927 }
 0x54a   :  { %v3951_v48 = vsel %vm394_vm2, %v7263_v60, %v3928_v52 }
 0x54b   :  { %v3930_v22 = vpop.permute.xlu1 %3929 }
 0x54c   :  { %v3952_v44 = vsel %vm394_vm2, %v7267_v16, %v3930_v22 }
 0x551   :  { %v3932_v37 = vpop.permute.xlu0 %3931 }
 0x552   :  { %v3953_v24 = vsel %vm394_vm2, %v7277_v7, %v3932_v37 }
 0x553   :  { %v3934_v5 = vpop.permute.xlu1 %3933 }
 0x554   :  { %v3954_v6 = vsel %vm394_vm2, %v7283_v54, %v3934_v5 }
 0x559   :  { %v3936_v35 = vpop.permute.xlu0 %3935 }
 0x55a   :  { %v3955_v15 = vsel %vm394_vm2, %v7291_v55, %v3936_v35 }
 0x55b   :  { %v3938_v42 = vpop.permute.xlu1 %3937 }
 0x55c   :  { %v3956_v57 = vsel %vm394_vm2, %v7297_v18, %v3938_v42  ;;  %v3986_v18 = vld [vmem:[#allocation7 + $0x18] sm:$0xff] }
 0x589   :  { %v3907_v1 = vpop.permute.xlu0 %3906 }
 0x58a   :  { %v3909_v45 = vsel %vm394_vm2, %v3897_v46, %v3907_v1 }
 0x58b   :  { %v3962_v47 = vrot.slane %v3909_v45, %v7926_v33 }
 0x58d   :  { %v3940_v27 = vpop.permute.xlu0 %3939  ;;  %v3916_v63 = vpop.permute.xlu1 %3915  ;;  %v3963_v16 = vmul.f32 %v3962_v47, %v3951_v48  ;;  %v3964_v49 = vmul.f32 %v3962_v47, %v3952_v44  ;;  %v3965_v19 = vmul.f32 %v3962_v47, %v3953_v24  ;;  %v3966_v54 = vmul.f32 %v3962_v47, %v3954_v6 }
 0x58e   :  { %v3957_v60 = vsel %vm394_vm2, %v7305_v56, %v3940_v27  ;;  %v3918_v17 = vsel %vm394_vm2, %v3900_v11, %v3916_v63  ;;  %v3967_v30 = vmul.f32 %v3962_v47, %v3955_v15  ;;  %v3968_v55 = vmul.f32 %v3962_v47, %v3956_v57 }
 0x58f   :  { %v3969_v36 = vmul.f32 %v3962_v47, %v3957_v60  ;;  %v3974_v7 = vrot.slane %v3918_v17, %v7926_v33 }
 0x591   :  { %v3942_v23 = vpop.permute.xlu1 %3941  ;;  %v3975_v3 = vadd.f32 %v3974_v7, %v3963_v16  ;;  %v3976_v59 = vadd.f32 %v3974_v7, %v3964_v49  ;;  %v3977_v26 = vadd.f32 %v3974_v7, %v3965_v19  ;;  %v3978_v56 = vadd.f32 %v3974_v7, %v3966_v54 }
 0x592   :  { %v3958_v31 = vsel %vm394_vm2, %v7311_v50, %v3942_v23  ;;  %v3979_v8 = vadd.f32 %v3974_v7, %v3967_v30  ;;  %v3980_v29 = vadd.f32 %v3974_v7, %v3968_v55  ;;  %v3981_v4 = vadd.f32 %v3974_v7, %v3969_v36 }
 0x593   :  { %v3970_v2 = vmul.f32 %v3962_v47, %v3958_v31  ;;  %v3991_v32 = vadd.f32 %v3983_v40, %v3975_v3  ;;  %v3992_v34 = vadd.f32 %v3984_v39, %v3976_v59  ;;  %v3993_v12 = vadd.f32 %v3985_v9, %v3977_v26 }
 0x594   :  { %v3994_v10 = vadd.f32 %v3986_v18, %v3978_v56  ;;  %v3995_v38 = vadd.f32 %v3987_v43, %v3979_v8  ;;  %v3996_v58 = vadd.f32 %v3988_v62, %v3980_v29  ;;  %v3997_v51 = vadd.f32 %v3989_v14, %v3981_v4 }
 0x595   :  { %v3982_v53 = vadd.f32 %v3974_v7, %v3970_v2  ;;  %3999 = vst [vmem:[#allocation18] sm:$0xff] %v3991_v32  ;;  %4000 = vst [vmem:[#allocation18 + $0x8] sm:$0xff] %v3992_v34 }
 0x596   :  { %4001 = vst [vmem:[#allocation18 + $0x10] sm:$0xff] %v3993_v12  ;;  %4002 = vst [vmem:[#allocation18 + $0x18] sm:$0xff] %v3994_v10 }
 0x597   :  { %4003 = vst [vmem:[#allocation18 + $0x20] sm:$0xff] %v3995_v38  ;;  %4004 = vst [vmem:[#allocation18 + $0x28] sm:$0xff] %v3996_v58  ;;  %v3998_v50 = vadd.f32 %v3990_v25, %v3982_v53 }
 0x598   :  { %4005 = vst [vmem:[#allocation18 + $0x30] sm:$0xff] %v3997_v51 }
 0x599   :  { %4006 = vst [vmem:[#allocation18 + $0x38] sm:$0xff] %v3998_v50 }
 0x59a   :  { %4825 = shalt.err (!%p4822_p12)
}
 0x59b   :  { %s4826_s30 = scalar_lea.hbm %s7391_s9, 1024 }
 0x59c   :  { %p4827_p13 = scmp.ne.s32.totalorder %s7391_s9, %s4826_s30  ;;  %p4830_p0 = scmp.lt.u32.totalorder %s4826_s30, %s7391_s9 }
 0x59e   :  { %p4832_p1 = pnand %p4830_p0, %p4827_p13 }
 0x5a0   :  { %4835 = shalt.err (!%p4832_p1)
}
 0x5a1   :  { %4018 = dma.vmem_to_hbm [thread:$0]  %s4013_s24, 1024, %s7391_s9, [#allocation6], %s4849_s19, %s4849_s19, %s4850_s20  }
 0x5a2   :  { %4846 = dma.done.wait [#allocation6], 1024  }
 0x5a3   :  { %4847 = vsyncadd [#allocation6], 4294966272 }
 0x5a4   :  { %4022 = vsyncpa [#allocation5], 1 }
 0x5a5   :  { %4023 = vsyncpa [#allocation8], 1 }
 0x5a6   :  { %4024 = vsyncpa [#allocation11], 1 }
 0x5a7   :  { %4025 = vsyncpa [#allocation14], 1 }
 0x5a8   :  { %4026 = vsyncpa [#allocation17], 1 }
 0x5a9   :  { %4027 = vsyncpa [#allocation6], 1 }

</bundles_post_ra>
